<compile_context>
chip_gen: v7x
topology: tpu7x:2x2x1
jax: 0.10.0
libtpu: 0.0.40
codegen_flags: <defaults>
</compile_context>

<pallas_src>
import functools
import math

import jax
import jax.numpy as jnp
from jax import lax
from jax.experimental import pallas as pl
from jax.experimental.pallas import tpu as pltpu


def _row_tile(n, cap=512):
    """Largest multiple-of-8 divisor of n, capped at `cap` (n is a mult of 8)."""
    best = 8
    d = 8
    while d <= min(n, cap):
        if n % d == 0:
            best = d
        d += 8
    return best


# ----------------------------------------------------------------------------
# Kernel 1a: first-layer input projection.
#   gates_x[rows, :] = x[rows, :] @ W_cat + b_cat      (W_cat packs both dirs)
# ----------------------------------------------------------------------------
def in_proj1_kernel(x_ref, w_ref, b_ref, o_ref):
    acc = jnp.dot(x_ref[...], w_ref[...], preferred_element_type=jnp.float32)
    o_ref[...] = (acc + b_ref[...]).astype(o_ref.dtype)


def input_projection_first(x2d, w_cat, b_cat, row_tile):
    """x2d: (N, Din) bf16, w_cat: (Din, 8H) bf16, b_cat: (1, 8H) f32
    -> (N, 8H) bf16."""
    N, Din = x2d.shape
    G2 = w_cat.shape[1]
    rt = row_tile
    return pl.pallas_call(
        in_proj1_kernel,
        out_shape=jax.ShapeDtypeStruct((N, G2), jnp.bfloat16),
        grid_spec=pltpu.PrefetchScalarGridSpec(
            num_scalar_prefetch=0,
            grid=(N // rt,),
            in_specs=[
                pl.BlockSpec((rt, Din), lambda r: (r, 0)),
                pl.BlockSpec((Din, G2), lambda r: (0, 0)),
                pl.BlockSpec((1, G2), lambda r: (0, 0)),
            ],
            out_specs=pl.BlockSpec((rt, G2), lambda r: (r, 0)),
        ),
        compiler_params=pltpu.CompilerParams(dimension_semantics=("parallel",)),
    )(x2d, w_cat, b_cat)


# ----------------------------------------------------------------------------
# Kernel 1b: hidden-layer input projection, concat-free.
#   gates_x = h_fwd @ W_cat[:H] + h_bwd @ W_cat[H:2H] + b_cat
# The previous layer's output stays as (2, N, H); no concatenate needed.
# ----------------------------------------------------------------------------
def in_proj2_kernel(xf_ref, xb_ref, wf_ref, wb_ref, b_ref, o_ref):
    acc = jnp.dot(xf_ref[...], wf_ref[...], preferred_element_type=jnp.float32)
    acc = acc + jnp.dot(xb_ref[...], wb_ref[...],
                        preferred_element_type=jnp.float32)
    o_ref[...] = (acc + b_ref[...]).astype(o_ref.dtype)


def input_projection_hidden(h2, w_cat, b_cat, H, row_tile):
    """h2: (2, N, H) bf16, w_cat: (2H, 8H) bf16, b_cat: (1, 8H) f32
    -> (N, 8H) bf16."""
    _, N, _ = h2.shape
    G2 = w_cat.shape[1]
    rt = row_tile
    return pl.pallas_call(
        in_proj2_kernel,
        out_shape=jax.ShapeDtypeStruct((N, G2), jnp.bfloat16),
        grid_spec=pltpu.PrefetchScalarGridSpec(
            num_scalar_prefetch=0,
            grid=(N // rt,),
            in_specs=[
                pl.BlockSpec((pl.Squeezed(), rt, H), lambda r: (0, r, 0)),
                pl.BlockSpec((pl.Squeezed(), rt, H), lambda r: (1, r, 0)),
                pl.BlockSpec((H, G2), lambda r: (0, 0)),
                pl.BlockSpec((H, G2), lambda r: (1, 0)),
                pl.BlockSpec((1, G2), lambda r: (0, 0)),
            ],
            out_specs=pl.BlockSpec((rt, G2), lambda r: (r, 0)),
        ),
        compiler_params=pltpu.CompilerParams(dimension_semantics=("parallel",)),
    )(h2, h2, w_cat, w_cat, b_cat)


# ----------------------------------------------------------------------------
# Kernel 2: fused bidirectional LSTM recurrence.
# Grid = (direction, time_block). Forward walks time blocks left->right,
# backward walks them right->left (index_map) and walks timesteps inside a
# block in reverse (static unroll), so no input gathers are needed.
# h/c (f32) persist in VMEM scratch across the "arbitrary" time axis and are
# reset at s == 0 for each direction. Output is (2, T_pad, B, H) so the next
# layer consumes the two halves without a concat.
# ----------------------------------------------------------------------------
def lstm_recurrent_kernel(len_ref, gx_ref, whh_ref, o_ref, h_scr, c_scr, *, TT, H):
    d = pl.program_id(0)          # 0 = forward, 1 = backward
    s = pl.program_id(1)          # sequential time-block counter
    nb = pl.num_programs(1)

    @pl.when(s == 0)
    def _():
        h_scr[...] = jnp.zeros_like(h_scr)
        c_scr[...] = jnp.zeros_like(c_scr)

    whh = whh_ref[...]            # (H, 4H) bf16, resident (this direction)
    lens = len_ref[...]           # (B, 1) int32, resident
    B = lens.shape[0]

    def run_chain(t0, reverse):
        # Hoisted per-block validity mask: (B, TT) bool, column j <-> t0 + j.
        t_idx = t0 + lax.broadcasted_iota(jnp.int32, (B, TT), 1)
        m_all = lens > t_idx

        h = h_scr[...]
        c = c_scr[...]
        for j in range(TT):                               # static unroll
            local = (TT - 1 - j) if reverse else j        # static slice offset
            gates = (gx_ref[local].astype(jnp.float32)
                     + jnp.dot(h.astype(jnp.bfloat16), whh,
                               preferred_element_type=jnp.float32))  # (B, 4H)
            i_g = jax.nn.sigmoid(gates[:, 0 * H:1 * H])
            f_g = jax.nn.sigmoid(gates[:, 1 * H:2 * H])
            g_g = jnp.tanh(gates[:, 2 * H:3 * H])
            o_g = jax.nn.sigmoid(gates[:, 3 * H:4 * H])
            c_new = f_g * c + i_g * g_g
            h_new = o_g * jnp.tanh(c_new)
            m = m_all[:, local:local + 1]                 # (B, 1) bool
            h = jnp.where(m, h_new, h)                    # freeze padded steps
            c = jnp.where(m, c_new, c)
            o_ref[local] = jnp.where(m, h_new, 0.0).astype(o_ref.dtype)
        h_scr[...] = h
        c_scr[...] = c

    @pl.when(d == 0)
    def _():
        run_chain(s * TT, reverse=False)

    @pl.when(d == 1)
    def _():
        run_chain((nb - 1 - s) * TT, reverse=True)


def bilstm_recurrent(gx, whh_cat, lengths_col, H, TT):
    """gx: (T_pad, B, 8H) bf16, whh_cat: (H, 8H) bf16, lengths_col: (B,1) i32
    -> (2, T_pad, B, H) bf16 (dir 0 = forward, dir 1 = backward)."""
    T_pad, B, _ = gx.shape
    G = 4 * H
    nb = T_pad // TT

    def t_block(d, s):
        return d * (nb - 1) + (1 - 2 * d) * s             # s (fwd) / nb-1-s (bwd)

    kernel = functools.partial(lstm_recurrent_kernel, TT=TT, H=H)
    return pl.pallas_call(
        kernel,
        out_shape=jax.ShapeDtypeStruct((2, T_pad, B, H), jnp.bfloat16),
        grid_spec=pltpu.PrefetchScalarGridSpec(
            num_scalar_prefetch=0,
            grid=(2, nb),
            in_specs=[
                pl.BlockSpec((B, 1), lambda d, s: (0, 0)),                 # lengths
                pl.BlockSpec((TT, B, G), lambda d, s: (t_block(d, s), 0, d)),  # gx
                pl.BlockSpec((H, G), lambda d, s: (0, d)),                 # W_hh^T
            ],
            out_specs=pl.BlockSpec((pl.Squeezed(), TT, B, H),
                                   lambda d, s: (d, t_block(d, s), 0, 0)),
            scratch_shapes=[pltpu.VMEM((B, H), jnp.float32),
                            pltpu.VMEM((B, H), jnp.float32)],
        ),
        compiler_params=pltpu.CompilerParams(
            dimension_semantics=("parallel", "arbitrary")),
    )(lengths_col, gx, whh_cat)


# ----------------------------------------------------------------------------
# Kernel 3: MLP head, tiled over rows, concat-free inputs, lane-dense output.
#   relu(h_fwd@W1f + h_bwd@W1b + b1) @ W2_pad + b2_pad -> log_softmax
# Class dim padded to a multiple of 128; padded logits carry bias -1e9 so the
# log_softmax normalization only sees the real classes.
# ----------------------------------------------------------------------------
def head_kernel(xf_ref, xb_ref, w1f_ref, w1b_ref, b1_ref, w2_ref, b2_ref, o_ref):
    h1 = jnp.dot(xf_ref[...], w1f_ref[...], preferred_element_type=jnp.float32)
    h1 = h1 + jnp.dot(xb_ref[...], w1b_ref[...],
                      preferred_element_type=jnp.float32)
    h1 = jnp.maximum(h1 + b1_ref[...], 0.0).astype(jnp.bfloat16)
    logits = (jnp.dot(h1, w2_ref[...], preferred_element_type=jnp.float32)
              + b2_ref[...])
    m = jnp.max(logits, axis=-1, keepdims=True)
    lse = m + jnp.log(jnp.sum(jnp.exp(logits - m), axis=-1, keepdims=True))
    o_ref[...] = logits - lse


def run_head(h2, w1_cat, b1, w2_pad, b2_pad, H, row_tile):
    """h2: (2, N, H) bf16 -> (N, C_pad) f32 log-probs (padded classes = junk)."""
    _, N, _ = h2.shape
    D2 = w1_cat.shape[1]       # 4H
    Cp = w2_pad.shape[1]       # padded class count (multiple of 128)
    rt = row_tile
    return pl.pallas_call(
        head_kernel,
        out_shape=jax.ShapeDtypeStruct((N, Cp), jnp.float32),
        grid_spec=pltpu.PrefetchScalarGridSpec(
            num_scalar_prefetch=0,
            grid=(N // rt,),
            in_specs=[
                pl.BlockSpec((pl.Squeezed(), rt, H), lambda r: (0, r, 0)),
                pl.BlockSpec((pl.Squeezed(), rt, H), lambda r: (1, r, 0)),
                pl.BlockSpec((H, D2), lambda r: (0, 0)),
                pl.BlockSpec((H, D2), lambda r: (1, 0)),
                pl.BlockSpec((1, D2), lambda r: (0, 0)),
                pl.BlockSpec((D2, Cp), lambda r: (0, 0)),
                pl.BlockSpec((1, Cp), lambda r: (0, 0)),
            ],
            out_specs=pl.BlockSpec((rt, Cp), lambda r: (r, 0)),
        ),
        compiler_params=pltpu.CompilerParams(dimension_semantics=("parallel",)),
    )(h2, h2, w1_cat, w1_cat, b1, w2_pad, b2_pad)


# ----------------------------------------------------------------------------
# Parameter init (deterministic, uniform(-1/sqrt(fan), 1/sqrt(fan)) like PyTorch).
# Weights are pre-packed for the kernels above.
# ----------------------------------------------------------------------------
def init_params(key, input_size, output_size, num_layers, hidden_size):
    H = hidden_size
    k = 1.0 / math.sqrt(H)

    def u(key, shape, scale):
        return jax.random.uniform(key, shape, jnp.float32, minval=-scale, maxval=scale)

    lstm_params = []
    for layer in range(num_layers):
        din = input_size if layer == 0 else 2 * H
        wih_l, whh_l, b_l = [], [], []
        for _ in range(2):                       # forward, backward
            key, k1, k2, k3, k4 = jax.random.split(key, 5)
            w_ih = u(k1, (4 * H, din), k)        # PyTorch weight_ih: (4H, din)
            w_hh = u(k2, (4 * H, H), k)          # PyTorch weight_hh: (4H, H)
            b_ih = u(k3, (4 * H,), k)
            b_hh = u(k4, (4 * H,), k)
            wih_l.append(jnp.transpose(w_ih))    # (din, 4H)
            whh_l.append(jnp.transpose(w_hh))    # (H, 4H)
            b_l.append(b_ih + b_hh)              # (4H,)
        wih_cat = jnp.concatenate(wih_l, axis=1).astype(jnp.bfloat16)  # (din, 8H)
        whh_cat = jnp.concatenate(whh_l, axis=1).astype(jnp.bfloat16)  # (H, 8H)
        b_cat = jnp.concatenate(b_l)[None, :]                          # (1, 8H) f32
        lstm_params.append((wih_cat, whh_cat, b_cat))

    k1lin = 1.0 / math.sqrt(2 * H)
    k2lin = 1.0 / math.sqrt(4 * H)
    key, a1, a2, a3, a4 = jax.random.split(key, 5)
    w1 = u(a1, (4 * H, 2 * H), k1lin)            # PyTorch Linear: (out, in)
    b1 = u(a2, (4 * H,), k1lin)
    w2 = u(a3, (output_size, 4 * H), k2lin)
    b2 = u(a4, (output_size,), k2lin)

    C = output_size
    Cp = 128 * ((C + 127) // 128)                # lane-dense class dim
    w1_cat = jnp.transpose(w1).astype(jnp.bfloat16)                    # (2H, 4H)
    w2t = jnp.transpose(w2)                                            # (4H, C)
    w2_pad = (jnp.zeros((4 * H, Cp), jnp.float32)
              .at[:, :C].set(w2t).astype(jnp.bfloat16))
    b2_pad = jnp.full((1, Cp), -1e9, jnp.float32).at[0, :C].set(b2)
    head_params = (w1_cat, b1[None, :], w2_pad, b2_pad)
    return lstm_params, head_params


# ----------------------------------------------------------------------------
# Full forward pass matching My_LSTM.forward(X, lengths).
# ----------------------------------------------------------------------------
def my_lstm_forward(X, lengths, lstm_params, head_params,
                    hidden_size, output_size, tt=8):
    T, B, Din = X.shape
    H = hidden_size
    T_pad = tt * ((T + tt - 1) // tt)
    if T_pad != T:
        X = jnp.pad(X, ((0, T_pad - T), (0, 0), (0, 0)))
    lengths = lengths.astype(jnp.int32)
    lengths_col = lengths.reshape(B, 1)

    N = T_pad * B
    rt = _row_tile(N)

    x2d = X.astype(jnp.bfloat16).reshape(N, Din)
    h2 = None
    for layer_idx, (wih_cat, whh_cat, b_cat) in enumerate(lstm_params):
        if layer_idx == 0:
            gx2d = input_projection_first(x2d, wih_cat, b_cat, rt)      # (N, 8H)
        else:
            gx2d = input_projection_hidden(h2, wih_cat, b_cat, H, rt)   # (N, 8H)
        gx = gx2d.reshape(T_pad, B, 8 * H)
        out2 = bilstm_recurrent(gx, whh_cat, lengths_col, H, tt)        # (2,T,B,H)
        h2 = out2.reshape(2, N, H)                                      # free reshape

    w1_cat, b1, w2_pad, b2_pad = head_params
    logp_pad = run_head(h2, w1_cat, b1, w2_pad, b2_pad, H, rt)          # (N, Cp)
    logp = logp_pad.reshape(T_pad, B, -1)[:T, :, :output_size]
    return logp, lengths


if __name__ == "__main__":
    # size_list = [input_size, output_size, num_layers, hidden_size]
    input_size, output_size, num_layers, hidden_size = 16, 12, 2, 32
    T, B = 8, 2

    key = jax.random.PRNGKey(0)
    key, kx = jax.random.split(key)
    X = jax.random.normal(kx, (T, B, input_size), jnp.float32)
    lengths = jnp.array([8, 5], dtype=jnp.int32)

    lstm_params, head_params = init_params(
        key, input_size, output_size, num_layers, hidden_size)

    fwd = jax.jit(functools.partial(my_lstm_forward,
                                    hidden_size=hidden_size,
                                    output_size=output_size,
                                    tt=8))
    out, out_lens = fwd(X, lengths, lstm_params, head_params)
    jax.block_until_ready(out)
    jax.block_until_ready(out_lens)

    assert out.shape == (T, B, output_size)
    assert out_lens.shape == (B,)
    assert bool(jnp.all(jnp.isfinite(out)))
    # log_softmax sanity: rows must (approximately) normalize to 1.
    assert bool(jnp.all(jnp.abs(jnp.sum(jnp.exp(out), axis=-1) - 1.0) < 1e-3))
    print("KERNEL_OK")
</pallas_src>

<mosaic_0001>
module attributes {stable_mosaic.version = 11 : i64} {
  func.func @in_proj1_kernel(%arg0: i32, %arg1: memref<16x16xbf16, #tpu.memory_space<vmem>>, %arg2: memref<16x256xbf16, #tpu.memory_space<vmem>>, %arg3: memref<1x256xf32, #tpu.memory_space<vmem>>, %arg4: memref<16x256xbf16, #tpu.memory_space<vmem>>) attributes {dimension_semantics = [#tpu.dimension_semantics<parallel>], iteration_bounds = array<i64: 1>, scalar_prefetch = 0 : i64, scratch_operands = 0 : i64, tpu.core_type = #tpu.core_type<tc>, window_params = [{transform_indices = @transform_0, window_bounds = array<i64: 16, 16>}, {pipeline_mode = #tpu.pipeline_mode<synchronous>, transform_indices = @transform_1, window_bounds = array<i64: 16, 256>}, {pipeline_mode = #tpu.pipeline_mode<synchronous>, transform_indices = @transform_2, window_bounds = array<i64: 1, 256>}, {transform_indices = @transform_3, window_bounds = array<i64: 16, 256>}]} {
    %c0 = arith.constant 0 : index
    %c0_0 = arith.constant 0 : index
    %0 = vector.load %arg1[%c0, %c0_0] : memref<16x16xbf16, #tpu.memory_space<vmem>>, vector<16x16xbf16>
    %c0_1 = arith.constant 0 : index
    %c0_2 = arith.constant 0 : index
    %1 = vector.load %arg2[%c0_1, %c0_2] : memref<16x256xbf16, #tpu.memory_space<vmem>>, vector<16x256xbf16>
    %cst = arith.constant dense<0.000000e+00> : vector<16x256xf32>
    %2 = tpu.matmul %0, %1, %cst {dimension_numbers = #tpu.dot_dimension_numbers<[1], [0], [0], [1], [0, 0, 1, 1], [], []>} : vector<16x16xbf16>, vector<16x256xbf16>, vector<16x256xf32> -> vector<16x256xf32>
    %c0_3 = arith.constant 0 : index
    %c0_4 = arith.constant 0 : index
    %3 = vector.load %arg3[%c0_3, %c0_4] : memref<1x256xf32, #tpu.memory_space<vmem>>, vector<1x256xf32>
    %4 = vector.broadcast %3 : vector<1x256xf32> to vector<16x256xf32>
    %5 = arith.addf %2, %4 : vector<16x256xf32>
    %6 = arith.truncf %5 : vector<16x256xf32> to vector<16x256xbf16>
    %c0_5 = arith.constant 0 : index
    %c0_6 = arith.constant 0 : index
    %7 = vector.load %arg4[%c0_5, %c0_6] : memref<16x256xbf16, #tpu.memory_space<vmem>>, vector<16x256xbf16>
    tpu.vector_store %arg4[%c0_5, %c0_6], %6 {strides = array<i32>} : memref<16x256xbf16, #tpu.memory_space<vmem>>, vector<16x256xbf16>,
    return
  }
  func.func @transform_0(%arg0: i32) -> (i32, i32) {
    %c0_i32 = arith.constant 0 : i32
    %c0_i32_0 = arith.constant 0 : i32
    return %arg0, %c0_i32 : i32, i32
  }
  func.func @transform_1(%arg0: i32) -> (i32, i32) {
    %c0_i32 = arith.constant 0 : i32
    %c0_i32_0 = arith.constant 0 : i32
    %c0_i32_1 = arith.constant 0 : i32
    return %c0_i32, %c0_i32_0 : i32, i32
  }
  func.func @transform_2(%arg0: i32) -> (i32, i32) {
    %c0_i32 = arith.constant 0 : i32
    %c0_i32_0 = arith.constant 0 : i32
    %c0_i32_1 = arith.constant 0 : i32
    return %c0_i32, %c0_i32_0 : i32, i32
  }
  func.func @transform_3(%arg0: i32) -> (i32, i32) {
    %c0_i32 = arith.constant 0 : i32
    %c0_i32_0 = arith.constant 0 : i32
    return %arg0, %c0_i32 : i32, i32
  }
}

module attributes {stable_mosaic.version = 11 : i64} {
  func.func @head_kernel(%arg0: i32, %arg1: memref<1x16x32xbf16, #tpu.memory_space<vmem>>, %arg2: memref<1x16x32xbf16, #tpu.memory_space<vmem>>, %arg3: memref<32x128xbf16, #tpu.memory_space<vmem>>, %arg4: memref<32x128xbf16, #tpu.memory_space<vmem>>, %arg5: memref<1x128xf32, #tpu.memory_space<vmem>>, %arg6: memref<128x128xbf16, #tpu.memory_space<vmem>>, %arg7: memref<1x128xf32, #tpu.memory_space<vmem>>, %arg8: memref<16x128xf32, #tpu.memory_space<vmem>>) attributes {dimension_semantics = [#tpu.dimension_semantics<parallel>], iteration_bounds = array<i64: 1>, scalar_prefetch = 0 : i64, scratch_operands = 0 : i64, tpu.core_type = #tpu.core_type<tc>, window_params = [{transform_indices = @transform_0, window_bounds = array<i64: 1, 16, 32>}, {transform_indices = @transform_1, window_bounds = array<i64: 1, 16, 32>}, {transform_indices = @transform_2, window_bounds = array<i64: 32, 128>}, {transform_indices = @transform_3, window_bounds = array<i64: 32, 128>}, {pipeline_mode = #tpu.pipeline_mode<synchronous>, transform_indices = @transform_4, window_bounds = array<i64: 1, 128>}, {pipeline_mode = #tpu.pipeline_mode<synchronous>, transform_indices = @transform_5, window_bounds = array<i64: 128, 128>}, {pipeline_mode = #tpu.pipeline_mode<synchronous>, transform_indices = @transform_6, window_bounds = array<i64: 1, 128>}, {transform_indices = @transform_7, window_bounds = array<i64: 16, 128>}]} {
    %c0 = arith.constant 0 : index
    %c0_0 = arith.constant 0 : index
    %c0_1 = arith.constant 0 : index
    %0 = vector.load %arg1[%c0, %c0_0, %c0_1] : memref<1x16x32xbf16, #tpu.memory_space<vmem>>, vector<1x16x32xbf16>
    %1 = vector.shape_cast %0 : vector<1x16x32xbf16> to vector<16x32xbf16>
    %c0_2 = arith.constant 0 : index
    %c0_3 = arith.constant 0 : index
    %2 = vector.load %arg3[%c0_2, %c0_3] : memref<32x128xbf16, #tpu.memory_space<vmem>>, vector<32x128xbf16>
    %cst = arith.constant dense<0.000000e+00> : vector<16x128xf32>
    %3 = tpu.matmul %1, %2, %cst {dimension_numbers = #tpu.dot_dimension_numbers<[1], [0], [0], [1], [0, 0, 1, 1], [], []>} : vector<16x32xbf16>, vector<32x128xbf16>, vector<16x128xf32> -> vector<16x128xf32>
    %c0_4 = arith.constant 0 : index
    %c0_5 = arith.constant 0 : index
    %c0_6 = arith.constant 0 : index
    %4 = vector.load %arg2[%c0_4, %c0_5, %c0_6] : memref<1x16x32xbf16, #tpu.memory_space<vmem>>, vector<1x16x32xbf16>
    %5 = vector.shape_cast %4 : vector<1x16x32xbf16> to vector<16x32xbf16>
    %c0_7 = arith.constant 0 : index
    %c0_8 = arith.constant 0 : index
    %6 = vector.load %arg4[%c0_7, %c0_8] : memref<32x128xbf16, #tpu.memory_space<vmem>>, vector<32x128xbf16>
    %cst_9 = arith.constant dense<0.000000e+00> : vector<16x128xf32>
    %7 = tpu.matmul %5, %6, %cst_9 {dimension_numbers = #tpu.dot_dimension_numbers<[1], [0], [0], [1], [0, 0, 1, 1], [], []>} : vector<16x32xbf16>, vector<32x128xbf16>, vector<16x128xf32> -> vector<16x128xf32>
    %8 = arith.addf %3, %7 : vector<16x128xf32>
    %c0_10 = arith.constant 0 : index
    %c0_11 = arith.constant 0 : index
    %9 = vector.load %arg5[%c0_10, %c0_11] : memref<1x128xf32, #tpu.memory_space<vmem>>, vector<1x128xf32>
    %10 = vector.broadcast %9 : vector<1x128xf32> to vector<16x128xf32>
    %11 = arith.addf %8, %10 : vector<16x128xf32>
    %cst_12 = arith.constant 0.000000e+00 : f32
    %12 = vector.broadcast %cst_12 : f32 to vector<16x128xf32>
    %13 = arith.maximumf %11, %12 : vector<16x128xf32>
    %14 = arith.truncf %13 : vector<16x128xf32> to vector<16x128xbf16>
    %c0_13 = arith.constant 0 : index
    %c0_14 = arith.constant 0 : index
    %15 = vector.load %arg6[%c0_13, %c0_14] : memref<128x128xbf16, #tpu.memory_space<vmem>>, vector<128x128xbf16>
    %cst_15 = arith.constant dense<0.000000e+00> : vector<16x128xf32>
    %16 = tpu.matmul %14, %15, %cst_15 {dimension_numbers = #tpu.dot_dimension_numbers<[1], [0], [0], [1], [0, 0, 1, 1], [], []>} : vector<16x128xbf16>, vector<128x128xbf16>, vector<16x128xf32> -> vector<16x128xf32>
    %c0_16 = arith.constant 0 : index
    %c0_17 = arith.constant 0 : index
    %17 = vector.load %arg7[%c0_16, %c0_17] : memref<1x128xf32, #tpu.memory_space<vmem>>, vector<1x128xf32>
    %18 = vector.broadcast %17 : vector<1x128xf32> to vector<16x128xf32>
    %19 = arith.addf %16, %18 : vector<16x128xf32>
    %cst_18 = arith.constant dense<0xFF800000> : vector<16xf32>
    %20 = vector.multi_reduction <maximumf>, %19, %cst_18 [1] : vector<16x128xf32> to vector<16xf32>
    %21 = vector.shape_cast %20 : vector<16xf32> to vector<16x1xf32>
    %22 = vector.broadcast %21 : vector<16x1xf32> to vector<16x128xf32>
    %23 = arith.subf %19, %22 : vector<16x128xf32>
    %24 = math.exp %23 : vector<16x128xf32>
    %cst_19 = arith.constant dense<0.000000e+00> : vector<16xf32>
    %25 = vector.multi_reduction <add>, %24, %cst_19 [1] : vector<16x128xf32> to vector<16xf32>
    %26 = vector.shape_cast %25 : vector<16xf32> to vector<16x1xf32>
    %27 = math.log %26 : vector<16x1xf32>
    %28 = arith.addf %21, %27 : vector<16x1xf32>
    %29 = vector.broadcast %28 : vector<16x1xf32> to vector<16x128xf32>
    %30 = arith.subf %19, %29 : vector<16x128xf32>
    %c0_20 = arith.constant 0 : index
    %c0_21 = arith.constant 0 : index
    %31 = vector.load %arg8[%c0_20, %c0_21] : memref<16x128xf32, #tpu.memory_space<vmem>>, vector<16x128xf32>
    tpu.vector_store %arg8[%c0_20, %c0_21], %30 {strides = array<i32>} : memref<16x128xf32, #tpu.memory_space<vmem>>, vector<16x128xf32>,
    return
  }
  func.func @transform_0(%arg0: i32) -> (i32, i32, i32) {
    %c0_i32 = arith.constant 0 : i32
    %c0_i32_0 = arith.constant 0 : i32
    %c0_i32_1 = arith.constant 0 : i32
    return %c0_i32, %arg0, %c0_i32_0 : i32, i32, i32
  }
  func.func @transform_1(%arg0: i32) -> (i32, i32, i32) {
    %c1_i32 = arith.constant 1 : i32
    %c0_i32 = arith.constant 0 : i32
    %c0_i32_0 = arith.constant 0 : i32
    return %c1_i32, %arg0, %c0_i32 : i32, i32, i32
  }
  func.func @transform_2(%arg0: i32) -> (i32, i32) {
    %c0_i32 = arith.constant 0 : i32
    %c0_i32_0 = arith.constant 0 : i32
    %c0_i32_1 = arith.constant 0 : i32
    return %c0_i32, %c0_i32_0 : i32, i32
  }
  func.func @transform_3(%arg0: i32) -> (i32, i32) {
    %c1_i32 = arith.constant 1 : i32
    %c0_i32 = arith.constant 0 : i32
    %c0_i32_0 = arith.constant 0 : i32
    return %c1_i32, %c0_i32 : i32, i32
  }
  func.func @transform_4(%arg0: i32) -> (i32, i32) {
    %c0_i32 = arith.constant 0 : i32
    %c0_i32_0 = arith.constant 0 : i32
    %c0_i32_1 = arith.constant 0 : i32
    return %c0_i32, %c0_i32_0 : i32, i32
  }
  func.func @transform_5(%arg0: i32) -> (i32, i32) {
    %c0_i32 = arith.constant 0 : i32
    %c0_i32_0 = arith.constant 0 : i32
    %c0_i32_1 = arith.constant 0 : i32
    return %c0_i32, %c0_i32_0 : i32, i32
  }
  func.func @transform_6(%arg0: i32) -> (i32, i32) {
    %c0_i32 = arith.constant 0 : i32
    %c0_i32_0 = arith.constant 0 : i32
    %c0_i32_1 = arith.constant 0 : i32
    return %c0_i32, %c0_i32_0 : i32, i32
  }
  func.func @transform_7(%arg0: i32) -> (i32, i32) {
    %c0_i32 = arith.constant 0 : i32
    %c0_i32_0 = arith.constant 0 : i32
    return %arg0, %c0_i32 : i32, i32
  }
}

module attributes {stable_mosaic.version = 11 : i64} {
  func.func @in_proj2_kernel(%arg0: i32, %arg1: memref<1x16x32xbf16, #tpu.memory_space<vmem>>, %arg2: memref<1x16x32xbf16, #tpu.memory_space<vmem>>, %arg3: memref<32x256xbf16, #tpu.memory_space<vmem>>, %arg4: memref<32x256xbf16, #tpu.memory_space<vmem>>, %arg5: memref<1x256xf32, #tpu.memory_space<vmem>>, %arg6: memref<16x256xbf16, #tpu.memory_space<vmem>>) attributes {dimension_semantics = [#tpu.dimension_semantics<parallel>], iteration_bounds = array<i64: 1>, scalar_prefetch = 0 : i64, scratch_operands = 0 : i64, tpu.core_type = #tpu.core_type<tc>, window_params = [{transform_indices = @transform_0, window_bounds = array<i64: 1, 16, 32>}, {transform_indices = @transform_1, window_bounds = array<i64: 1, 16, 32>}, {transform_indices = @transform_2, window_bounds = array<i64: 32, 256>}, {transform_indices = @transform_3, window_bounds = array<i64: 32, 256>}, {pipeline_mode = #tpu.pipeline_mode<synchronous>, transform_indices = @transform_4, window_bounds = array<i64: 1, 256>}, {transform_indices = @transform_5, window_bounds = array<i64: 16, 256>}]} {
    %c0 = arith.constant 0 : index
    %c0_0 = arith.constant 0 : index
    %c0_1 = arith.constant 0 : index
    %0 = vector.load %arg1[%c0, %c0_0, %c0_1] : memref<1x16x32xbf16, #tpu.memory_space<vmem>>, vector<1x16x32xbf16>
    %1 = vector.shape_cast %0 : vector<1x16x32xbf16> to vector<16x32xbf16>
    %c0_2 = arith.constant 0 : index
    %c0_3 = arith.constant 0 : index
    %2 = vector.load %arg3[%c0_2, %c0_3] : memref<32x256xbf16, #tpu.memory_space<vmem>>, vector<32x256xbf16>
    %cst = arith.constant dense<0.000000e+00> : vector<16x256xf32>
    %3 = tpu.matmul %1, %2, %cst {dimension_numbers = #tpu.dot_dimension_numbers<[1], [0], [0], [1], [0, 0, 1, 1], [], []>} : vector<16x32xbf16>, vector<32x256xbf16>, vector<16x256xf32> -> vector<16x256xf32>
    %c0_4 = arith.constant 0 : index
    %c0_5 = arith.constant 0 : index
    %c0_6 = arith.constant 0 : index
    %4 = vector.load %arg2[%c0_4, %c0_5, %c0_6] : memref<1x16x32xbf16, #tpu.memory_space<vmem>>, vector<1x16x32xbf16>
    %5 = vector.shape_cast %4 : vector<1x16x32xbf16> to vector<16x32xbf16>
    %c0_7 = arith.constant 0 : index
    %c0_8 = arith.constant 0 : index
    %6 = vector.load %arg4[%c0_7, %c0_8] : memref<32x256xbf16, #tpu.memory_space<vmem>>, vector<32x256xbf16>
    %cst_9 = arith.constant dense<0.000000e+00> : vector<16x256xf32>
    %7 = tpu.matmul %5, %6, %cst_9 {dimension_numbers = #tpu.dot_dimension_numbers<[1], [0], [0], [1], [0, 0, 1, 1], [], []>} : vector<16x32xbf16>, vector<32x256xbf16>, vector<16x256xf32> -> vector<16x256xf32>
    %8 = arith.addf %3, %7 : vector<16x256xf32>
    %c0_10 = arith.constant 0 : index
    %c0_11 = arith.constant 0 : index
    %9 = vector.load %arg5[%c0_10, %c0_11] : memref<1x256xf32, #tpu.memory_space<vmem>>, vector<1x256xf32>
    %10 = vector.broadcast %9 : vector<1x256xf32> to vector<16x256xf32>
    %11 = arith.addf %8, %10 : vector<16x256xf32>
    %12 = arith.truncf %11 : vector<16x256xf32> to vector<16x256xbf16>
    %c0_12 = arith.constant 0 : index
    %c0_13 = arith.constant 0 : index
    %13 = vector.load %arg6[%c0_12, %c0_13] : memref<16x256xbf16, #tpu.memory_space<vmem>>, vector<16x256xbf16>
    tpu.vector_store %arg6[%c0_12, %c0_13], %12 {strides = array<i32>} : memref<16x256xbf16, #tpu.memory_space<vmem>>, vector<16x256xbf16>,
    return
  }
  func.func @transform_0(%arg0: i32) -> (i32, i32, i32) {
    %c0_i32 = arith.constant 0 : i32
    %c0_i32_0 = arith.constant 0 : i32
    %c0_i32_1 = arith.constant 0 : i32
    return %c0_i32, %arg0, %c0_i32_0 : i32, i32, i32
  }
  func.func @transform_1(%arg0: i32) -> (i32, i32, i32) {
    %c1_i32 = arith.constant 1 : i32
    %c0_i32 = arith.constant 0 : i32
    %c0_i32_0 = arith.constant 0 : i32
    return %c1_i32, %arg0, %c0_i32 : i32, i32, i32
  }
  func.func @transform_2(%arg0: i32) -> (i32, i32) {
    %c0_i32 = arith.constant 0 : i32
    %c0_i32_0 = arith.constant 0 : i32
    %c0_i32_1 = arith.constant 0 : i32
    return %c0_i32, %c0_i32_0 : i32, i32
  }
  func.func @transform_3(%arg0: i32) -> (i32, i32) {
    %c1_i32 = arith.constant 1 : i32
    %c0_i32 = arith.constant 0 : i32
    %c0_i32_0 = arith.constant 0 : i32
    return %c1_i32, %c0_i32 : i32, i32
  }
  func.func @transform_4(%arg0: i32) -> (i32, i32) {
    %c0_i32 = arith.constant 0 : i32
    %c0_i32_0 = arith.constant 0 : i32
    %c0_i32_1 = arith.constant 0 : i32
    return %c0_i32, %c0_i32_0 : i32, i32
  }
  func.func @transform_5(%arg0: i32) -> (i32, i32) {
    %c0_i32 = arith.constant 0 : i32
    %c0_i32_0 = arith.constant 0 : i32
    return %arg0, %c0_i32 : i32, i32
  }
}

module attributes {stable_mosaic.version = 11 : i64} {
  func.func @lstm_recurrent_kernel(%arg0: i32, %arg1: i32, %arg2: memref<2x1xi32, #tpu.memory_space<vmem>>, %arg3: memref<8x2x128xbf16, #tpu.memory_space<vmem>>, %arg4: memref<32x128xbf16, #tpu.memory_space<vmem>>, %arg5: memref<1x8x2x32xbf16, #tpu.memory_space<vmem>>, %arg6: memref<2x32xf32, #tpu.memory_space<vmem>>, %arg7: memref<2x32xf32, #tpu.memory_space<vmem>>) attributes {dimension_semantics = [#tpu.dimension_semantics<parallel>, #tpu.dimension_semantics<arbitrary>], iteration_bounds = array<i64: 2, 1>, scalar_prefetch = 0 : i64, scratch_operands = 2 : i64, tpu.core_type = #tpu.core_type<tc>, window_params = [{pipeline_mode = #tpu.pipeline_mode<synchronous>, transform_indices = @transform_0, window_bounds = array<i64: 2, 1>}, {transform_indices = @transform_1, window_bounds = array<i64: 8, 2, 128>}, {transform_indices = @transform_2, window_bounds = array<i64: 32, 128>}, {transform_indices = @transform_3, window_bounds = array<i64: 1, 8, 2, 32>}]} {
    %c0_i32 = arith.constant 0 : i32
    %0 = arith.cmpi eq, %arg1, %c0_i32 : i32
    %1 = arith.extui %0 : i1 to i32
    %c0_i32_0 = arith.constant 0 : i32
    %2 = arith.cmpi ne, %1, %c0_i32_0 : i32
    scf.if %2 {
      %cst = arith.constant 0.000000e+00 : f32
      %11 = vector.broadcast %cst : f32 to vector<2x32xf32>
      %c0_7 = arith.constant 0 : index
      %c0_8 = arith.constant 0 : index
      %12 = vector.load %arg6[%c0_7, %c0_8] : memref<2x32xf32, #tpu.memory_space<vmem>>, vector<2x32xf32>
      tpu.vector_store %arg6[%c0_7, %c0_8], %11 {strides = array<i32>} : memref<2x32xf32, #tpu.memory_space<vmem>>, vector<2x32xf32>,
      %cst_9 = arith.constant 0.000000e+00 : f32
      %13 = vector.broadcast %cst_9 : f32 to vector<2x32xf32>
      %c0_10 = arith.constant 0 : index
      %c0_11 = arith.constant 0 : index
      %14 = vector.load %arg7[%c0_10, %c0_11] : memref<2x32xf32, #tpu.memory_space<vmem>>, vector<2x32xf32>
      tpu.vector_store %arg7[%c0_10, %c0_11], %13 {strides = array<i32>} : memref<2x32xf32, #tpu.memory_space<vmem>>, vector<2x32xf32>,
    } else {
    }
    %c0 = arith.constant 0 : index
    %c0_1 = arith.constant 0 : index
    %3 = vector.load %arg4[%c0, %c0_1] : memref<32x128xbf16, #tpu.memory_space<vmem>>, vector<32x128xbf16>
    %c0_2 = arith.constant 0 : index
    %c0_3 = arith.constant 0 : index
    %4 = vector.load %arg2[%c0_2, %c0_3] : memref<2x1xi32, #tpu.memory_space<vmem>>, vector<2x1xi32>
    %c0_i32_4 = arith.constant 0 : i32
    %5 = arith.cmpi eq, %arg0, %c0_i32_4 : i32
    %6 = arith.extui %5 : i1 to i32
    %c0_i32_5 = arith.constant 0 : i32
    %7 = arith.cmpi ne, %6, %c0_i32_5 : i32
    scf.if %7 {
      %c8_i32 = arith.constant 8 : i32
      %11 = arith.muli %arg1, %c8_i32 : i32
      %12 = tpu.iota {dimensions = array<i32: 1>} : vector<2x8xi32>
      %13 = vector.broadcast %11 : i32 to vector<2x8xi32>
      %14 = arith.addi %13, %12 : vector<2x8xi32>
      %15 = vector.broadcast %4 : vector<2x1xi32> to vector<2x8xi32>
      %16 = arith.cmpi sgt, %15, %14 : vector<2x8xi32>
      %c0_7 = arith.constant 0 : index
      %c0_8 = arith.constant 0 : index
      %17 = vector.load %arg6[%c0_7, %c0_8] : memref<2x32xf32, #tpu.memory_space<vmem>>, vector<2x32xf32>
      %c0_9 = arith.constant 0 : index
      %c0_10 = arith.constant 0 : index
      %18 = vector.load %arg7[%c0_9, %c0_10] : memref<2x32xf32, #tpu.memory_space<vmem>>, vector<2x32xf32>
      %c0_11 = arith.constant 0 : index
      %c0_12 = arith.constant 0 : index
      %c0_13 = arith.constant 0 : index
      %19 = vector.load %arg3[%c0_11, %c0_12, %c0_13] : memref<8x2x128xbf16, #tpu.memory_space<vmem>>, vector<1x2x128xbf16>
      %20 = vector.shape_cast %19 : vector<1x2x128xbf16> to vector<2x128xbf16>
      %21 = arith.extf %20 : vector<2x128xbf16> to vector<2x128xf32>
      %22 = arith.truncf %17 : vector<2x32xf32> to vector<2x32xbf16>
      %cst = arith.constant dense<0.000000e+00> : vector<2x128xf32>
      %23 = tpu.matmul %22, %3, %cst {dimension_numbers = #tpu.dot_dimension_numbers<[1], [0], [0], [1], [0, 0, 1, 1], [], []>} : vector<2x32xbf16>, vector<32x128xbf16>, vector<2x128xf32> -> vector<2x128xf32>
      %24 = arith.addf %21, %23 : vector<2x128xf32>
      %25 = vector.extract_strided_slice %24 {offsets = [0, 0], sizes = [2, 32], strides = [1, 1]} : vector<2x128xf32> to vector<2x32xf32>
      %26 = arith.negf %25 : vector<2x32xf32>
      %27 = math.exp %26 : vector<2x32xf32>
      %cst_14 = arith.constant 1.000000e+00 : f32
      %28 = vector.broadcast %cst_14 : f32 to vector<2x32xf32>
      %29 = arith.addf %28, %27 : vector<2x32xf32>
      %30 = arith.divf %28, %29 : vector<2x32xf32>
      %31 = vector.extract_strided_slice %24 {offsets = [0, 32], sizes = [2, 32], strides = [1, 1]} : vector<2x128xf32> to vector<2x32xf32>
      %32 = arith.negf %31 : vector<2x32xf32>
      %33 = math.exp %32 : vector<2x32xf32>
      %cst_15 = arith.constant 1.000000e+00 : f32
      %34 = vector.broadcast %cst_15 : f32 to vector<2x32xf32>
      %35 = arith.addf %34, %33 : vector<2x32xf32>
      %36 = arith.divf %34, %35 : vector<2x32xf32>
      %37 = vector.extract_strided_slice %24 {offsets = [0, 64], sizes = [2, 32], strides = [1, 1]} : vector<2x128xf32> to vector<2x32xf32>
      %38 = math.tanh %37 : vector<2x32xf32>
      %39 = vector.extract_strided_slice %24 {offsets = [0, 96], sizes = [2, 32], strides = [1, 1]} : vector<2x128xf32> to vector<2x32xf32>
      %40 = arith.negf %39 : vector<2x32xf32>
      %41 = math.exp %40 : vector<2x32xf32>
      %cst_16 = arith.constant 1.000000e+00 : f32
      %42 = vector.broadcast %cst_16 : f32 to vector<2x32xf32>
      %43 = arith.addf %42, %41 : vector<2x32xf32>
      %44 = arith.divf %42, %43 : vector<2x32xf32>
      %45 = arith.mulf %36, %18 : vector<2x32xf32>
      %46 = arith.mulf %30, %38 : vector<2x32xf32>
      %47 = arith.addf %45, %46 : vector<2x32xf32>
      %48 = math.tanh %47 : vector<2x32xf32>
      %49 = arith.mulf %44, %48 : vector<2x32xf32>
      %50 = vector.extract_strided_slice %16 {offsets = [0, 0], sizes = [2, 1], strides = [1, 1]} : vector<2x8xi1> to vector<2x1xi1>
      %51 = vector.shape_cast %50 : vector<2x1xi1> to vector<2x1xi1>
      %52 = vector.broadcast %51 : vector<2x1xi1> to vector<2x32xi1>
      %53 = arith.select %52, %49, %17 : vector<2x32xi1>, vector<2x32xf32>
      %54 = vector.shape_cast %50 : vector<2x1xi1> to vector<2x1xi1>
      %55 = vector.broadcast %54 : vector<2x1xi1> to vector<2x32xi1>
      %56 = arith.select %55, %47, %18 : vector<2x32xi1>, vector<2x32xf32>
      %cst_17 = arith.constant 0.000000e+00 : f32
      %57 = vector.shape_cast %50 : vector<2x1xi1> to vector<2x1xi1>
      %58 = vector.broadcast %57 : vector<2x1xi1> to vector<2x32xi1>
      %59 = vector.broadcast %cst_17 : f32 to vector<2x32xf32>
      %60 = arith.select %58, %49, %59 : vector<2x32xi1>, vector<2x32xf32>
      %61 = arith.truncf %60 : vector<2x32xf32> to vector<2x32xbf16>
      %c0_18 = arith.constant 0 : index
      %c0_19 = arith.constant 0 : index
      %c0_20 = arith.constant 0 : index
      %c0_21 = arith.constant 0 : index
      %62 = vector.load %arg5[%c0_18, %c0_19, %c0_20, %c0_21] : memref<1x8x2x32xbf16, #tpu.memory_space<vmem>>, vector<1x1x2x32xbf16>
      %63 = vector.shape_cast %62 : vector<1x1x2x32xbf16> to vector<2x32xbf16>
      %64 = vector.shape_cast %61 : vector<2x32xbf16> to vector<1x1x2x32xbf16>
      tpu.vector_store %arg5[%c0_18, %c0_19, %c0_20, %c0_21], %64 {strides = array<i32>} : memref<1x8x2x32xbf16, #tpu.memory_space<vmem>>, vector<1x1x2x32xbf16>,
      %c1 = arith.constant 1 : index
      %c0_22 = arith.constant 0 : index
      %c0_23 = arith.constant 0 : index
      %65 = vector.load %arg3[%c1, %c0_22, %c0_23] : memref<8x2x128xbf16, #tpu.memory_space<vmem>>, vector<1x2x128xbf16>
      %66 = vector.shape_cast %65 : vector<1x2x128xbf16> to vector<2x128xbf16>
      %67 = arith.extf %66 : vector<2x128xbf16> to vector<2x128xf32>
      %68 = arith.truncf %53 : vector<2x32xf32> to vector<2x32xbf16>
      %cst_24 = arith.constant dense<0.000000e+00> : vector<2x128xf32>
      %69 = tpu.matmul %68, %3, %cst_24 {dimension_numbers = #tpu.dot_dimension_numbers<[1], [0], [0], [1], [0, 0, 1, 1], [], []>} : vector<2x32xbf16>, vector<32x128xbf16>, vector<2x128xf32> -> vector<2x128xf32>
      %70 = arith.addf %67, %69 : vector<2x128xf32>
      %71 = vector.extract_strided_slice %70 {offsets = [0, 0], sizes = [2, 32], strides = [1, 1]} : vector<2x128xf32> to vector<2x32xf32>
      %72 = arith.negf %71 : vector<2x32xf32>
      %73 = math.exp %72 : vector<2x32xf32>
      %cst_25 = arith.constant 1.000000e+00 : f32
      %74 = vector.broadcast %cst_25 : f32 to vector<2x32xf32>
      %75 = arith.addf %74, %73 : vector<2x32xf32>
      %76 = arith.divf %74, %75 : vector<2x32xf32>
      %77 = vector.extract_strided_slice %70 {offsets = [0, 32], sizes = [2, 32], strides = [1, 1]} : vector<2x128xf32> to vector<2x32xf32>
      %78 = arith.negf %77 : vector<2x32xf32>
      %79 = math.exp %78 : vector<2x32xf32>
      %cst_26 = arith.constant 1.000000e+00 : f32
      %80 = vector.broadcast %cst_26 : f32 to vector<2x32xf32>
      %81 = arith.addf %80, %79 : vector<2x32xf32>
      %82 = arith.divf %80, %81 : vector<2x32xf32>
      %83 = vector.extract_strided_slice %70 {offsets = [0, 64], sizes = [2, 32], strides = [1, 1]} : vector<2x128xf32> to vector<2x32xf32>
      %84 = math.tanh %83 : vector<2x32xf32>
      %85 = vector.extract_strided_slice %70 {offsets = [0, 96], sizes = [2, 32], strides = [1, 1]} : vector<2x128xf32> to vector<2x32xf32>
      %86 = arith.negf %85 : vector<2x32xf32>
      %87 = math.exp %86 : vector<2x32xf32>
      %cst_27 = arith.constant 1.000000e+00 : f32
      %88 = vector.broadcast %cst_27 : f32 to vector<2x32xf32>
      %89 = arith.addf %88, %87 : vector<2x32xf32>
      %90 = arith.divf %88, %89 : vector<2x32xf32>
      %91 = arith.mulf %82, %56 : vector<2x32xf32>
      %92 = arith.mulf %76, %84 : vector<2x32xf32>
      %93 = arith.addf %91, %92 : vector<2x32xf32>
      %94 = math.tanh %93 : vector<2x32xf32>
      %95 = arith.mulf %90, %94 : vector<2x32xf32>
      %96 = vector.extract_strided_slice %16 {offsets = [0, 1], sizes = [2, 1], strides = [1, 1]} : vector<2x8xi1> to vector<2x1xi1>
      %97 = vector.shape_cast %96 : vector<2x1xi1> to vector<2x1xi1>
      %98 = vector.broadcast %97 : vector<2x1xi1> to vector<2x32xi1>
      %99 = arith.select %98, %95, %53 : vector<2x32xi1>, vector<2x32xf32>
      %100 = vector.shape_cast %96 : vector<2x1xi1> to vector<2x1xi1>
      %101 = vector.broadcast %100 : vector<2x1xi1> to vector<2x32xi1>
      %102 = arith.select %101, %93, %56 : vector<2x32xi1>, vector<2x32xf32>
      %cst_28 = arith.constant 0.000000e+00 : f32
      %103 = vector.shape_cast %96 : vector<2x1xi1> to vector<2x1xi1>
      %104 = vector.broadcast %103 : vector<2x1xi1> to vector<2x32xi1>
      %105 = vector.broadcast %cst_28 : f32 to vector<2x32xf32>
      %106 = arith.select %104, %95, %105 : vector<2x32xi1>, vector<2x32xf32>
      %107 = arith.truncf %106 : vector<2x32xf32> to vector<2x32xbf16>
      %c0_29 = arith.constant 0 : index
      %c1_30 = arith.constant 1 : index
      %c0_31 = arith.constant 0 : index
      %c0_32 = arith.constant 0 : index
      %108 = vector.load %arg5[%c0_29, %c1_30, %c0_31, %c0_32] : memref<1x8x2x32xbf16, #tpu.memory_space<vmem>>, vector<1x1x2x32xbf16>
      %109 = vector.shape_cast %108 : vector<1x1x2x32xbf16> to vector<2x32xbf16>
      %110 = vector.shape_cast %107 : vector<2x32xbf16> to vector<1x1x2x32xbf16>
      tpu.vector_store %arg5[%c0_29, %c1_30, %c0_31, %c0_32], %110 {strides = array<i32>} : memref<1x8x2x32xbf16, #tpu.memory_space<vmem>>, vector<1x1x2x32xbf16>,
      %c2 = arith.constant 2 : index
      %c0_33 = arith.constant 0 : index
      %c0_34 = arith.constant 0 : index
      %111 = vector.load %arg3[%c2, %c0_33, %c0_34] : memref<8x2x128xbf16, #tpu.memory_space<vmem>>, vector<1x2x128xbf16>
      %112 = vector.shape_cast %111 : vector<1x2x128xbf16> to vector<2x128xbf16>
      %113 = arith.extf %112 : vector<2x128xbf16> to vector<2x128xf32>
      %114 = arith.truncf %99 : vector<2x32xf32> to vector<2x32xbf16>
      %cst_35 = arith.constant dense<0.000000e+00> : vector<2x128xf32>
      %115 = tpu.matmul %114, %3, %cst_35 {dimension_numbers = #tpu.dot_dimension_numbers<[1], [0], [0], [1], [0, 0, 1, 1], [], []>} : vector<2x32xbf16>, vector<32x128xbf16>, vector<2x128xf32> -> vector<2x128xf32>
      %116 = arith.addf %113, %115 : vector<2x128xf32>
      %117 = vector.extract_strided_slice %116 {offsets = [0, 0], sizes = [2, 32], strides = [1, 1]} : vector<2x128xf32> to vector<2x32xf32>
      %118 = arith.negf %117 : vector<2x32xf32>
      %119 = math.exp %118 : vector<2x32xf32>
      %cst_36 = arith.constant 1.000000e+00 : f32
      %120 = vector.broadcast %cst_36 : f32 to vector<2x32xf32>
      %121 = arith.addf %120, %119 : vector<2x32xf32>
      %122 = arith.divf %120, %121 : vector<2x32xf32>
      %123 = vector.extract_strided_slice %116 {offsets = [0, 32], sizes = [2, 32], strides = [1, 1]} : vector<2x128xf32> to vector<2x32xf32>
      %124 = arith.negf %123 : vector<2x32xf32>
      %125 = math.exp %124 : vector<2x32xf32>
      %cst_37 = arith.constant 1.000000e+00 : f32
      %126 = vector.broadcast %cst_37 : f32 to vector<2x32xf32>
      %127 = arith.addf %126, %125 : vector<2x32xf32>
      %128 = arith.divf %126, %127 : vector<2x32xf32>
      %129 = vector.extract_strided_slice %116 {offsets = [0, 64], sizes = [2, 32], strides = [1, 1]} : vector<2x128xf32> to vector<2x32xf32>
      %130 = math.tanh %129 : vector<2x32xf32>
      %131 = vector.extract_strided_slice %116 {offsets = [0, 96], sizes = [2, 32], strides = [1, 1]} : vector<2x128xf32> to vector<2x32xf32>
      %132 = arith.negf %131 : vector<2x32xf32>
      %133 = math.exp %132 : vector<2x32xf32>
      %cst_38 = arith.constant 1.000000e+00 : f32
      %134 = vector.broadcast %cst_38 : f32 to vector<2x32xf32>
      %135 = arith.addf %134, %133 : vector<2x32xf32>
      %136 = arith.divf %134, %135 : vector<2x32xf32>
      %137 = arith.mulf %128, %102 : vector<2x32xf32>
      %138 = arith.mulf %122, %130 : vector<2x32xf32>
      %139 = arith.addf %137, %138 : vector<2x32xf32>
      %140 = math.tanh %139 : vector<2x32xf32>
      %141 = arith.mulf %136, %140 : vector<2x32xf32>
      %142 = vector.extract_strided_slice %16 {offsets = [0, 2], sizes = [2, 1], strides = [1, 1]} : vector<2x8xi1> to vector<2x1xi1>
      %143 = vector.shape_cast %142 : vector<2x1xi1> to vector<2x1xi1>
      %144 = vector.broadcast %143 : vector<2x1xi1> to vector<2x32xi1>
      %145 = arith.select %144, %141, %99 : vector<2x32xi1>, vector<2x32xf32>
      %146 = vector.shape_cast %142 : vector<2x1xi1> to vector<2x1xi1>
      %147 = vector.broadcast %146 : vector<2x1xi1> to vector<2x32xi1>
      %148 = arith.select %147, %139, %102 : vector<2x32xi1>, vector<2x32xf32>
      %cst_39 = arith.constant 0.000000e+00 : f32
      %149 = vector.shape_cast %142 : vector<2x1xi1> to vector<2x1xi1>
      %150 = vector.broadcast %149 : vector<2x1xi1> to vector<2x32xi1>
      %151 = vector.broadcast %cst_39 : f32 to vector<2x32xf32>
      %152 = arith.select %150, %141, %151 : vector<2x32xi1>, vector<2x32xf32>
      %153 = arith.truncf %152 : vector<2x32xf32> to vector<2x32xbf16>
      %c0_40 = arith.constant 0 : index
      %c2_41 = arith.constant 2 : index
      %c0_42 = arith.constant 0 : index
      %c0_43 = arith.constant 0 : index
      %154 = vector.load %arg5[%c0_40, %c2_41, %c0_42, %c0_43] : memref<1x8x2x32xbf16, #tpu.memory_space<vmem>>, vector<1x1x2x32xbf16>
      %155 = vector.shape_cast %154 : vector<1x1x2x32xbf16> to vector<2x32xbf16>
      %156 = vector.shape_cast %153 : vector<2x32xbf16> to vector<1x1x2x32xbf16>
      tpu.vector_store %arg5[%c0_40, %c2_41, %c0_42, %c0_43], %156 {strides = array<i32>} : memref<1x8x2x32xbf16, #tpu.memory_space<vmem>>, vector<1x1x2x32xbf16>,
      %c3 = arith.constant 3 : index
      %c0_44 = arith.constant 0 : index
      %c0_45 = arith.constant 0 : index
      %157 = vector.load %arg3[%c3, %c0_44, %c0_45] : memref<8x2x128xbf16, #tpu.memory_space<vmem>>, vector<1x2x128xbf16>
      %158 = vector.shape_cast %157 : vector<1x2x128xbf16> to vector<2x128xbf16>
      %159 = arith.extf %158 : vector<2x128xbf16> to vector<2x128xf32>
      %160 = arith.truncf %145 : vector<2x32xf32> to vector<2x32xbf16>
      %cst_46 = arith.constant dense<0.000000e+00> : vector<2x128xf32>
      %161 = tpu.matmul %160, %3, %cst_46 {dimension_numbers = #tpu.dot_dimension_numbers<[1], [0], [0], [1], [0, 0, 1, 1], [], []>} : vector<2x32xbf16>, vector<32x128xbf16>, vector<2x128xf32> -> vector<2x128xf32>
      %162 = arith.addf %159, %161 : vector<2x128xf32>
      %163 = vector.extract_strided_slice %162 {offsets = [0, 0], sizes = [2, 32], strides = [1, 1]} : vector<2x128xf32> to vector<2x32xf32>
      %164 = arith.negf %163 : vector<2x32xf32>
      %165 = math.exp %164 : vector<2x32xf32>
      %cst_47 = arith.constant 1.000000e+00 : f32
      %166 = vector.broadcast %cst_47 : f32 to vector<2x32xf32>
      %167 = arith.addf %166, %165 : vector<2x32xf32>
      %168 = arith.divf %166, %167 : vector<2x32xf32>
      %169 = vector.extract_strided_slice %162 {offsets = [0, 32], sizes = [2, 32], strides = [1, 1]} : vector<2x128xf32> to vector<2x32xf32>
      %170 = arith.negf %169 : vector<2x32xf32>
      %171 = math.exp %170 : vector<2x32xf32>
      %cst_48 = arith.constant 1.000000e+00 : f32
      %172 = vector.broadcast %cst_48 : f32 to vector<2x32xf32>
      %173 = arith.addf %172, %171 : vector<2x32xf32>
      %174 = arith.divf %172, %173 : vector<2x32xf32>
      %175 = vector.extract_strided_slice %162 {offsets = [0, 64], sizes = [2, 32], strides = [1, 1]} : vector<2x128xf32> to vector<2x32xf32>
      %176 = math.tanh %175 : vector<2x32xf32>
      %177 = vector.extract_strided_slice %162 {offsets = [0, 96], sizes = [2, 32], strides = [1, 1]} : vector<2x128xf32> to vector<2x32xf32>
      %178 = arith.negf %177 : vector<2x32xf32>
      %179 = math.exp %178 : vector<2x32xf32>
      %cst_49 = arith.constant 1.000000e+00 : f32
      %180 = vector.broadcast %cst_49 : f32 to vector<2x32xf32>
      %181 = arith.addf %180, %179 : vector<2x32xf32>
      %182 = arith.divf %180, %181 : vector<2x32xf32>
      %183 = arith.mulf %174, %148 : vector<2x32xf32>
      %184 = arith.mulf %168, %176 : vector<2x32xf32>
      %185 = arith.addf %183, %184 : vector<2x32xf32>
      %186 = math.tanh %185 : vector<2x32xf32>
      %187 = arith.mulf %182, %186 : vector<2x32xf32>
      %188 = vector.extract_strided_slice %16 {offsets = [0, 3], sizes = [2, 1], strides = [1, 1]} : vector<2x8xi1> to vector<2x1xi1>
      %189 = vector.shape_cast %188 : vector<2x1xi1> to vector<2x1xi1>
      %190 = vector.broadcast %189 : vector<2x1xi1> to vector<2x32xi1>
      %191 = arith.select %190, %187, %145 : vector<2x32xi1>, vector<2x32xf32>
      %192 = vector.shape_cast %188 : vector<2x1xi1> to vector<2x1xi1>
      %193 = vector.broadcast %192 : vector<2x1xi1> to vector<2x32xi1>
      %194 = arith.select %193, %185, %148 : vector<2x32xi1>, vector<2x32xf32>
      %cst_50 = arith.constant 0.000000e+00 : f32
      %195 = vector.shape_cast %188 : vector<2x1xi1> to vector<2x1xi1>
      %196 = vector.broadcast %195 : vector<2x1xi1> to vector<2x32xi1>
      %197 = vector.broadcast %cst_50 : f32 to vector<2x32xf32>
      %198 = arith.select %196, %187, %197 : vector<2x32xi1>, vector<2x32xf32>
      %199 = arith.truncf %198 : vector<2x32xf32> to vector<2x32xbf16>
      %c0_51 = arith.constant 0 : index
      %c3_52 = arith.constant 3 : index
      %c0_53 = arith.constant 0 : index
      %c0_54 = arith.constant 0 : index
      %200 = vector.load %arg5[%c0_51, %c3_52, %c0_53, %c0_54] : memref<1x8x2x32xbf16, #tpu.memory_space<vmem>>, vector<1x1x2x32xbf16>
      %201 = vector.shape_cast %200 : vector<1x1x2x32xbf16> to vector<2x32xbf16>
      %202 = vector.shape_cast %199 : vector<2x32xbf16> to vector<1x1x2x32xbf16>
      tpu.vector_store %arg5[%c0_51, %c3_52, %c0_53, %c0_54], %202 {strides = array<i32>} : memref<1x8x2x32xbf16, #tpu.memory_space<vmem>>, vector<1x1x2x32xbf16>,
      %c4 = arith.constant 4 : index
      %c0_55 = arith.constant 0 : index
      %c0_56 = arith.constant 0 : index
      %203 = vector.load %arg3[%c4, %c0_55, %c0_56] : memref<8x2x128xbf16, #tpu.memory_space<vmem>>, vector<1x2x128xbf16>
      %204 = vector.shape_cast %203 : vector<1x2x128xbf16> to vector<2x128xbf16>
      %205 = arith.extf %204 : vector<2x128xbf16> to vector<2x128xf32>
      %206 = arith.truncf %191 : vector<2x32xf32> to vector<2x32xbf16>
      %cst_57 = arith.constant dense<0.000000e+00> : vector<2x128xf32>
      %207 = tpu.matmul %206, %3, %cst_57 {dimension_numbers = #tpu.dot_dimension_numbers<[1], [0], [0], [1], [0, 0, 1, 1], [], []>} : vector<2x32xbf16>, vector<32x128xbf16>, vector<2x128xf32> -> vector<2x128xf32>
      %208 = arith.addf %205, %207 : vector<2x128xf32>
      %209 = vector.extract_strided_slice %208 {offsets = [0, 0], sizes = [2, 32], strides = [1, 1]} : vector<2x128xf32> to vector<2x32xf32>
      %210 = arith.negf %209 : vector<2x32xf32>
      %211 = math.exp %210 : vector<2x32xf32>
      %cst_58 = arith.constant 1.000000e+00 : f32
      %212 = vector.broadcast %cst_58 : f32 to vector<2x32xf32>
      %213 = arith.addf %212, %211 : vector<2x32xf32>
      %214 = arith.divf %212, %213 : vector<2x32xf32>
      %215 = vector.extract_strided_slice %208 {offsets = [0, 32], sizes = [2, 32], strides = [1, 1]} : vector<2x128xf32> to vector<2x32xf32>
      %216 = arith.negf %215 : vector<2x32xf32>
      %217 = math.exp %216 : vector<2x32xf32>
      %cst_59 = arith.constant 1.000000e+00 : f32
      %218 = vector.broadcast %cst_59 : f32 to vector<2x32xf32>
      %219 = arith.addf %218, %217 : vector<2x32xf32>
      %220 = arith.divf %218, %219 : vector<2x32xf32>
      %221 = vector.extract_strided_slice %208 {offsets = [0, 64], sizes = [2, 32], strides = [1, 1]} : vector<2x128xf32> to vector<2x32xf32>
      %222 = math.tanh %221 : vector<2x32xf32>
      %223 = vector.extract_strided_slice %208 {offsets = [0, 96], sizes = [2, 32], strides = [1, 1]} : vector<2x128xf32> to vector<2x32xf32>
      %224 = arith.negf %223 : vector<2x32xf32>
      %225 = math.exp %224 : vector<2x32xf32>
      %cst_60 = arith.constant 1.000000e+00 : f32
      %226 = vector.broadcast %cst_60 : f32 to vector<2x32xf32>
      %227 = arith.addf %226, %225 : vector<2x32xf32>
      %228 = arith.divf %226, %227 : vector<2x32xf32>
      %229 = arith.mulf %220, %194 : vector<2x32xf32>
      %230 = arith.mulf %214, %222 : vector<2x32xf32>
      %231 = arith.addf %229, %230 : vector<2x32xf32>
      %232 = math.tanh %231 : vector<2x32xf32>
      %233 = arith.mulf %228, %232 : vector<2x32xf32>
      %234 = vector.extract_strided_slice %16 {offsets = [0, 4], sizes = [2, 1], strides = [1, 1]} : vector<2x8xi1> to vector<2x1xi1>
      %235 = vector.shape_cast %234 : vector<2x1xi1> to vector<2x1xi1>
      %236 = vector.broadcast %235 : vector<2x1xi1> to vector<2x32xi1>
      %237 = arith.select %236, %233, %191 : vector<2x32xi1>, vector<2x32xf32>
      %238 = vector.shape_cast %234 : vector<2x1xi1> to vector<2x1xi1>
      %239 = vector.broadcast %238 : vector<2x1xi1> to vector<2x32xi1>
      %240 = arith.select %239, %231, %194 : vector<2x32xi1>, vector<2x32xf32>
      %cst_61 = arith.constant 0.000000e+00 : f32
      %241 = vector.shape_cast %234 : vector<2x1xi1> to vector<2x1xi1>
      %242 = vector.broadcast %241 : vector<2x1xi1> to vector<2x32xi1>
      %243 = vector.broadcast %cst_61 : f32 to vector<2x32xf32>
      %244 = arith.select %242, %233, %243 : vector<2x32xi1>, vector<2x32xf32>
      %245 = arith.truncf %244 : vector<2x32xf32> to vector<2x32xbf16>
      %c0_62 = arith.constant 0 : index
      %c4_63 = arith.constant 4 : index
      %c0_64 = arith.constant 0 : index
      %c0_65 = arith.constant 0 : index
      %246 = vector.load %arg5[%c0_62, %c4_63, %c0_64, %c0_65] : memref<1x8x2x32xbf16, #tpu.memory_space<vmem>>, vector<1x1x2x32xbf16>
      %247 = vector.shape_cast %246 : vector<1x1x2x32xbf16> to vector<2x32xbf16>
      %248 = vector.shape_cast %245 : vector<2x32xbf16> to vector<1x1x2x32xbf16>
      tpu.vector_store %arg5[%c0_62, %c4_63, %c0_64, %c0_65], %248 {strides = array<i32>} : memref<1x8x2x32xbf16, #tpu.memory_space<vmem>>, vector<1x1x2x32xbf16>,
      %c5 = arith.constant 5 : index
      %c0_66 = arith.constant 0 : index
      %c0_67 = arith.constant 0 : index
      %249 = vector.load %arg3[%c5, %c0_66, %c0_67] : memref<8x2x128xbf16, #tpu.memory_space<vmem>>, vector<1x2x128xbf16>
      %250 = vector.shape_cast %249 : vector<1x2x128xbf16> to vector<2x128xbf16>
      %251 = arith.extf %250 : vector<2x128xbf16> to vector<2x128xf32>
      %252 = arith.truncf %237 : vector<2x32xf32> to vector<2x32xbf16>
      %cst_68 = arith.constant dense<0.000000e+00> : vector<2x128xf32>
      %253 = tpu.matmul %252, %3, %cst_68 {dimension_numbers = #tpu.dot_dimension_numbers<[1], [0], [0], [1], [0, 0, 1, 1], [], []>} : vector<2x32xbf16>, vector<32x128xbf16>, vector<2x128xf32> -> vector<2x128xf32>
      %254 = arith.addf %251, %253 : vector<2x128xf32>
      %255 = vector.extract_strided_slice %254 {offsets = [0, 0], sizes = [2, 32], strides = [1, 1]} : vector<2x128xf32> to vector<2x32xf32>
      %256 = arith.negf %255 : vector<2x32xf32>
      %257 = math.exp %256 : vector<2x32xf32>
      %cst_69 = arith.constant 1.000000e+00 : f32
      %258 = vector.broadcast %cst_69 : f32 to vector<2x32xf32>
      %259 = arith.addf %258, %257 : vector<2x32xf32>
      %260 = arith.divf %258, %259 : vector<2x32xf32>
      %261 = vector.extract_strided_slice %254 {offsets = [0, 32], sizes = [2, 32], strides = [1, 1]} : vector<2x128xf32> to vector<2x32xf32>
      %262 = arith.negf %261 : vector<2x32xf32>
      %263 = math.exp %262 : vector<2x32xf32>
      %cst_70 = arith.constant 1.000000e+00 : f32
      %264 = vector.broadcast %cst_70 : f32 to vector<2x32xf32>
      %265 = arith.addf %264, %263 : vector<2x32xf32>
      %266 = arith.divf %264, %265 : vector<2x32xf32>
      %267 = vector.extract_strided_slice %254 {offsets = [0, 64], sizes = [2, 32], strides = [1, 1]} : vector<2x128xf32> to vector<2x32xf32>
      %268 = math.tanh %267 : vector<2x32xf32>
      %269 = vector.extract_strided_slice %254 {offsets = [0, 96], sizes = [2, 32], strides = [1, 1]} : vector<2x128xf32> to vector<2x32xf32>
      %270 = arith.negf %269 : vector<2x32xf32>
      %271 = math.exp %270 : vector<2x32xf32>
      %cst_71 = arith.constant 1.000000e+00 : f32
      %272 = vector.broadcast %cst_71 : f32 to vector<2x32xf32>
      %273 = arith.addf %272, %271 : vector<2x32xf32>
      %274 = arith.divf %272, %273 : vector<2x32xf32>
      %275 = arith.mulf %266, %240 : vector<2x32xf32>
      %276 = arith.mulf %260, %268 : vector<2x32xf32>
      %277 = arith.addf %275, %276 : vector<2x32xf32>
      %278 = math.tanh %277 : vector<2x32xf32>
      %279 = arith.mulf %274, %278 : vector<2x32xf32>
      %280 = vector.extract_strided_slice %16 {offsets = [0, 5], sizes = [2, 1], strides = [1, 1]} : vector<2x8xi1> to vector<2x1xi1>
      %281 = vector.shape_cast %280 : vector<2x1xi1> to vector<2x1xi1>
      %282 = vector.broadcast %281 : vector<2x1xi1> to vector<2x32xi1>
      %283 = arith.select %282, %279, %237 : vector<2x32xi1>, vector<2x32xf32>
      %284 = vector.shape_cast %280 : vector<2x1xi1> to vector<2x1xi1>
      %285 = vector.broadcast %284 : vector<2x1xi1> to vector<2x32xi1>
      %286 = arith.select %285, %277, %240 : vector<2x32xi1>, vector<2x32xf32>
      %cst_72 = arith.constant 0.000000e+00 : f32
      %287 = vector.shape_cast %280 : vector<2x1xi1> to vector<2x1xi1>
      %288 = vector.broadcast %287 : vector<2x1xi1> to vector<2x32xi1>
      %289 = vector.broadcast %cst_72 : f32 to vector<2x32xf32>
      %290 = arith.select %288, %279, %289 : vector<2x32xi1>, vector<2x32xf32>
      %291 = arith.truncf %290 : vector<2x32xf32> to vector<2x32xbf16>
      %c0_73 = arith.constant 0 : index
      %c5_74 = arith.constant 5 : index
      %c0_75 = arith.constant 0 : index
      %c0_76 = arith.constant 0 : index
      %292 = vector.load %arg5[%c0_73, %c5_74, %c0_75, %c0_76] : memref<1x8x2x32xbf16, #tpu.memory_space<vmem>>, vector<1x1x2x32xbf16>
      %293 = vector.shape_cast %292 : vector<1x1x2x32xbf16> to vector<2x32xbf16>
      %294 = vector.shape_cast %291 : vector<2x32xbf16> to vector<1x1x2x32xbf16>
      tpu.vector_store %arg5[%c0_73, %c5_74, %c0_75, %c0_76], %294 {strides = array<i32>} : memref<1x8x2x32xbf16, #tpu.memory_space<vmem>>, vector<1x1x2x32xbf16>,
      %c6 = arith.constant 6 : index
      %c0_77 = arith.constant 0 : index
      %c0_78 = arith.constant 0 : index
      %295 = vector.load %arg3[%c6, %c0_77, %c0_78] : memref<8x2x128xbf16, #tpu.memory_space<vmem>>, vector<1x2x128xbf16>
      %296 = vector.shape_cast %295 : vector<1x2x128xbf16> to vector<2x128xbf16>
      %297 = arith.extf %296 : vector<2x128xbf16> to vector<2x128xf32>
      %298 = arith.truncf %283 : vector<2x32xf32> to vector<2x32xbf16>
      %cst_79 = arith.constant dense<0.000000e+00> : vector<2x128xf32>
      %299 = tpu.matmul %298, %3, %cst_79 {dimension_numbers = #tpu.dot_dimension_numbers<[1], [0], [0], [1], [0, 0, 1, 1], [], []>} : vector<2x32xbf16>, vector<32x128xbf16>, vector<2x128xf32> -> vector<2x128xf32>
      %300 = arith.addf %297, %299 : vector<2x128xf32>
      %301 = vector.extract_strided_slice %300 {offsets = [0, 0], sizes = [2, 32], strides = [1, 1]} : vector<2x128xf32> to vector<2x32xf32>
      %302 = arith.negf %301 : vector<2x32xf32>
      %303 = math.exp %302 : vector<2x32xf32>
      %cst_80 = arith.constant 1.000000e+00 : f32
      %304 = vector.broadcast %cst_80 : f32 to vector<2x32xf32>
      %305 = arith.addf %304, %303 : vector<2x32xf32>
      %306 = arith.divf %304, %305 : vector<2x32xf32>
      %307 = vector.extract_strided_slice %300 {offsets = [0, 32], sizes = [2, 32], strides = [1, 1]} : vector<2x128xf32> to vector<2x32xf32>
      %308 = arith.negf %307 : vector<2x32xf32>
      %309 = math.exp %308 : vector<2x32xf32>
      %cst_81 = arith.constant 1.000000e+00 : f32
      %310 = vector.broadcast %cst_81 : f32 to vector<2x32xf32>
      %311 = arith.addf %310, %309 : vector<2x32xf32>
      %312 = arith.divf %310, %311 : vector<2x32xf32>
      %313 = vector.extract_strided_slice %300 {offsets = [0, 64], sizes = [2, 32], strides = [1, 1]} : vector<2x128xf32> to vector<2x32xf32>
      %314 = math.tanh %313 : vector<2x32xf32>
      %315 = vector.extract_strided_slice %300 {offsets = [0, 96], sizes = [2, 32], strides = [1, 1]} : vector<2x128xf32> to vector<2x32xf32>
      %316 = arith.negf %315 : vector<2x32xf32>
      %317 = math.exp %316 : vector<2x32xf32>
      %cst_82 = arith.constant 1.000000e+00 : f32
      %318 = vector.broadcast %cst_82 : f32 to vector<2x32xf32>
      %319 = arith.addf %318, %317 : vector<2x32xf32>
      %320 = arith.divf %318, %319 : vector<2x32xf32>
      %321 = arith.mulf %312, %286 : vector<2x32xf32>
      %322 = arith.mulf %306, %314 : vector<2x32xf32>
      %323 = arith.addf %321, %322 : vector<2x32xf32>
      %324 = math.tanh %323 : vector<2x32xf32>
      %325 = arith.mulf %320, %324 : vector<2x32xf32>
      %326 = vector.extract_strided_slice %16 {offsets = [0, 6], sizes = [2, 1], strides = [1, 1]} : vector<2x8xi1> to vector<2x1xi1>
      %327 = vector.shape_cast %326 : vector<2x1xi1> to vector<2x1xi1>
      %328 = vector.broadcast %327 : vector<2x1xi1> to vector<2x32xi1>
      %329 = arith.select %328, %325, %283 : vector<2x32xi1>, vector<2x32xf32>
      %330 = vector.shape_cast %326 : vector<2x1xi1> to vector<2x1xi1>
      %331 = vector.broadcast %330 : vector<2x1xi1> to vector<2x32xi1>
      %332 = arith.select %331, %323, %286 : vector<2x32xi1>, vector<2x32xf32>
      %cst_83 = arith.constant 0.000000e+00 : f32
      %333 = vector.shape_cast %326 : vector<2x1xi1> to vector<2x1xi1>
      %334 = vector.broadcast %333 : vector<2x1xi1> to vector<2x32xi1>
      %335 = vector.broadcast %cst_83 : f32 to vector<2x32xf32>
      %336 = arith.select %334, %325, %335 : vector<2x32xi1>, vector<2x32xf32>
      %337 = arith.truncf %336 : vector<2x32xf32> to vector<2x32xbf16>
      %c0_84 = arith.constant 0 : index
      %c6_85 = arith.constant 6 : index
      %c0_86 = arith.constant 0 : index
      %c0_87 = arith.constant 0 : index
      %338 = vector.load %arg5[%c0_84, %c6_85, %c0_86, %c0_87] : memref<1x8x2x32xbf16, #tpu.memory_space<vmem>>, vector<1x1x2x32xbf16>
      %339 = vector.shape_cast %338 : vector<1x1x2x32xbf16> to vector<2x32xbf16>
      %340 = vector.shape_cast %337 : vector<2x32xbf16> to vector<1x1x2x32xbf16>
      tpu.vector_store %arg5[%c0_84, %c6_85, %c0_86, %c0_87], %340 {strides = array<i32>} : memref<1x8x2x32xbf16, #tpu.memory_space<vmem>>, vector<1x1x2x32xbf16>,
      %c7 = arith.constant 7 : index
      %c0_88 = arith.constant 0 : index
      %c0_89 = arith.constant 0 : index
      %341 = vector.load %arg3[%c7, %c0_88, %c0_89] : memref<8x2x128xbf16, #tpu.memory_space<vmem>>, vector<1x2x128xbf16>
      %342 = vector.shape_cast %341 : vector<1x2x128xbf16> to vector<2x128xbf16>
      %343 = arith.extf %342 : vector<2x128xbf16> to vector<2x128xf32>
      %344 = arith.truncf %329 : vector<2x32xf32> to vector<2x32xbf16>
      %cst_90 = arith.constant dense<0.000000e+00> : vector<2x128xf32>
      %345 = tpu.matmul %344, %3, %cst_90 {dimension_numbers = #tpu.dot_dimension_numbers<[1], [0], [0], [1], [0, 0, 1, 1], [], []>} : vector<2x32xbf16>, vector<32x128xbf16>, vector<2x128xf32> -> vector<2x128xf32>
      %346 = arith.addf %343, %345 : vector<2x128xf32>
      %347 = vector.extract_strided_slice %346 {offsets = [0, 0], sizes = [2, 32], strides = [1, 1]} : vector<2x128xf32> to vector<2x32xf32>
      %348 = arith.negf %347 : vector<2x32xf32>
      %349 = math.exp %348 : vector<2x32xf32>
      %cst_91 = arith.constant 1.000000e+00 : f32
      %350 = vector.broadcast %cst_91 : f32 to vector<2x32xf32>
      %351 = arith.addf %350, %349 : vector<2x32xf32>
      %352 = arith.divf %350, %351 : vector<2x32xf32>
      %353 = vector.extract_strided_slice %346 {offsets = [0, 32], sizes = [2, 32], strides = [1, 1]} : vector<2x128xf32> to vector<2x32xf32>
      %354 = arith.negf %353 : vector<2x32xf32>
      %355 = math.exp %354 : vector<2x32xf32>
      %cst_92 = arith.constant 1.000000e+00 : f32
      %356 = vector.broadcast %cst_92 : f32 to vector<2x32xf32>
      %357 = arith.addf %356, %355 : vector<2x32xf32>
      %358 = arith.divf %356, %357 : vector<2x32xf32>
      %359 = vector.extract_strided_slice %346 {offsets = [0, 64], sizes = [2, 32], strides = [1, 1]} : vector<2x128xf32> to vector<2x32xf32>
      %360 = math.tanh %359 : vector<2x32xf32>
      %361 = vector.extract_strided_slice %346 {offsets = [0, 96], sizes = [2, 32], strides = [1, 1]} : vector<2x128xf32> to vector<2x32xf32>
      %362 = arith.negf %361 : vector<2x32xf32>
      %363 = math.exp %362 : vector<2x32xf32>
      %cst_93 = arith.constant 1.000000e+00 : f32
      %364 = vector.broadcast %cst_93 : f32 to vector<2x32xf32>
      %365 = arith.addf %364, %363 : vector<2x32xf32>
      %366 = arith.divf %364, %365 : vector<2x32xf32>
      %367 = arith.mulf %358, %332 : vector<2x32xf32>
      %368 = arith.mulf %352, %360 : vector<2x32xf32>
      %369 = arith.addf %367, %368 : vector<2x32xf32>
      %370 = math.tanh %369 : vector<2x32xf32>
      %371 = arith.mulf %366, %370 : vector<2x32xf32>
      %372 = vector.extract_strided_slice %16 {offsets = [0, 7], sizes = [2, 1], strides = [1, 1]} : vector<2x8xi1> to vector<2x1xi1>
      %373 = vector.shape_cast %372 : vector<2x1xi1> to vector<2x1xi1>
      %374 = vector.broadcast %373 : vector<2x1xi1> to vector<2x32xi1>
      %375 = arith.select %374, %371, %329 : vector<2x32xi1>, vector<2x32xf32>
      %376 = vector.shape_cast %372 : vector<2x1xi1> to vector<2x1xi1>
      %377 = vector.broadcast %376 : vector<2x1xi1> to vector<2x32xi1>
      %378 = arith.select %377, %369, %332 : vector<2x32xi1>, vector<2x32xf32>
      %cst_94 = arith.constant 0.000000e+00 : f32
      %379 = vector.shape_cast %372 : vector<2x1xi1> to vector<2x1xi1>
      %380 = vector.broadcast %379 : vector<2x1xi1> to vector<2x32xi1>
      %381 = vector.broadcast %cst_94 : f32 to vector<2x32xf32>
      %382 = arith.select %380, %371, %381 : vector<2x32xi1>, vector<2x32xf32>
      %383 = arith.truncf %382 : vector<2x32xf32> to vector<2x32xbf16>
      %c0_95 = arith.constant 0 : index
      %c7_96 = arith.constant 7 : index
      %c0_97 = arith.constant 0 : index
      %c0_98 = arith.constant 0 : index
      %384 = vector.load %arg5[%c0_95, %c7_96, %c0_97, %c0_98] : memref<1x8x2x32xbf16, #tpu.memory_space<vmem>>, vector<1x1x2x32xbf16>
      %385 = vector.shape_cast %384 : vector<1x1x2x32xbf16> to vector<2x32xbf16>
      %386 = vector.shape_cast %383 : vector<2x32xbf16> to vector<1x1x2x32xbf16>
      tpu.vector_store %arg5[%c0_95, %c7_96, %c0_97, %c0_98], %386 {strides = array<i32>} : memref<1x8x2x32xbf16, #tpu.memory_space<vmem>>, vector<1x1x2x32xbf16>,
      %c0_99 = arith.constant 0 : index
      %c0_100 = arith.constant 0 : index
      %387 = vector.load %arg6[%c0_99, %c0_100] : memref<2x32xf32, #tpu.memory_space<vmem>>, vector<2x32xf32>
      tpu.vector_store %arg6[%c0_99, %c0_100], %375 {strides = array<i32>} : memref<2x32xf32, #tpu.memory_space<vmem>>, vector<2x32xf32>,
      %c0_101 = arith.constant 0 : index
      %c0_102 = arith.constant 0 : index
      %388 = vector.load %arg7[%c0_101, %c0_102] : memref<2x32xf32, #tpu.memory_space<vmem>>, vector<2x32xf32>
      tpu.vector_store %arg7[%c0_101, %c0_102], %378 {strides = array<i32>} : memref<2x32xf32, #tpu.memory_space<vmem>>, vector<2x32xf32>,
    } else {
    }
    %c1_i32 = arith.constant 1 : i32
    %8 = arith.cmpi eq, %arg0, %c1_i32 : i32
    %9 = arith.extui %8 : i1 to i32
    %c0_i32_6 = arith.constant 0 : i32
    %10 = arith.cmpi ne, %9, %c0_i32_6 : i32
    scf.if %10 {
      %c0_i32_7 = arith.constant 0 : i32
      %11 = arith.subi %c0_i32_7, %arg1 : i32
      %c8_i32 = arith.constant 8 : i32
      %12 = arith.muli %11, %c8_i32 : i32
      %13 = tpu.iota {dimensions = array<i32: 1>} : vector<2x8xi32>
      %14 = vector.broadcast %12 : i32 to vector<2x8xi32>
      %15 = arith.addi %14, %13 : vector<2x8xi32>
      %16 = vector.broadcast %4 : vector<2x1xi32> to vector<2x8xi32>
      %17 = arith.cmpi sgt, %16, %15 : vector<2x8xi32>
      %c0_8 = arith.constant 0 : index
      %c0_9 = arith.constant 0 : index
      %18 = vector.load %arg6[%c0_8, %c0_9] : memref<2x32xf32, #tpu.memory_space<vmem>>, vector<2x32xf32>
      %c0_10 = arith.constant 0 : index
      %c0_11 = arith.constant 0 : index
      %19 = vector.load %arg7[%c0_10, %c0_11] : memref<2x32xf32, #tpu.memory_space<vmem>>, vector<2x32xf32>
      %c7 = arith.constant 7 : index
      %c0_12 = arith.constant 0 : index
      %c0_13 = arith.constant 0 : index
      %20 = vector.load %arg3[%c7, %c0_12, %c0_13] : memref<8x2x128xbf16, #tpu.memory_space<vmem>>, vector<1x2x128xbf16>
      %21 = vector.shape_cast %20 : vector<1x2x128xbf16> to vector<2x128xbf16>
      %22 = arith.extf %21 : vector<2x128xbf16> to vector<2x128xf32>
      %23 = arith.truncf %18 : vector<2x32xf32> to vector<2x32xbf16>
      %cst = arith.constant dense<0.000000e+00> : vector<2x128xf32>
      %24 = tpu.matmul %23, %3, %cst {dimension_numbers = #tpu.dot_dimension_numbers<[1], [0], [0], [1], [0, 0, 1, 1], [], []>} : vector<2x32xbf16>, vector<32x128xbf16>, vector<2x128xf32> -> vector<2x128xf32>
      %25 = arith.addf %22, %24 : vector<2x128xf32>
      %26 = vector.extract_strided_slice %25 {offsets = [0, 0], sizes = [2, 32], strides = [1, 1]} : vector<2x128xf32> to vector<2x32xf32>
      %27 = arith.negf %26 : vector<2x32xf32>
      %28 = math.exp %27 : vector<2x32xf32>
      %cst_14 = arith.constant 1.000000e+00 : f32
      %29 = vector.broadcast %cst_14 : f32 to vector<2x32xf32>
      %30 = arith.addf %29, %28 : vector<2x32xf32>
      %31 = arith.divf %29, %30 : vector<2x32xf32>
      %32 = vector.extract_strided_slice %25 {offsets = [0, 32], sizes = [2, 32], strides = [1, 1]} : vector<2x128xf32> to vector<2x32xf32>
      %33 = arith.negf %32 : vector<2x32xf32>
      %34 = math.exp %33 : vector<2x32xf32>
      %cst_15 = arith.constant 1.000000e+00 : f32
      %35 = vector.broadcast %cst_15 : f32 to vector<2x32xf32>
      %36 = arith.addf %35, %34 : vector<2x32xf32>
      %37 = arith.divf %35, %36 : vector<2x32xf32>
      %38 = vector.extract_strided_slice %25 {offsets = [0, 64], sizes = [2, 32], strides = [1, 1]} : vector<2x128xf32> to vector<2x32xf32>
      %39 = math.tanh %38 : vector<2x32xf32>
      %40 = vector.extract_strided_slice %25 {offsets = [0, 96], sizes = [2, 32], strides = [1, 1]} : vector<2x128xf32> to vector<2x32xf32>
      %41 = arith.negf %40 : vector<2x32xf32>
      %42 = math.exp %41 : vector<2x32xf32>
      %cst_16 = arith.constant 1.000000e+00 : f32
      %43 = vector.broadcast %cst_16 : f32 to vector<2x32xf32>
      %44 = arith.addf %43, %42 : vector<2x32xf32>
      %45 = arith.divf %43, %44 : vector<2x32xf32>
      %46 = arith.mulf %37, %19 : vector<2x32xf32>
      %47 = arith.mulf %31, %39 : vector<2x32xf32>
      %48 = arith.addf %46, %47 : vector<2x32xf32>
      %49 = math.tanh %48 : vector<2x32xf32>
      %50 = arith.mulf %45, %49 : vector<2x32xf32>
      %51 = vector.extract_strided_slice %17 {offsets = [0, 7], sizes = [2, 1], strides = [1, 1]} : vector<2x8xi1> to vector<2x1xi1>
      %52 = vector.shape_cast %51 : vector<2x1xi1> to vector<2x1xi1>
      %53 = vector.broadcast %52 : vector<2x1xi1> to vector<2x32xi1>
      %54 = arith.select %53, %50, %18 : vector<2x32xi1>, vector<2x32xf32>
      %55 = vector.shape_cast %51 : vector<2x1xi1> to vector<2x1xi1>
      %56 = vector.broadcast %55 : vector<2x1xi1> to vector<2x32xi1>
      %57 = arith.select %56, %48, %19 : vector<2x32xi1>, vector<2x32xf32>
      %cst_17 = arith.constant 0.000000e+00 : f32
      %58 = vector.shape_cast %51 : vector<2x1xi1> to vector<2x1xi1>
      %59 = vector.broadcast %58 : vector<2x1xi1> to vector<2x32xi1>
      %60 = vector.broadcast %cst_17 : f32 to vector<2x32xf32>
      %61 = arith.select %59, %50, %60 : vector<2x32xi1>, vector<2x32xf32>
      %62 = arith.truncf %61 : vector<2x32xf32> to vector<2x32xbf16>
      %c0_18 = arith.constant 0 : index
      %c7_19 = arith.constant 7 : index
      %c0_20 = arith.constant 0 : index
      %c0_21 = arith.constant 0 : index
      %63 = vector.load %arg5[%c0_18, %c7_19, %c0_20, %c0_21] : memref<1x8x2x32xbf16, #tpu.memory_space<vmem>>, vector<1x1x2x32xbf16>
      %64 = vector.shape_cast %63 : vector<1x1x2x32xbf16> to vector<2x32xbf16>
      %65 = vector.shape_cast %62 : vector<2x32xbf16> to vector<1x1x2x32xbf16>
      tpu.vector_store %arg5[%c0_18, %c7_19, %c0_20, %c0_21], %65 {strides = array<i32>} : memref<1x8x2x32xbf16, #tpu.memory_space<vmem>>, vector<1x1x2x32xbf16>,
      %c6 = arith.constant 6 : index
      %c0_22 = arith.constant 0 : index
      %c0_23 = arith.constant 0 : index
      %66 = vector.load %arg3[%c6, %c0_22, %c0_23] : memref<8x2x128xbf16, #tpu.memory_space<vmem>>, vector<1x2x128xbf16>
      %67 = vector.shape_cast %66 : vector<1x2x128xbf16> to vector<2x128xbf16>
      %68 = arith.extf %67 : vector<2x128xbf16> to vector<2x128xf32>
      %69 = arith.truncf %54 : vector<2x32xf32> to vector<2x32xbf16>
      %cst_24 = arith.constant dense<0.000000e+00> : vector<2x128xf32>
      %70 = tpu.matmul %69, %3, %cst_24 {dimension_numbers = #tpu.dot_dimension_numbers<[1], [0], [0], [1], [0, 0, 1, 1], [], []>} : vector<2x32xbf16>, vector<32x128xbf16>, vector<2x128xf32> -> vector<2x128xf32>
      %71 = arith.addf %68, %70 : vector<2x128xf32>
      %72 = vector.extract_strided_slice %71 {offsets = [0, 0], sizes = [2, 32], strides = [1, 1]} : vector<2x128xf32> to vector<2x32xf32>
      %73 = arith.negf %72 : vector<2x32xf32>
      %74 = math.exp %73 : vector<2x32xf32>
      %cst_25 = arith.constant 1.000000e+00 : f32
      %75 = vector.broadcast %cst_25 : f32 to vector<2x32xf32>
      %76 = arith.addf %75, %74 : vector<2x32xf32>
      %77 = arith.divf %75, %76 : vector<2x32xf32>
      %78 = vector.extract_strided_slice %71 {offsets = [0, 32], sizes = [2, 32], strides = [1, 1]} : vector<2x128xf32> to vector<2x32xf32>
      %79 = arith.negf %78 : vector<2x32xf32>
      %80 = math.exp %79 : vector<2x32xf32>
      %cst_26 = arith.constant 1.000000e+00 : f32
      %81 = vector.broadcast %cst_26 : f32 to vector<2x32xf32>
      %82 = arith.addf %81, %80 : vector<2x32xf32>
      %83 = arith.divf %81, %82 : vector<2x32xf32>
      %84 = vector.extract_strided_slice %71 {offsets = [0, 64], sizes = [2, 32], strides = [1, 1]} : vector<2x128xf32> to vector<2x32xf32>
      %85 = math.tanh %84 : vector<2x32xf32>
      %86 = vector.extract_strided_slice %71 {offsets = [0, 96], sizes = [2, 32], strides = [1, 1]} : vector<2x128xf32> to vector<2x32xf32>
      %87 = arith.negf %86 : vector<2x32xf32>
      %88 = math.exp %87 : vector<2x32xf32>
      %cst_27 = arith.constant 1.000000e+00 : f32
      %89 = vector.broadcast %cst_27 : f32 to vector<2x32xf32>
      %90 = arith.addf %89, %88 : vector<2x32xf32>
      %91 = arith.divf %89, %90 : vector<2x32xf32>
      %92 = arith.mulf %83, %57 : vector<2x32xf32>
      %93 = arith.mulf %77, %85 : vector<2x32xf32>
      %94 = arith.addf %92, %93 : vector<2x32xf32>
      %95 = math.tanh %94 : vector<2x32xf32>
      %96 = arith.mulf %91, %95 : vector<2x32xf32>
      %97 = vector.extract_strided_slice %17 {offsets = [0, 6], sizes = [2, 1], strides = [1, 1]} : vector<2x8xi1> to vector<2x1xi1>
      %98 = vector.shape_cast %97 : vector<2x1xi1> to vector<2x1xi1>
      %99 = vector.broadcast %98 : vector<2x1xi1> to vector<2x32xi1>
      %100 = arith.select %99, %96, %54 : vector<2x32xi1>, vector<2x32xf32>
      %101 = vector.shape_cast %97 : vector<2x1xi1> to vector<2x1xi1>
      %102 = vector.broadcast %101 : vector<2x1xi1> to vector<2x32xi1>
      %103 = arith.select %102, %94, %57 : vector<2x32xi1>, vector<2x32xf32>
      %cst_28 = arith.constant 0.000000e+00 : f32
      %104 = vector.shape_cast %97 : vector<2x1xi1> to vector<2x1xi1>
      %105 = vector.broadcast %104 : vector<2x1xi1> to vector<2x32xi1>
      %106 = vector.broadcast %cst_28 : f32 to vector<2x32xf32>
      %107 = arith.select %105, %96, %106 : vector<2x32xi1>, vector<2x32xf32>
      %108 = arith.truncf %107 : vector<2x32xf32> to vector<2x32xbf16>
      %c0_29 = arith.constant 0 : index
      %c6_30 = arith.constant 6 : index
      %c0_31 = arith.constant 0 : index
      %c0_32 = arith.constant 0 : index
      %109 = vector.load %arg5[%c0_29, %c6_30, %c0_31, %c0_32] : memref<1x8x2x32xbf16, #tpu.memory_space<vmem>>, vector<1x1x2x32xbf16>
      %110 = vector.shape_cast %109 : vector<1x1x2x32xbf16> to vector<2x32xbf16>
      %111 = vector.shape_cast %108 : vector<2x32xbf16> to vector<1x1x2x32xbf16>
      tpu.vector_store %arg5[%c0_29, %c6_30, %c0_31, %c0_32], %111 {strides = array<i32>} : memref<1x8x2x32xbf16, #tpu.memory_space<vmem>>, vector<1x1x2x32xbf16>,
      %c5 = arith.constant 5 : index
      %c0_33 = arith.constant 0 : index
      %c0_34 = arith.constant 0 : index
      %112 = vector.load %arg3[%c5, %c0_33, %c0_34] : memref<8x2x128xbf16, #tpu.memory_space<vmem>>, vector<1x2x128xbf16>
      %113 = vector.shape_cast %112 : vector<1x2x128xbf16> to vector<2x128xbf16>
      %114 = arith.extf %113 : vector<2x128xbf16> to vector<2x128xf32>
      %115 = arith.truncf %100 : vector<2x32xf32> to vector<2x32xbf16>
      %cst_35 = arith.constant dense<0.000000e+00> : vector<2x128xf32>
      %116 = tpu.matmul %115, %3, %cst_35 {dimension_numbers = #tpu.dot_dimension_numbers<[1], [0], [0], [1], [0, 0, 1, 1], [], []>} : vector<2x32xbf16>, vector<32x128xbf16>, vector<2x128xf32> -> vector<2x128xf32>
      %117 = arith.addf %114, %116 : vector<2x128xf32>
      %118 = vector.extract_strided_slice %117 {offsets = [0, 0], sizes = [2, 32], strides = [1, 1]} : vector<2x128xf32> to vector<2x32xf32>
      %119 = arith.negf %118 : vector<2x32xf32>
      %120 = math.exp %119 : vector<2x32xf32>
      %cst_36 = arith.constant 1.000000e+00 : f32
      %121 = vector.broadcast %cst_36 : f32 to vector<2x32xf32>
      %122 = arith.addf %121, %120 : vector<2x32xf32>
      %123 = arith.divf %121, %122 : vector<2x32xf32>
      %124 = vector.extract_strided_slice %117 {offsets = [0, 32], sizes = [2, 32], strides = [1, 1]} : vector<2x128xf32> to vector<2x32xf32>
      %125 = arith.negf %124 : vector<2x32xf32>
      %126 = math.exp %125 : vector<2x32xf32>
      %cst_37 = arith.constant 1.000000e+00 : f32
      %127 = vector.broadcast %cst_37 : f32 to vector<2x32xf32>
      %128 = arith.addf %127, %126 : vector<2x32xf32>
      %129 = arith.divf %127, %128 : vector<2x32xf32>
      %130 = vector.extract_strided_slice %117 {offsets = [0, 64], sizes = [2, 32], strides = [1, 1]} : vector<2x128xf32> to vector<2x32xf32>
      %131 = math.tanh %130 : vector<2x32xf32>
      %132 = vector.extract_strided_slice %117 {offsets = [0, 96], sizes = [2, 32], strides = [1, 1]} : vector<2x128xf32> to vector<2x32xf32>
      %133 = arith.negf %132 : vector<2x32xf32>
      %134 = math.exp %133 : vector<2x32xf32>
      %cst_38 = arith.constant 1.000000e+00 : f32
      %135 = vector.broadcast %cst_38 : f32 to vector<2x32xf32>
      %136 = arith.addf %135, %134 : vector<2x32xf32>
      %137 = arith.divf %135, %136 : vector<2x32xf32>
      %138 = arith.mulf %129, %103 : vector<2x32xf32>
      %139 = arith.mulf %123, %131 : vector<2x32xf32>
      %140 = arith.addf %138, %139 : vector<2x32xf32>
      %141 = math.tanh %140 : vector<2x32xf32>
      %142 = arith.mulf %137, %141 : vector<2x32xf32>
      %143 = vector.extract_strided_slice %17 {offsets = [0, 5], sizes = [2, 1], strides = [1, 1]} : vector<2x8xi1> to vector<2x1xi1>
      %144 = vector.shape_cast %143 : vector<2x1xi1> to vector<2x1xi1>
      %145 = vector.broadcast %144 : vector<2x1xi1> to vector<2x32xi1>
      %146 = arith.select %145, %142, %100 : vector<2x32xi1>, vector<2x32xf32>
      %147 = vector.shape_cast %143 : vector<2x1xi1> to vector<2x1xi1>
      %148 = vector.broadcast %147 : vector<2x1xi1> to vector<2x32xi1>
      %149 = arith.select %148, %140, %103 : vector<2x32xi1>, vector<2x32xf32>
      %cst_39 = arith.constant 0.000000e+00 : f32
      %150 = vector.shape_cast %143 : vector<2x1xi1> to vector<2x1xi1>
      %151 = vector.broadcast %150 : vector<2x1xi1> to vector<2x32xi1>
      %152 = vector.broadcast %cst_39 : f32 to vector<2x32xf32>
      %153 = arith.select %151, %142, %152 : vector<2x32xi1>, vector<2x32xf32>
      %154 = arith.truncf %153 : vector<2x32xf32> to vector<2x32xbf16>
      %c0_40 = arith.constant 0 : index
      %c5_41 = arith.constant 5 : index
      %c0_42 = arith.constant 0 : index
      %c0_43 = arith.constant 0 : index
      %155 = vector.load %arg5[%c0_40, %c5_41, %c0_42, %c0_43] : memref<1x8x2x32xbf16, #tpu.memory_space<vmem>>, vector<1x1x2x32xbf16>
      %156 = vector.shape_cast %155 : vector<1x1x2x32xbf16> to vector<2x32xbf16>
      %157 = vector.shape_cast %154 : vector<2x32xbf16> to vector<1x1x2x32xbf16>
      tpu.vector_store %arg5[%c0_40, %c5_41, %c0_42, %c0_43], %157 {strides = array<i32>} : memref<1x8x2x32xbf16, #tpu.memory_space<vmem>>, vector<1x1x2x32xbf16>,
      %c4 = arith.constant 4 : index
      %c0_44 = arith.constant 0 : index
      %c0_45 = arith.constant 0 : index
      %158 = vector.load %arg3[%c4, %c0_44, %c0_45] : memref<8x2x128xbf16, #tpu.memory_space<vmem>>, vector<1x2x128xbf16>
      %159 = vector.shape_cast %158 : vector<1x2x128xbf16> to vector<2x128xbf16>
      %160 = arith.extf %159 : vector<2x128xbf16> to vector<2x128xf32>
      %161 = arith.truncf %146 : vector<2x32xf32> to vector<2x32xbf16>
      %cst_46 = arith.constant dense<0.000000e+00> : vector<2x128xf32>
      %162 = tpu.matmul %161, %3, %cst_46 {dimension_numbers = #tpu.dot_dimension_numbers<[1], [0], [0], [1], [0, 0, 1, 1], [], []>} : vector<2x32xbf16>, vector<32x128xbf16>, vector<2x128xf32> -> vector<2x128xf32>
      %163 = arith.addf %160, %162 : vector<2x128xf32>
      %164 = vector.extract_strided_slice %163 {offsets = [0, 0], sizes = [2, 32], strides = [1, 1]} : vector<2x128xf32> to vector<2x32xf32>
      %165 = arith.negf %164 : vector<2x32xf32>
      %166 = math.exp %165 : vector<2x32xf32>
      %cst_47 = arith.constant 1.000000e+00 : f32
      %167 = vector.broadcast %cst_47 : f32 to vector<2x32xf32>
      %168 = arith.addf %167, %166 : vector<2x32xf32>
      %169 = arith.divf %167, %168 : vector<2x32xf32>
      %170 = vector.extract_strided_slice %163 {offsets = [0, 32], sizes = [2, 32], strides = [1, 1]} : vector<2x128xf32> to vector<2x32xf32>
      %171 = arith.negf %170 : vector<2x32xf32>
      %172 = math.exp %171 : vector<2x32xf32>
      %cst_48 = arith.constant 1.000000e+00 : f32
      %173 = vector.broadcast %cst_48 : f32 to vector<2x32xf32>
      %174 = arith.addf %173, %172 : vector<2x32xf32>
      %175 = arith.divf %173, %174 : vector<2x32xf32>
      %176 = vector.extract_strided_slice %163 {offsets = [0, 64], sizes = [2, 32], strides = [1, 1]} : vector<2x128xf32> to vector<2x32xf32>
      %177 = math.tanh %176 : vector<2x32xf32>
      %178 = vector.extract_strided_slice %163 {offsets = [0, 96], sizes = [2, 32], strides = [1, 1]} : vector<2x128xf32> to vector<2x32xf32>
      %179 = arith.negf %178 : vector<2x32xf32>
      %180 = math.exp %179 : vector<2x32xf32>
      %cst_49 = arith.constant 1.000000e+00 : f32
      %181 = vector.broadcast %cst_49 : f32 to vector<2x32xf32>
      %182 = arith.addf %181, %180 : vector<2x32xf32>
      %183 = arith.divf %181, %182 : vector<2x32xf32>
      %184 = arith.mulf %175, %149 : vector<2x32xf32>
      %185 = arith.mulf %169, %177 : vector<2x32xf32>
      %186 = arith.addf %184, %185 : vector<2x32xf32>
      %187 = math.tanh %186 : vector<2x32xf32>
      %188 = arith.mulf %183, %187 : vector<2x32xf32>
      %189 = vector.extract_strided_slice %17 {offsets = [0, 4], sizes = [2, 1], strides = [1, 1]} : vector<2x8xi1> to vector<2x1xi1>
      %190 = vector.shape_cast %189 : vector<2x1xi1> to vector<2x1xi1>
      %191 = vector.broadcast %190 : vector<2x1xi1> to vector<2x32xi1>
      %192 = arith.select %191, %188, %146 : vector<2x32xi1>, vector<2x32xf32>
      %193 = vector.shape_cast %189 : vector<2x1xi1> to vector<2x1xi1>
      %194 = vector.broadcast %193 : vector<2x1xi1> to vector<2x32xi1>
      %195 = arith.select %194, %186, %149 : vector<2x32xi1>, vector<2x32xf32>
      %cst_50 = arith.constant 0.000000e+00 : f32
      %196 = vector.shape_cast %189 : vector<2x1xi1> to vector<2x1xi1>
      %197 = vector.broadcast %196 : vector<2x1xi1> to vector<2x32xi1>
      %198 = vector.broadcast %cst_50 : f32 to vector<2x32xf32>
      %199 = arith.select %197, %188, %198 : vector<2x32xi1>, vector<2x32xf32>
      %200 = arith.truncf %199 : vector<2x32xf32> to vector<2x32xbf16>
      %c0_51 = arith.constant 0 : index
      %c4_52 = arith.constant 4 : index
      %c0_53 = arith.constant 0 : index
      %c0_54 = arith.constant 0 : index
      %201 = vector.load %arg5[%c0_51, %c4_52, %c0_53, %c0_54] : memref<1x8x2x32xbf16, #tpu.memory_space<vmem>>, vector<1x1x2x32xbf16>
      %202 = vector.shape_cast %201 : vector<1x1x2x32xbf16> to vector<2x32xbf16>
      %203 = vector.shape_cast %200 : vector<2x32xbf16> to vector<1x1x2x32xbf16>
      tpu.vector_store %arg5[%c0_51, %c4_52, %c0_53, %c0_54], %203 {strides = array<i32>} : memref<1x8x2x32xbf16, #tpu.memory_space<vmem>>, vector<1x1x2x32xbf16>,
      %c3 = arith.constant 3 : index
      %c0_55 = arith.constant 0 : index
      %c0_56 = arith.constant 0 : index
      %204 = vector.load %arg3[%c3, %c0_55, %c0_56] : memref<8x2x128xbf16, #tpu.memory_space<vmem>>, vector<1x2x128xbf16>
      %205 = vector.shape_cast %204 : vector<1x2x128xbf16> to vector<2x128xbf16>
      %206 = arith.extf %205 : vector<2x128xbf16> to vector<2x128xf32>
      %207 = arith.truncf %192 : vector<2x32xf32> to vector<2x32xbf16>
      %cst_57 = arith.constant dense<0.000000e+00> : vector<2x128xf32>
      %208 = tpu.matmul %207, %3, %cst_57 {dimension_numbers = #tpu.dot_dimension_numbers<[1], [0], [0], [1], [0, 0, 1, 1], [], []>} : vector<2x32xbf16>, vector<32x128xbf16>, vector<2x128xf32> -> vector<2x128xf32>
      %209 = arith.addf %206, %208 : vector<2x128xf32>
      %210 = vector.extract_strided_slice %209 {offsets = [0, 0], sizes = [2, 32], strides = [1, 1]} : vector<2x128xf32> to vector<2x32xf32>
      %211 = arith.negf %210 : vector<2x32xf32>
      %212 = math.exp %211 : vector<2x32xf32>
      %cst_58 = arith.constant 1.000000e+00 : f32
      %213 = vector.broadcast %cst_58 : f32 to vector<2x32xf32>
      %214 = arith.addf %213, %212 : vector<2x32xf32>
      %215 = arith.divf %213, %214 : vector<2x32xf32>
      %216 = vector.extract_strided_slice %209 {offsets = [0, 32], sizes = [2, 32], strides = [1, 1]} : vector<2x128xf32> to vector<2x32xf32>
      %217 = arith.negf %216 : vector<2x32xf32>
      %218 = math.exp %217 : vector<2x32xf32>
      %cst_59 = arith.constant 1.000000e+00 : f32
      %219 = vector.broadcast %cst_59 : f32 to vector<2x32xf32>
      %220 = arith.addf %219, %218 : vector<2x32xf32>
      %221 = arith.divf %219, %220 : vector<2x32xf32>
      %222 = vector.extract_strided_slice %209 {offsets = [0, 64], sizes = [2, 32], strides = [1, 1]} : vector<2x128xf32> to vector<2x32xf32>
      %223 = math.tanh %222 : vector<2x32xf32>
      %224 = vector.extract_strided_slice %209 {offsets = [0, 96], sizes = [2, 32], strides = [1, 1]} : vector<2x128xf32> to vector<2x32xf32>
      %225 = arith.negf %224 : vector<2x32xf32>
      %226 = math.exp %225 : vector<2x32xf32>
      %cst_60 = arith.constant 1.000000e+00 : f32
      %227 = vector.broadcast %cst_60 : f32 to vector<2x32xf32>
      %228 = arith.addf %227, %226 : vector<2x32xf32>
      %229 = arith.divf %227, %228 : vector<2x32xf32>
      %230 = arith.mulf %221, %195 : vector<2x32xf32>
      %231 = arith.mulf %215, %223 : vector<2x32xf32>
      %232 = arith.addf %230, %231 : vector<2x32xf32>
      %233 = math.tanh %232 : vector<2x32xf32>
      %234 = arith.mulf %229, %233 : vector<2x32xf32>
      %235 = vector.extract_strided_slice %17 {offsets = [0, 3], sizes = [2, 1], strides = [1, 1]} : vector<2x8xi1> to vector<2x1xi1>
      %236 = vector.shape_cast %235 : vector<2x1xi1> to vector<2x1xi1>
      %237 = vector.broadcast %236 : vector<2x1xi1> to vector<2x32xi1>
      %238 = arith.select %237, %234, %192 : vector<2x32xi1>, vector<2x32xf32>
      %239 = vector.shape_cast %235 : vector<2x1xi1> to vector<2x1xi1>
      %240 = vector.broadcast %239 : vector<2x1xi1> to vector<2x32xi1>
      %241 = arith.select %240, %232, %195 : vector<2x32xi1>, vector<2x32xf32>
      %cst_61 = arith.constant 0.000000e+00 : f32
      %242 = vector.shape_cast %235 : vector<2x1xi1> to vector<2x1xi1>
      %243 = vector.broadcast %242 : vector<2x1xi1> to vector<2x32xi1>
      %244 = vector.broadcast %cst_61 : f32 to vector<2x32xf32>
      %245 = arith.select %243, %234, %244 : vector<2x32xi1>, vector<2x32xf32>
      %246 = arith.truncf %245 : vector<2x32xf32> to vector<2x32xbf16>
      %c0_62 = arith.constant 0 : index
      %c3_63 = arith.constant 3 : index
      %c0_64 = arith.constant 0 : index
      %c0_65 = arith.constant 0 : index
      %247 = vector.load %arg5[%c0_62, %c3_63, %c0_64, %c0_65] : memref<1x8x2x32xbf16, #tpu.memory_space<vmem>>, vector<1x1x2x32xbf16>
      %248 = vector.shape_cast %247 : vector<1x1x2x32xbf16> to vector<2x32xbf16>
      %249 = vector.shape_cast %246 : vector<2x32xbf16> to vector<1x1x2x32xbf16>
      tpu.vector_store %arg5[%c0_62, %c3_63, %c0_64, %c0_65], %249 {strides = array<i32>} : memref<1x8x2x32xbf16, #tpu.memory_space<vmem>>, vector<1x1x2x32xbf16>,
      %c2 = arith.constant 2 : index
      %c0_66 = arith.constant 0 : index
      %c0_67 = arith.constant 0 : index
      %250 = vector.load %arg3[%c2, %c0_66, %c0_67] : memref<8x2x128xbf16, #tpu.memory_space<vmem>>, vector<1x2x128xbf16>
      %251 = vector.shape_cast %250 : vector<1x2x128xbf16> to vector<2x128xbf16>
      %252 = arith.extf %251 : vector<2x128xbf16> to vector<2x128xf32>
      %253 = arith.truncf %238 : vector<2x32xf32> to vector<2x32xbf16>
      %cst_68 = arith.constant dense<0.000000e+00> : vector<2x128xf32>
      %254 = tpu.matmul %253, %3, %cst_68 {dimension_numbers = #tpu.dot_dimension_numbers<[1], [0], [0], [1], [0, 0, 1, 1], [], []>} : vector<2x32xbf16>, vector<32x128xbf16>, vector<2x128xf32> -> vector<2x128xf32>
      %255 = arith.addf %252, %254 : vector<2x128xf32>
      %256 = vector.extract_strided_slice %255 {offsets = [0, 0], sizes = [2, 32], strides = [1, 1]} : vector<2x128xf32> to vector<2x32xf32>
      %257 = arith.negf %256 : vector<2x32xf32>
      %258 = math.exp %257 : vector<2x32xf32>
      %cst_69 = arith.constant 1.000000e+00 : f32
      %259 = vector.broadcast %cst_69 : f32 to vector<2x32xf32>
      %260 = arith.addf %259, %258 : vector<2x32xf32>
      %261 = arith.divf %259, %260 : vector<2x32xf32>
      %262 = vector.extract_strided_slice %255 {offsets = [0, 32], sizes = [2, 32], strides = [1, 1]} : vector<2x128xf32> to vector<2x32xf32>
      %263 = arith.negf %262 : vector<2x32xf32>
      %264 = math.exp %263 : vector<2x32xf32>
      %cst_70 = arith.constant 1.000000e+00 : f32
      %265 = vector.broadcast %cst_70 : f32 to vector<2x32xf32>
      %266 = arith.addf %265, %264 : vector<2x32xf32>
      %267 = arith.divf %265, %266 : vector<2x32xf32>
      %268 = vector.extract_strided_slice %255 {offsets = [0, 64], sizes = [2, 32], strides = [1, 1]} : vector<2x128xf32> to vector<2x32xf32>
      %269 = math.tanh %268 : vector<2x32xf32>
      %270 = vector.extract_strided_slice %255 {offsets = [0, 96], sizes = [2, 32], strides = [1, 1]} : vector<2x128xf32> to vector<2x32xf32>
      %271 = arith.negf %270 : vector<2x32xf32>
      %272 = math.exp %271 : vector<2x32xf32>
      %cst_71 = arith.constant 1.000000e+00 : f32
      %273 = vector.broadcast %cst_71 : f32 to vector<2x32xf32>
      %274 = arith.addf %273, %272 : vector<2x32xf32>
      %275 = arith.divf %273, %274 : vector<2x32xf32>
      %276 = arith.mulf %267, %241 : vector<2x32xf32>
      %277 = arith.mulf %261, %269 : vector<2x32xf32>
      %278 = arith.addf %276, %277 : vector<2x32xf32>
      %279 = math.tanh %278 : vector<2x32xf32>
      %280 = arith.mulf %275, %279 : vector<2x32xf32>
      %281 = vector.extract_strided_slice %17 {offsets = [0, 2], sizes = [2, 1], strides = [1, 1]} : vector<2x8xi1> to vector<2x1xi1>
      %282 = vector.shape_cast %281 : vector<2x1xi1> to vector<2x1xi1>
      %283 = vector.broadcast %282 : vector<2x1xi1> to vector<2x32xi1>
      %284 = arith.select %283, %280, %238 : vector<2x32xi1>, vector<2x32xf32>
      %285 = vector.shape_cast %281 : vector<2x1xi1> to vector<2x1xi1>
      %286 = vector.broadcast %285 : vector<2x1xi1> to vector<2x32xi1>
      %287 = arith.select %286, %278, %241 : vector<2x32xi1>, vector<2x32xf32>
      %cst_72 = arith.constant 0.000000e+00 : f32
      %288 = vector.shape_cast %281 : vector<2x1xi1> to vector<2x1xi1>
      %289 = vector.broadcast %288 : vector<2x1xi1> to vector<2x32xi1>
      %290 = vector.broadcast %cst_72 : f32 to vector<2x32xf32>
      %291 = arith.select %289, %280, %290 : vector<2x32xi1>, vector<2x32xf32>
      %292 = arith.truncf %291 : vector<2x32xf32> to vector<2x32xbf16>
      %c0_73 = arith.constant 0 : index
      %c2_74 = arith.constant 2 : index
      %c0_75 = arith.constant 0 : index
      %c0_76 = arith.constant 0 : index
      %293 = vector.load %arg5[%c0_73, %c2_74, %c0_75, %c0_76] : memref<1x8x2x32xbf16, #tpu.memory_space<vmem>>, vector<1x1x2x32xbf16>
      %294 = vector.shape_cast %293 : vector<1x1x2x32xbf16> to vector<2x32xbf16>
      %295 = vector.shape_cast %292 : vector<2x32xbf16> to vector<1x1x2x32xbf16>
      tpu.vector_store %arg5[%c0_73, %c2_74, %c0_75, %c0_76], %295 {strides = array<i32>} : memref<1x8x2x32xbf16, #tpu.memory_space<vmem>>, vector<1x1x2x32xbf16>,
      %c1 = arith.constant 1 : index
      %c0_77 = arith.constant 0 : index
      %c0_78 = arith.constant 0 : index
      %296 = vector.load %arg3[%c1, %c0_77, %c0_78] : memref<8x2x128xbf16, #tpu.memory_space<vmem>>, vector<1x2x128xbf16>
      %297 = vector.shape_cast %296 : vector<1x2x128xbf16> to vector<2x128xbf16>
      %298 = arith.extf %297 : vector<2x128xbf16> to vector<2x128xf32>
      %299 = arith.truncf %284 : vector<2x32xf32> to vector<2x32xbf16>
      %cst_79 = arith.constant dense<0.000000e+00> : vector<2x128xf32>
      %300 = tpu.matmul %299, %3, %cst_79 {dimension_numbers = #tpu.dot_dimension_numbers<[1], [0], [0], [1], [0, 0, 1, 1], [], []>} : vector<2x32xbf16>, vector<32x128xbf16>, vector<2x128xf32> -> vector<2x128xf32>
      %301 = arith.addf %298, %300 : vector<2x128xf32>
      %302 = vector.extract_strided_slice %301 {offsets = [0, 0], sizes = [2, 32], strides = [1, 1]} : vector<2x128xf32> to vector<2x32xf32>
      %303 = arith.negf %302 : vector<2x32xf32>
      %304 = math.exp %303 : vector<2x32xf32>
      %cst_80 = arith.constant 1.000000e+00 : f32
      %305 = vector.broadcast %cst_80 : f32 to vector<2x32xf32>
      %306 = arith.addf %305, %304 : vector<2x32xf32>
      %307 = arith.divf %305, %306 : vector<2x32xf32>
      %308 = vector.extract_strided_slice %301 {offsets = [0, 32], sizes = [2, 32], strides = [1, 1]} : vector<2x128xf32> to vector<2x32xf32>
      %309 = arith.negf %308 : vector<2x32xf32>
      %310 = math.exp %309 : vector<2x32xf32>
      %cst_81 = arith.constant 1.000000e+00 : f32
      %311 = vector.broadcast %cst_81 : f32 to vector<2x32xf32>
      %312 = arith.addf %311, %310 : vector<2x32xf32>
      %313 = arith.divf %311, %312 : vector<2x32xf32>
      %314 = vector.extract_strided_slice %301 {offsets = [0, 64], sizes = [2, 32], strides = [1, 1]} : vector<2x128xf32> to vector<2x32xf32>
      %315 = math.tanh %314 : vector<2x32xf32>
      %316 = vector.extract_strided_slice %301 {offsets = [0, 96], sizes = [2, 32], strides = [1, 1]} : vector<2x128xf32> to vector<2x32xf32>
      %317 = arith.negf %316 : vector<2x32xf32>
      %318 = math.exp %317 : vector<2x32xf32>
      %cst_82 = arith.constant 1.000000e+00 : f32
      %319 = vector.broadcast %cst_82 : f32 to vector<2x32xf32>
      %320 = arith.addf %319, %318 : vector<2x32xf32>
      %321 = arith.divf %319, %320 : vector<2x32xf32>
      %322 = arith.mulf %313, %287 : vector<2x32xf32>
      %323 = arith.mulf %307, %315 : vector<2x32xf32>
      %324 = arith.addf %322, %323 : vector<2x32xf32>
      %325 = math.tanh %324 : vector<2x32xf32>
      %326 = arith.mulf %321, %325 : vector<2x32xf32>
      %327 = vector.extract_strided_slice %17 {offsets = [0, 1], sizes = [2, 1], strides = [1, 1]} : vector<2x8xi1> to vector<2x1xi1>
      %328 = vector.shape_cast %327 : vector<2x1xi1> to vector<2x1xi1>
      %329 = vector.broadcast %328 : vector<2x1xi1> to vector<2x32xi1>
      %330 = arith.select %329, %326, %284 : vector<2x32xi1>, vector<2x32xf32>
      %331 = vector.shape_cast %327 : vector<2x1xi1> to vector<2x1xi1>
      %332 = vector.broadcast %331 : vector<2x1xi1> to vector<2x32xi1>
      %333 = arith.select %332, %324, %287 : vector<2x32xi1>, vector<2x32xf32>
      %cst_83 = arith.constant 0.000000e+00 : f32
      %334 = vector.shape_cast %327 : vector<2x1xi1> to vector<2x1xi1>
      %335 = vector.broadcast %334 : vector<2x1xi1> to vector<2x32xi1>
      %336 = vector.broadcast %cst_83 : f32 to vector<2x32xf32>
      %337 = arith.select %335, %326, %336 : vector<2x32xi1>, vector<2x32xf32>
      %338 = arith.truncf %337 : vector<2x32xf32> to vector<2x32xbf16>
      %c0_84 = arith.constant 0 : index
      %c1_85 = arith.constant 1 : index
      %c0_86 = arith.constant 0 : index
      %c0_87 = arith.constant 0 : index
      %339 = vector.load %arg5[%c0_84, %c1_85, %c0_86, %c0_87] : memref<1x8x2x32xbf16, #tpu.memory_space<vmem>>, vector<1x1x2x32xbf16>
      %340 = vector.shape_cast %339 : vector<1x1x2x32xbf16> to vector<2x32xbf16>
      %341 = vector.shape_cast %338 : vector<2x32xbf16> to vector<1x1x2x32xbf16>
      tpu.vector_store %arg5[%c0_84, %c1_85, %c0_86, %c0_87], %341 {strides = array<i32>} : memref<1x8x2x32xbf16, #tpu.memory_space<vmem>>, vector<1x1x2x32xbf16>,
      %c0_88 = arith.constant 0 : index
      %c0_89 = arith.constant 0 : index
      %c0_90 = arith.constant 0 : index
      %342 = vector.load %arg3[%c0_88, %c0_89, %c0_90] : memref<8x2x128xbf16, #tpu.memory_space<vmem>>, vector<1x2x128xbf16>
      %343 = vector.shape_cast %342 : vector<1x2x128xbf16> to vector<2x128xbf16>
      %344 = arith.extf %343 : vector<2x128xbf16> to vector<2x128xf32>
      %345 = arith.truncf %330 : vector<2x32xf32> to vector<2x32xbf16>
      %cst_91 = arith.constant dense<0.000000e+00> : vector<2x128xf32>
      %346 = tpu.matmul %345, %3, %cst_91 {dimension_numbers = #tpu.dot_dimension_numbers<[1], [0], [0], [1], [0, 0, 1, 1], [], []>} : vector<2x32xbf16>, vector<32x128xbf16>, vector<2x128xf32> -> vector<2x128xf32>
      %347 = arith.addf %344, %346 : vector<2x128xf32>
      %348 = vector.extract_strided_slice %347 {offsets = [0, 0], sizes = [2, 32], strides = [1, 1]} : vector<2x128xf32> to vector<2x32xf32>
      %349 = arith.negf %348 : vector<2x32xf32>
      %350 = math.exp %349 : vector<2x32xf32>
      %cst_92 = arith.constant 1.000000e+00 : f32
      %351 = vector.broadcast %cst_92 : f32 to vector<2x32xf32>
      %352 = arith.addf %351, %350 : vector<2x32xf32>
      %353 = arith.divf %351, %352 : vector<2x32xf32>
      %354 = vector.extract_strided_slice %347 {offsets = [0, 32], sizes = [2, 32], strides = [1, 1]} : vector<2x128xf32> to vector<2x32xf32>
      %355 = arith.negf %354 : vector<2x32xf32>
      %356 = math.exp %355 : vector<2x32xf32>
      %cst_93 = arith.constant 1.000000e+00 : f32
      %357 = vector.broadcast %cst_93 : f32 to vector<2x32xf32>
      %358 = arith.addf %357, %356 : vector<2x32xf32>
      %359 = arith.divf %357, %358 : vector<2x32xf32>
      %360 = vector.extract_strided_slice %347 {offsets = [0, 64], sizes = [2, 32], strides = [1, 1]} : vector<2x128xf32> to vector<2x32xf32>
      %361 = math.tanh %360 : vector<2x32xf32>
      %362 = vector.extract_strided_slice %347 {offsets = [0, 96], sizes = [2, 32], strides = [1, 1]} : vector<2x128xf32> to vector<2x32xf32>
      %363 = arith.negf %362 : vector<2x32xf32>
      %364 = math.exp %363 : vector<2x32xf32>
      %cst_94 = arith.constant 1.000000e+00 : f32
      %365 = vector.broadcast %cst_94 : f32 to vector<2x32xf32>
      %366 = arith.addf %365, %364 : vector<2x32xf32>
      %367 = arith.divf %365, %366 : vector<2x32xf32>
      %368 = arith.mulf %359, %333 : vector<2x32xf32>
      %369 = arith.mulf %353, %361 : vector<2x32xf32>
      %370 = arith.addf %368, %369 : vector<2x32xf32>
      %371 = math.tanh %370 : vector<2x32xf32>
      %372 = arith.mulf %367, %371 : vector<2x32xf32>
      %373 = vector.extract_strided_slice %17 {offsets = [0, 0], sizes = [2, 1], strides = [1, 1]} : vector<2x8xi1> to vector<2x1xi1>
      %374 = vector.shape_cast %373 : vector<2x1xi1> to vector<2x1xi1>
      %375 = vector.broadcast %374 : vector<2x1xi1> to vector<2x32xi1>
      %376 = arith.select %375, %372, %330 : vector<2x32xi1>, vector<2x32xf32>
      %377 = vector.shape_cast %373 : vector<2x1xi1> to vector<2x1xi1>
      %378 = vector.broadcast %377 : vector<2x1xi1> to vector<2x32xi1>
      %379 = arith.select %378, %370, %333 : vector<2x32xi1>, vector<2x32xf32>
      %cst_95 = arith.constant 0.000000e+00 : f32
      %380 = vector.shape_cast %373 : vector<2x1xi1> to vector<2x1xi1>
      %381 = vector.broadcast %380 : vector<2x1xi1> to vector<2x32xi1>
      %382 = vector.broadcast %cst_95 : f32 to vector<2x32xf32>
      %383 = arith.select %381, %372, %382 : vector<2x32xi1>, vector<2x32xf32>
      %384 = arith.truncf %383 : vector<2x32xf32> to vector<2x32xbf16>
      %c0_96 = arith.constant 0 : index
      %c0_97 = arith.constant 0 : index
      %c0_98 = arith.constant 0 : index
      %c0_99 = arith.constant 0 : index
      %385 = vector.load %arg5[%c0_96, %c0_97, %c0_98, %c0_99] : memref<1x8x2x32xbf16, #tpu.memory_space<vmem>>, vector<1x1x2x32xbf16>
      %386 = vector.shape_cast %385 : vector<1x1x2x32xbf16> to vector<2x32xbf16>
      %387 = vector.shape_cast %384 : vector<2x32xbf16> to vector<1x1x2x32xbf16>
      tpu.vector_store %arg5[%c0_96, %c0_97, %c0_98, %c0_99], %387 {strides = array<i32>} : memref<1x8x2x32xbf16, #tpu.memory_space<vmem>>, vector<1x1x2x32xbf16>,
      %c0_100 = arith.constant 0 : index
      %c0_101 = arith.constant 0 : index
      %388 = vector.load %arg6[%c0_100, %c0_101] : memref<2x32xf32, #tpu.memory_space<vmem>>, vector<2x32xf32>
      tpu.vector_store %arg6[%c0_100, %c0_101], %376 {strides = array<i32>} : memref<2x32xf32, #tpu.memory_space<vmem>>, vector<2x32xf32>,
      %c0_102 = arith.constant 0 : index
      %c0_103 = arith.constant 0 : index
      %389 = vector.load %arg7[%c0_102, %c0_103] : memref<2x32xf32, #tpu.memory_space<vmem>>, vector<2x32xf32>
      tpu.vector_store %arg7[%c0_102, %c0_103], %379 {strides = array<i32>} : memref<2x32xf32, #tpu.memory_space<vmem>>, vector<2x32xf32>,
    } else {
    }
    return
  }
  func.func @transform_0(%arg0: i32, %arg1: i32) -> (i32, i32) {
    %c0_i32 = arith.constant 0 : i32
    %c0_i32_0 = arith.constant 0 : i32
    %c0_i32_1 = arith.constant 0 : i32
    return %c0_i32, %c0_i32_0 : i32, i32
  }
  func.func @transform_1(%arg0: i32, %arg1: i32) -> (i32, i32, i32) {
    %c0_i32 = arith.constant 0 : i32
    %0 = arith.muli %arg0, %c0_i32 : i32
    %c2_i32 = arith.constant 2 : i32
    %1 = arith.muli %c2_i32, %arg0 : i32
    %c1_i32 = arith.constant 1 : i32
    %2 = arith.subi %c1_i32, %1 : i32
    %3 = arith.muli %2, %arg1 : i32
    %4 = arith.addi %0, %3 : i32
    %c0_i32_0 = arith.constant 0 : i32
    %c0_i32_1 = arith.constant 0 : i32
    return %4, %c0_i32_0, %arg0 : i32, i32, i32
  }
  func.func @transform_2(%arg0: i32, %arg1: i32) -> (i32, i32) {
    %c0_i32 = arith.constant 0 : i32
    %c0_i32_0 = arith.constant 0 : i32
    return %c0_i32, %arg0 : i32, i32
  }
  func.func @transform_3(%arg0: i32, %arg1: i32) -> (i32, i32, i32, i32) {
    %c0_i32 = arith.constant 0 : i32
    %0 = arith.muli %arg0, %c0_i32 : i32
    %c2_i32 = arith.constant 2 : i32
    %1 = arith.muli %c2_i32, %arg0 : i32
    %c1_i32 = arith.constant 1 : i32
    %2 = arith.subi %c1_i32, %1 : i32
    %3 = arith.muli %2, %arg1 : i32
    %4 = arith.addi %0, %3 : i32
    %c0_i32_0 = arith.constant 0 : i32
    %c0_i32_1 = arith.constant 0 : i32
    %c0_i32_2 = arith.constant 0 : i32
    return %arg0, %4, %c0_i32_0, %c0_i32_1 : i32, i32, i32, i32
  }
}

</mosaic_0001>

<bundles_post_ra>
// kernel: my_lstm_forward.5
= control target key start
LH: loop header
LB: loop body
LE: loop exit
PB: predicated region body
PF: predicated region fallthrough
CT: control target
= control target key end

     0   :  { %v124_v1 = vmov 0   ;;  %vm46_vm0 = vcmask 130048   ;;  %v21_v4 = vlaneseq  ;;  %s163_s1 = inlined_call_operand.vmem [shape: bf16[16,256], index: 1, kind: input, shape index: {}]   ;;  %s164_s0 = inlined_call_operand.vmem [shape: bf16[16,16], index: 0, kind: input, shape index: {}]   ;;  %s165_s2 = inlined_call_operand.vmem [shape: f32[1,256], index: 2, kind: input, shape index: {}]   ;;  %s166_s3 = inlined_call_operand.vmem [shape: bf16[16,256], index: 3, kind: output, shape index: {}]  }
   0x1   :  { %v120_v0 = vld [vmem:[%s163_s1 + $0x4] ss:$8 sps:$4 sm:$0xff]   ;;  %82 = vmatprep.mubr.bf16.mxu0 %v124_v1  ;;  %v122_v2 = vld [vmem:[%s163_s1] ss:$8 sps:$4 sm:$0xff]  }
   0x2   :  { %50 = vmatprep.subr.bf16.mxu0 %v120_v0  ;;  %v123_v3 = vld [vmem:[%s164_s0] sm:$0xff]   ;;  %v22_v5 = vshrl.u32 %v21_v4, 7 }
   0x3   :  { %51 = vmatpush1.bf16.msra.mxu0 %v122_v2  ;;  %v19_v7 = vld [vmem:[%s165_s2] sm:$0x3] }
   0x4   :  { %v23_v6 = vsub.s32 0, %v22_v5  ;;  %v27_v8 = vsub.s32 1, %v22_v5 }
   0x6   :  { %114 = vmatmul.mubr.msk.bf16.vlgmr.msra.gmra.mrb[0].mxu0 %vm46_vm0, %v123_v3  ;;  %v24_v9 = vrot.slane %v19_v7, %v23_v6  ;;  %v28_v10 = vrot.slane %v19_v7, %v27_v8 }
  0xd9   :  { %v84_v11 = vpop.f32.mrb[0].mxu0 }
  0xda   :  { %v85_v12 = vadd.f32 %v84_v11, %v24_v9  ;;  %v86_v13 = vpop.f32.mrb[1].mxu0 }
  0xdb   :  { %v87_v14 = vadd.f32 %v86_v13, %v28_v10  ;;  %v88_v15 = vpop.f32.mrb[2].mxu0 }
  0xdc   :  { %v89_v16 = vadd.f32 %v88_v15, %v24_v9  ;;  %v90_v17 = vpop.f32.mrb[3].mxu0 }
  0xdd   :  { %v117_v18 = vpack.c.bf16 %v87_v14, %v85_v12  ;;  %v91_v19 = vadd.f32 %v90_v17, %v28_v10 }
  0xdf   :  { %105 = vst [vmem:[%s166_s3] sm:$0xff] %v117_v18  ;;  %v118_v20 = vpack.c.bf16 %v91_v19, %v89_v16 }
  0xe1   :  { %106 = vst [vmem:[%s166_s3 + $0x8] sm:$0xff] %v118_v20 }

// kernel: my_lstm_forward.7
= control target key start
LH: loop header
LB: loop body
LE: loop exit
PB: predicated region body
PF: predicated region fallthrough
CT: control target
= control target key end

     0   :  { %v257_v1 = vmov 0   ;;  %vm64_vm0 = vcmask 261120   ;;  %v184_v11 = vlaneseq  ;;  %s327_s3 = inlined_call_operand.vmem [shape: bf16[64,256], index: 3, kind: input, shape index: {}, may-alias: {2,3}]   ;;  %s328_s2 = inlined_call_operand.vmem [shape: bf16[64,256], index: 2, kind: input, shape index: {}, may-alias: {2,3}]   ;;  %s329_s1 = inlined_call_operand.vmem [shape: bf16[2,16,32], index: 1, kind: input, shape index: {}, may-alias: {0,1}]   ;;  %s330_s0 = inlined_call_operand.vmem [shape: bf16[2,16,32], index: 0, kind: input, shape index: {}, may-alias: {0,1}]   ;;  %s331_s4 = inlined_call_operand.vmem [shape: f32[1,256], index: 4, kind: input, shape index: {}]   ;;  %s332_s5 = inlined_call_operand.vmem [shape: bf16[16,256], index: 5, kind: output, shape index: {}]  }
   0x1   :  { %v243_v0 = vld [vmem:[%s327_s3 + $0x24] ss:$8 sps:$4 sm:$0xff]   ;;  %100 = vmatprep.mubr.bf16.mxu1 %v257_v1  ;;  %171 = vmatprep.mubr.bf16.mxu0 %v257_v1  ;;  %v247_v3 = vld [vmem:[%s327_s3 + $0x20] ss:$8 sps:$4 sm:$0xff]   ;;  %v249_v5 = vld [vmem:[%s327_s3 + $0x34] ss:$8 sps:$4 sm:$0xff]  }
   0x2   :  { %v245_v2 = vld [vmem:[%s328_s2 + $0x4] ss:$8 sps:$4 sm:$0xff]   ;;  %68 = vmatprep.subr.bf16.mxu1 %v243_v0  ;;  %v248_v4 = vld [vmem:[%s328_s2] ss:$8 sps:$4 sm:$0xff]   ;;  %v251_v6 = vld [vmem:[%s328_s2 + $0x14] ss:$8 sps:$4 sm:$0xff]  }
   0x3   :  { %139 = vmatprep.subr.bf16.mxu0 %v245_v2  ;;  %69 = vmatpush1.bf16.msra.mxu1 %v247_v3  ;;  %v253_v7 = vld [vmem:[%s327_s3 + $0x30] ss:$8 sps:$4 sm:$0xff]   ;;  %v255_v9 = vld [vmem:[%s329_s1 + $0x8] sm:$0xff]   ;;  %v256_v10 = vld [vmem:[%s330_s0] sm:$0xff]   ;;  %v185_v12 = vshrl.u32 %v184_v11, 7 }
   0x4   :  { %140 = vmatpush1.bf16.msra.mxu0 %v248_v4  ;;  %70 = vmatprep.subr.bf16.mxu1 %v249_v5  ;;  %v254_v8 = vld [vmem:[%s328_s2 + $0x10] ss:$8 sps:$4 sm:$0xff]   ;;  %v182_v14 = vld [vmem:[%s331_s4] sm:$0x3] }
   0x5   :  { %141 = vmatprep.subr.bf16.mxu0 %v251_v6  ;;  %v186_v13 = vsub.s32 0, %v185_v12  ;;  %v190_v15 = vsub.s32 1, %v185_v12 }
   0x7   :  { %71 = vmatpush1.bf16.msra.mxu1 %v253_v7  ;;  %v187_v16 = vrot.slane %v182_v14, %v186_v13  ;;  %v191_v19 = vrot.slane %v182_v14, %v190_v15 }
   0x8   :  { %142 = vmatpush1.bf16.msra.mxu0 %v254_v8 }
   0xa   :  { %227 = vmatmul.mubr.msk.bf16.vlgmr.msra.gmra.mrb[0].mxu1 %vm64_vm0, %v255_v9 }
   0xb   :  { %233 = vmatmul.mubr.msk.bf16.vlgmr.msra.gmra.mrb[0].mxu0 %vm64_vm0, %v256_v10 }
  0xdd   :  { %v102_v17 = vpop.f32.mrb[0].mxu1 }
  0xde   :  { %v173_v18 = vpop.f32.mrb[0].mxu0  ;;  %v104_v21 = vpop.f32.mrb[1].mxu1 }
  0xdf   :  { %v174_v20 = vadd.f32 %v173_v18, %v102_v17  ;;  %v175_v22 = vpop.f32.mrb[1].mxu0  ;;  %v106_v24 = vpop.f32.mrb[2].mxu1 }
  0xe0   :  { %v176_v23 = vadd.f32 %v175_v22, %v104_v21  ;;  %v177_v25 = vpop.f32.mrb[2].mxu0  ;;  %v108_v28 = vpop.f32.mrb[3].mxu1 }
  0xe1   :  { %v194_v26 = vadd.f32 %v187_v16, %v174_v20  ;;  %v178_v27 = vadd.f32 %v177_v25, %v106_v24  ;;  %v179_v29 = vpop.f32.mrb[3].mxu0 }
  0xe2   :  { %v195_v30 = vadd.f32 %v191_v19, %v176_v23  ;;  %v180_v31 = vadd.f32 %v179_v29, %v108_v28 }
  0xe3   :  { %v196_v32 = vadd.f32 %v187_v16, %v178_v27 }
  0xe4   :  { %v236_v33 = vpack.c.bf16 %v195_v30, %v194_v26  ;;  %v197_v34 = vadd.f32 %v191_v19, %v180_v31 }
  0xe6   :  { %210 = vst [vmem:[%s332_s5] sm:$0xff] %v236_v33  ;;  %v237_v35 = vpack.c.bf16 %v197_v34, %v196_v32 }
  0xe8   :  { %211 = vst [vmem:[%s332_s5 + $0x8] sm:$0xff] %v237_v35 }

// kernel: my_lstm_forward.9
= control target key start
LH: loop header
LB: loop body
LE: loop exit
PB: predicated region body
PF: predicated region fallthrough
CT: control target
= control target key end

     0   :  { %v459_v1 = vmov 0.0   ;;  %vm460_vm0 = vmmov 0   ;;  %vm63_vm1 = vcmask 261120   ;;  %s569_s0 = inlined_call_operand.vmem [shape: bf16[2,16,32], index: 0, kind: input, shape index: {}, may-alias: {0,1}]   ;;  %s570_s1 = inlined_call_operand.vmem [shape: bf16[2,16,32], index: 1, kind: input, shape index: {}, may-alias: {0,1}]   ;;  %s571_s2 = inlined_call_operand.vmem [shape: bf16[64,128], index: 2, kind: input, shape index: {}, may-alias: {2,3}]   ;;  %s572_s3 = inlined_call_operand.vmem [shape: bf16[64,128], index: 3, kind: input, shape index: {}, may-alias: {2,3}]   ;;  %s573_s4 = inlined_call_operand.vmem [shape: f32[1,128], index: 4, kind: input, shape index: {}]   ;;  %s574_s5 = inlined_call_operand.vmem [shape: bf16[128,128], index: 5, kind: input, shape index: {}]   ;;  %s575_s6 = inlined_call_operand.vmem [shape: f32[1,128], index: 6, kind: input, shape index: {}]   ;;  %s576_s7 = inlined_call_operand.hbm [shape: f32[16,128], index: 7, kind: output, shape index: {}]  }
   0x1   :  { %v413_v0 = vld [vmem:[%s572_s3 + $0x10] sm:$0xff]   ;;  %372 = vmatprep.subr.bf16.mxu1 %v459_v1  ;;  %388 = vmatprep.subr.bf16.mxu0 %v459_v1  ;;  %v414_v2 = vld [vmem:[%s572_s3 + $0x18] sm:$0xff]   ;;  %v415_v3 = vld [vmem:[%s570_s1 + $0x8] sm:$0xff]  }
   0x2   :  { %373 = vmatpush3.bf16.msra.mxu1 %v413_v0  ;;  %376 = vmatprep.mubr.msk.bf16.mxu1 %vm460_vm0, %v459_v1  ;;  %v416_v4 = vld [vmem:[%s571_s2] sm:$0xff]   ;;  %v417_v6 = vld [vmem:[%s571_s2 + $0x8] sm:$0xff]   ;;  %v421_v8 = vld [vmem:[%s574_s5 + $0x10] sm:$0xff]  }
   0x3   :  { %374 = vmatprep.subr.bf16.mxu1 %v459_v1  ;;  %404 = vmatprep.mubr.msk.bf16.mxu0 %vm460_vm0, %v459_v1  ;;  %v419_v5 = vld [vmem:[%s574_s5] sm:$0xff]   ;;  %v420_v7 = vld [vmem:[%s574_s5 + $0x8] sm:$0xff]  }
   0x4   :  { %389 = vmatpush3.bf16.msra.mxu0 %v419_v5 }
   0x5   :  { %390 = vmatprep.subr.bf16.mxu0 %v459_v1 }
   0x6   :  { %375 = vmatpush3.bf16.msra.mxu1 %v414_v2 }
   0x7   :  { %380 = vmatprep.subr.bf16.mxu1 %v459_v1 }
   0x8   :  { %391 = vmatpush3.bf16.msra.mxu0 %v420_v7 }
   0x9   :  { %377 = vmatmul.mubr.msk.bf16.vlgmr.msra.gmra.mrb[0].mxu1 %vm63_vm1, %v415_v3 }
   0xa   :  { %381 = vmatpush3.bf16.msra.mxu1 %v416_v4  ;;  %384 = vmatprep.mubr.msk.bf16.mxu1 %vm460_vm0, %v459_v1 }
   0xb   :  { %382 = vmatprep.subr.bf16.mxu1 %v459_v1 }
   0xc   :  { %12 = vsyncpa [#allocation3], 0  ;;  %v418_v9 = vld [vmem:[%s569_s0] sm:$0xff]   ;;  %392 = vmatprep.subr.bf16.mxu0 %v459_v1  ;;  %v422_v10 = vld [vmem:[%s574_s5 + $0x18] sm:$0xff]  }
   0xd   :  { %393 = vmatpush3.bf16.msra.mxu0 %v421_v8  ;;  %v423_v11 = vld [vmem:[%s574_s5 + $0x20] sm:$0xff]   ;;  %v424_v12 = vld [vmem:[%s574_s5 + $0x28] sm:$0xff]   ;;  %v425_v13 = vld [vmem:[%s574_s5 + $0x30] sm:$0xff]  }
   0xe   :  { %383 = vmatpush3.bf16.msra.mxu1 %v417_v6  ;;  %394 = vmatprep.subr.bf16.mxu0 %v459_v1  ;;  %v426_v14 = vld [vmem:[%s574_s5 + $0x38] sm:$0xff]   ;;  %v347_v20 = vld [vmem:[%s573_s4] ss:$0 sm:$0xff]  ;;  %s461_s4 = smov [#allocation2]  }
   0xf   :  { %v348_v31 = vld [vmem:[%s575_s6] ss:$0 sm:$0xff]  ;;  %s322_s6 = sshll.u32 %s461_s4, 4  ;;  %s323_s6 = int_to_ptr.vmem [resolvable:$true] %s322_s6 }
  0x10   :  { %s435_s28 = scalar_lea.vmem %s323_s6, 256  ;;  %p440_p1 = scmp.lt.s32.totalorder %s323_s6, %s323_s6 }
  0x11   :  { %385 = vmatmul.mubr.msk.bf16.vlgmr.msra.gmra.mrb[4].mxu1 %vm63_vm1, %v418_v9  ;;  %395 = vmatpush3.bf16.msra.mxu0 %v422_v10  ;;  %p436_p0 = scmp.ne.s32.totalorder %s323_s6, %s435_s28  ;;  %p441_p2 = scmp.lt.s32.totalorder %s435_s28, %s435_s28 }
  0x12   :  { %396 = vmatprep.subr.bf16.mxu0 %v459_v1 }
  0x13   :  { %p442_p3 = por %p441_p2, %p440_p1 }
  0x15   :  { %397 = vmatpush3.bf16.msra.mxu0 %v423_v11  ;;  %p443_p4 = pnand %p442_p3, %p436_p0 }
  0x16   :  { %398 = vmatprep.subr.bf16.mxu0 %v459_v1 }
  0x19   :  { %399 = vmatpush3.bf16.msra.mxu0 %v424_v12 }
  0x1a   :  { %400 = vmatprep.subr.bf16.mxu0 %v459_v1 }
  0x1d   :  { %401 = vmatpush3.bf16.msra.mxu0 %v425_v13 }
  0x1e   :  { %402 = vmatprep.subr.bf16.mxu0 %v459_v1 }
  0x21   :  { %403 = vmatpush3.bf16.msra.mxu0 %v426_v14 }
  0xdc   :  { %v101_v15 = vpop.f32.mrb[0].mxu1 }
  0xdd   :  { %v378_v16 = vpop.f32.mrb[1].mxu1 }
  0xde   :  { %v104_v17 = vpop.f32.mrb[2].mxu1 }
  0xdf   :  { %v379_v18 = vpop.f32.mrb[3].mxu1 }
  0xe4   :  { %v162_v19 = vpop.f32.mrb[4].mxu1 }
  0xe5   :  { %v163_v21 = vadd.f32 %v162_v19, %v101_v15  ;;  %v386_v22 = vpop.f32.mrb[5].mxu1 }
  0xe6   :  { %v165_v23 = vpop.f32.mrb[6].mxu1 }
  0xe7   :  { %v176_v24 = vadd.f32 %v347_v20, %v163_v21  ;;  %v166_v25 = vadd.f32 %v165_v23, %v104_v17  ;;  %v387_v26 = vpop.f32.mrb[7].mxu1 }
  0xe9   :  { %v177_v27 = vadd.f32 %v347_v20, %v166_v25  ;;  %v178_v28 = vmax.f32 %v176_v24, 0.0 }
  0xeb   :  { %v179_v29 = vmax.f32 %v177_v27, 0.0 }
  0xed   :  { %v180_v30 = vpack.c.bf16 %v179_v29, %v178_v28 }
  0xef   :  { %405 = vmatmul.mubr.bf16.vlgmr.msra.gmra.mrb[0].mxu0 %v180_v30 }
 0x1c2   :  { %v286_v32 = vpop.f32.mrb[0].mxu0 }
 0x1c3   :  { %v287_v33 = vadd.f32 %v348_v31, %v286_v32  ;;  %v406_v34 = vpop.f32.mrb[1].mxu0 }
 0x1c4   :  { %v289_v35 = vpop.f32.mrb[2].mxu0 }
 0x1c5   :  { %293 = vmax.xlane.f32.xlu0 %v287_v33  ;;  %v407_v36 = vpop.f32.mrb[3].mxu0  ;;  %v290_v37 = vadd.f32 %v348_v31, %v289_v35 }
 0x1c9   :  { %295 = vmax.xlane.f32.xlu0 %v290_v37 }
 0x252   :  { %v294_v38 = vpop.xlane.xlu0 %293 }
 0x253   :  { %v297_v39 = vsub.f32 %v287_v33, %v294_v38 }
 0x255   :  { %v299_v40 = vmul.f32 1.442695, %v297_v39 }
 0x256   :  { %v296_v41 = vpop.xlane.xlu0 %295 }
 0x257   :  { %v298_v42 = vsub.f32 %v290_v37, %v296_v41  ;;  %427 = vpow2.f32 %v299_v40 }
 0x259   :  { %v301_v43 = vmul.f32 1.442695, %v298_v42 }
 0x25b   :  { %429 = vpow2.f32 %v301_v43 }
 0x261   :  { %v428_v44 = vpop.eup %427 }
 0x262   :  { %303 = vadd.xlane.f32.xlu1 %v428_v44 }
 0x265   :  { %v430_v45 = vpop.eup %429 }
 0x266   :  { %305 = vadd.xlane.f32.xlu1 %v430_v45 }
 0x2ef   :  { %v304_v46 = vpop.xlane.xlu1 %303 }
 0x2f0   :  { %431 = vlog2.f32 %v304_v46 }
 0x2f3   :  { %v306_v47 = vpop.xlane.xlu1 %305 }
 0x2f4   :  { %433 = vlog2.f32 %v306_v47 }
 0x2fa   :  { %v432_v48 = vpop.eup %431 }
 0x2fb   :  { %v308_v49 = vmul.f32 0.6931472, %v432_v48 }
 0x2fd   :  { %v311_v50 = vadd.f32 %v308_v49, %v294_v38 }
 0x2fe   :  { %v434_v51 = vpop.eup %433 }
 0x2ff   :  { %v313_v52 = vsub.f32 %v287_v33, %v311_v50  ;;  %v310_v53 = vmul.f32 0.6931472, %v434_v51 }
 0x301   :  { %315 = vst [vmem:[#allocation2] sm:$0xff] %v313_v52  ;;  %v312_v54 = vadd.f32 %v310_v53, %v296_v41 }
 0x303   :  { %v314_v55 = vsub.f32 %v290_v37, %v312_v54 }
 0x305   :  { %316 = vst [vmem:[#allocation2 + $0x8] sm:$0xff] %v314_v55 }
 0x306   :  { %446 = shalt.err (!%p443_p4)
}
 0x307   :  { %s447_s8 = scalar_lea.hbm %s576_s7, 256 }
 0x308   :  { %p448_p5 = scmp.ne.s32.totalorder %s576_s7, %s447_s8  ;;  %p451_p6 = scmp.lt.u32.totalorder %s447_s8, %s576_s7 }
 0x30a   :  { %p453_p7 = pnand %p451_p6, %p448_p5 }
 0x30c   :  { %456 = shalt.err (!%p453_p7)
}
 0x30d   :  { %s462_s12 = smov 128   ;;  %s463_s13 = smov 8  }
 0x30e   :  { %328 = dma.vmem_to_hbm [thread:$0]  %s323_s6, 256, %s576_s7, [#allocation3], %s462_s12, %s462_s12, %s463_s13  }
 0x30f   :  { %457 = dma.done.wait [#allocation3], 256  }
 0x310   :  { %458 = vsyncadd [#allocation3], 4294967040 }
 0x311   :  { %332 = vsyncpa [#allocation3], 1 }

// kernel: my_lstm_forward.6
= control target key start
LH: loop header
LB: loop body
LE: loop exit
PB: predicated region body
PF: predicated region fallthrough
CT: control target
= control target key end

     0   :  { %s2955_s12 = smov 0   ;;  %s2957_s13 = smov 0   ;;  %s3418_s0 = inlined_call_operand.vmem [shape: s32[2,1], index: 0, kind: input, shape index: {}]   ;;  %s3419_s1 = inlined_call_operand.vmem [shape: bf16[8,2,256], index: 1, kind: input, shape index: {}]   ;;  %s3420_s2 = inlined_call_operand.vmem [shape: bf16[32,256], index: 2, kind: input, shape index: {}]   ;;  %s3421_s3 = inlined_call_operand.vmem [shape: bf16[2,8,2,32], index: 3, kind: output, shape index: {}]  }
   0x1   :  { %s2959_s14 = smov 0   ;;  %s2961_s15 = smov 0  }
   0x2   :  { %s2963_s16 = smov 0  }
   0x3 LB: > { %s25_s17 = sadd.s32 1, %s2900_s15  ;;  %p68_p1 = scmp.ne.s32.totalorder %s2892_s13, %s2888_s12  ;;  %s2904_s16 = sphi %s2963_s16, %s13_s16   ;;  %s2900_s15 = sphi %s2961_s15, %s3426_s15   ;;  %s2896_s14 = sphi %s2959_s14, %s3425_s14   ;;  %s2892_s13 = sphi %s2957_s13, %s3424_s13   ;;  %s2888_s12 = sphi %s2955_s12, %s3423_s12  }
   0x4   : > { %p27_p0 = scmp.ge.s32.totalorder %s25_s17, 2  ;;  %p69_p2 = scmp.eq.s32.totalorder %s2904_s16, 0 }
   0x5   : > { %s61_s20 = sadd.s32 1, %s2892_s13  ;;  %p2398_p5 = scmp.ge.s32.totalorder %s2904_s16, 2 }
   0x6   : > { %s3428_s17 = smov (%p27_p0, %s25_s17), 0  ;;  %p2986_p3 = por %p69_p2, %p68_p1 }
   0x7   : > { %s57_s19 = ssub.s32 %s2900_s15, %s3428_s17  ;;  %157 = sbr.rel (%p2398_p5) target bundleno = 29 (0x1d), region = 20 }
   0x8   : > { %p59_p4 = scmp.eq.s32.totalorder %s57_s19, 0 }
   0xa   : > { %s2994_s21 = scalar_select %p59_p4, %s2892_s13, %s61_s20  }
   0xe   : > { %160 = sbr.rel (!%p2986_p3) target bundleno = 22 (0x16), region = 24  ;;  %s162_s22 = sand.u32 (%p2986_p3), 1, %s2892_s13  }
   0xf   : > { %s171_s25 = scalar_lea.vmem (%p2986_p3), %s3419_s1, %s2900_s15  ;;  %s2399_s26 = sshll.u32 (%p2986_p3), %s162_s22, 3 }
  0x10   : > { %v187_v0 = vld [vmem:[%s171_s25] sm:$0x1] (%p2986_p3)  ;;  %v189_v1 = vld [vmem:[%s171_s25 + $0x2] sm:$0x1] (%p2986_p3)  ;;  %v191_v2 = vld [vmem:[%s171_s25 + $0x4] sm:$0x1] (%p2986_p3) }
  0x11   : > { %v193_v3 = vld [vmem:[%s171_s25 + $0x6] sm:$0x1] (%p2986_p3)  ;;  %s164_s27 = scalar_lea.vmem (%p2986_p3), [#allocation4], %s2399_s26  ;;  %v195_v4 = vld [vmem:[%s171_s25 + $0x8] sm:$0x1] (%p2986_p3) }
  0x12   : > { %188 = vst [vmem:[%s164_s27] sm:$0x1] (%p2986_p3), %v187_v0  ;;  %190 = vst [vmem:[%s164_s27 + $0x1] sm:$0x1] (%p2986_p3), %v189_v1  ;;  %v197_v5 = vld [vmem:[%s171_s25 + $0xa] sm:$0x1] (%p2986_p3) }
  0x13   : > { %192 = vst [vmem:[%s164_s27 + $0x2] sm:$0x1] (%p2986_p3), %v191_v2  ;;  %194 = vst [vmem:[%s164_s27 + $0x3] sm:$0x1] (%p2986_p3), %v193_v3  ;;  %v199_v6 = vld [vmem:[%s171_s25 + $0xc] sm:$0x1] (%p2986_p3) }
  0x14   : > { %196 = vst [vmem:[%s164_s27 + $0x4] sm:$0x1] (%p2986_p3), %v195_v4  ;;  %198 = vst [vmem:[%s164_s27 + $0x5] sm:$0x1] (%p2986_p3), %v197_v5  ;;  %v201_v7 = vld [vmem:[%s171_s25 + $0xe] sm:$0x1] (%p2986_p3) }
  0x15   : > { %200 = vst [vmem:[%s164_s27 + $0x6] sm:$0x1] %v199_v6  ;;  %202 = vst [vmem:[%s164_s27 + $0x7] sm:$0x1] %v201_v7 }
  0x16 PF: > { %241 = sbr.rel (!%p2986_p3) target bundleno = 29 (0x1d), region = 65  ;;  %s243_s28 = sand.u32 (%p2986_p3), 1, %s2892_s13  }
  0x17   : > { %s2402_s29 = sshll.u32 (%p2986_p3), %s2900_s15, 2  ;;  %s2401_s30 = sshll.u32 (%p2986_p3), %s243_s28, 4 }
  0x18   : > { %s247_s6 = scalar_lea.vmem (%p2986_p3), %s3420_s2, %s2402_s29  ;;  %s245_s7 = scalar_lea.vmem (%p2986_p3), [#allocation5], %s2401_s30 }
  0x19   : > { %v263_v8 = vld [vmem:[%s247_s6] sm:$0xf] (%p2986_p3)  ;;  %v265_v9 = vld [vmem:[%s247_s6 + $0x8] sm:$0xf] (%p2986_p3)  ;;  %v267_v10 = vld [vmem:[%s247_s6 + $0x10] sm:$0xf] (%p2986_p3) }
  0x1a   : > { %264 = vst [vmem:[%s245_s7] sm:$0xf] (%p2986_p3), %v263_v8  ;;  %266 = vst [vmem:[%s245_s7 + $0x4] sm:$0xf] (%p2986_p3), %v265_v9  ;;  %v269_v11 = vld [vmem:[%s247_s6 + $0x18] sm:$0xf] (%p2986_p3) }
  0x1b   : > { %268 = vst [vmem:[%s245_s7 + $0x8] sm:$0xf] (%p2986_p3), %v267_v10  ;;  %270 = vst [vmem:[%s245_s7 + $0xc] sm:$0xf] (%p2986_p3), %v269_v11 }
  0x1d PF: > { %p2403_p6 = scmp.ge.s32.totalorder %s2904_s16, 1  ;;  %p300_p7 = scmp.lt.s32.totalorder %s2904_s16, 3 }
  0x1f   : > { %p301_p8 = pnand %p2403_p6, %p300_p7 }
  0x20   : > { %s307_s8 = sand.u32 (!%p301_p8), 1, %s2888_s12   ;;  %p355_p9 = scmp.lt.s32.totalorder (!%p301_p8), %s2896_s14, 1  ;;  %vm371_vm0 = vcmask (!%p301_p8), 254976   ;;  %v3018_v12 = vld [vmem:[%s3418_s0] sm:$0x3] (!%p301_p8)  ;;  %v2906_v13 = vmov (!%p301_p8), 0.0  }
  0x21   : > { %304 = sbr.rel (%p301_p8) target bundleno = 11378 (0x2c72), region = 106  ;;  %s2404_s11 = sshll.u32 (!%p301_p8), %s307_s8, 3  ;;  %372 = vst.msk [vmem:[#allocation2] sm:$0x3] (!%p301_p8), %vm371_vm0, %v2906_v13  ;;  %373 = vst.msk [vmem:[#allocation3] sm:$0x3] (!%p301_p8), %vm371_vm0, %v2906_v13 }
  0x22   : > { %s2405_s18 = sshll.u32 (!%p301_p8), %s307_s8, 4  ;;  %s3036_s25 = scalar_lea.vmem (!%p301_p8), [#allocation4], %s2404_s11 }
  0x23   : > { %s316_s20 = scalar_lea.vmem (!%p301_p8), [#allocation5], %s2405_s18  ;;  %p2408_p10 = scmp.ne.s32.totalorder (!%p301_p8), %s2896_s14, 0 }
  0x24   : > { %v3023_v14 = vld [vmem:[%s316_s20] sm:$0xf] (!%p301_p8)  ;;  %v3025_v15 = vld [vmem:[%s316_s20 + $0x4] sm:$0xf] (!%p301_p8)  ;;  %v3027_v16 = vld [vmem:[%s316_s20 + $0x8] sm:$0xf] (!%p301_p8) }
  0x25   : > { %v3029_v17 = vld [vmem:[%s316_s20 + $0xc] sm:$0xf] (!%p301_p8) }
  0x28   : > { %s356_s19 = scalar_select %p355_p9, %s2896_s14, 1 }
  0x29   : > { %382 = sbr.rel (%p2408_p10) target bundleno = 5709 (0x164d), region = 122  ;;  %v3041_v18 = vcombine.low (!%p2408_p10), %v3023_v14, %v3025_v15  ;;  %v2907_v19 = vmov (!%p2408_p10), 0.0   ;;  %vm2908_vm1 = vmmov (!%p2408_p10), 0   ;;  %v3049_v20 = vcombine.low (!%p2408_p10), %v3027_v16, %v3029_v17  ;;  %v3051_v21 = vld [vmem:[#allocation2] sm:$0x3] (!%p2408_p10)  ;;  %s2911_s26 = smov (!%p2408_p10), 64  }
  0x2a   : > { %s2407_s12 = sshll.u32 %s356_s19, 3  ;;  %2524 = vmatprep.subr.bf16.mxu0 (!%p2408_p10), %v2907_v19  ;;  %2528 = vmatprep.mubr.msk.bf16.mxu0 (!%p2408_p10), %vm2908_vm1, %v2907_v19  ;;  %v396_v22 = vpack.c.bf16 (!%p2408_p10), %v3051_v21, %v3051_v21  ;;  %vm409_vm2 = vcmask (!%p2408_p10), 261120   ;;  %v394_v23 = vld [vmem:[%s3036_s25] sm:$0x1] (!%p2408_p10)  ;;  %v384_v29 = vlaneseq (!%p2408_p10)  ;;  %v2909_v30 = vmov (!%p2408_p10), 1983009808  }
  0x2b   : > { %s3034_s24 = scalar_lea.vmem %s3421_s3, %s2407_s12  ;;  %2525 = vmatpush3.bf16.msra.mxu0 (!%p2408_p10), %v3041_v18  ;;  %2532 = vmatprep.subr.bf16.mxu1 (!%p2408_p10), %v2907_v19  ;;  %v395_v24 = vunpack.c.l.bf16 (!%p2408_p10), %v394_v23  ;;  %v463_v31 = vunpack.c.l.s4 (!%p2408_p10), %v2909_v30  ;;  %v2910_v35 = vmov (!%p2408_p10), 0   ;;  %v393_v37 = vld [vmem:[#allocation3] sm:$0x3] (!%p2408_p10)  ;;  %s2912_s27 = smov (!%p2408_p10), 32   ;;  %vm520_vm5 = vcmask (!%p2408_p10), 253952  }
  0x2c   : > { %2526 = vmatprep.subr.bf16.mxu0 (!%p2408_p10), %v2907_v19  ;;  %2533 = vmatpush3.bf16.msra.mxu1 (!%p2408_p10), %v3041_v18  ;;  %v466_v34 = vshrl.u32 (!%p2408_p10), %v384_v29, 7  ;;  %v385_v51 = vand.u32 (!%p2408_p10), 127, %v384_v29  ;;  %s2913_s28 = smov (!%p2408_p10), 96   ;;  %v2413_v3 = vld [vmem:[%s3036_s25 + $0x1] sm:$0x1] (!%p2408_p10)  ;;  %v2914_v10 = vmov (!%p2408_p10), 1  }
  0x2d   : > { %2534 = vmatprep.subr.bf16.mxu1 (!%p2408_p10), %v2907_v19  ;;  %2536 = vmatprep.mubr.msk.bf16.mxu1 (!%p2408_p10), %vm2908_vm1, %v2907_v19  ;;  %v464_v33 = vunpack.c.0.s8 (!%p2408_p10), %v463_v31  ;;  %v524_v4 = vunpack.c.l.bf16 (!%p2408_p10), %v2413_v3 }
  0x2e   : > { %2721 = vset.pattern.permute.xlu1 (!%p2408_p10), %v2910_v35  ;;  %2722 = vset.pattern.permute.xlu0 (!%p2408_p10), %v2914_v10 }
  0x2f   : > { %2527 = vmatpush3.bf16.msra.mxu0 (!%p2408_p10), %v3049_v20  ;;  %v3073_v36 = vsub.s32 (!%p2408_p10), %v464_v33, %v466_v34 }
  0x30   : > { %2535 = vmatpush3.bf16.msra.mxu1 %v3049_v20  ;;  %2540 = vmatprep.subr.bf16.mxu0 %v2907_v19 }
  0x31   : > { %2548 = vmatprep.subr.bf16.mxu1 %v2907_v19  ;;  %v468_v39 = vrot.slane %v393_v37, %v3073_v36 }
  0x32   : > { %2529 = vmatmul.mubr.msk.bf16.vlgmr.msra.gmra.mrb[0].mxu0 %vm409_vm2, %v396_v22 }
  0x33   : > { %2541 = vmatpush3.bf16.msra.mxu0 %v3041_v18  ;;  %2544 = vmatprep.mubr.msk.bf16.mxu0 %vm2908_vm1, %v2907_v19 }
  0x34   : > { %2542 = vmatprep.subr.bf16.mxu0 %v2907_v19 }
  0x37   : > { %2543 = vmatpush3.bf16.msra.mxu0 %v3049_v20 }
  0x38   : > { %2556 = vmatprep.subr.bf16.mxu0 %v2907_v19 }
 0x105   : > { %v447_v25 = vpop.f32.mrb[0].mxu0 }
 0x106   : > { %v453_v26 = vadd.f32 %v447_v25, %v395_v24  ;;  %v2530_v27 = vpop.f32.mrb[1].mxu0 }
 0x107   : > { %v450_v28 = vpop.f32.mrb[2].mxu0 }
 0x108   : > { %2729 = vtanh.f32 %v453_v26  ;;  %v2531_v32 = vpop.f32.mrb[3].mxu0  ;;  %v2412_v40 = vmul.f32 -1.442695, %v453_v26 }
 0x10a   : > { %2731 = vpow2.f32 %v2412_v40 }
 0x112   : > { %v2730_v38 = vpop.eup %2729 }
 0x113   : > { %474 = vrot.lane.b32.xlu0 %v2730_v38, %s2911_s26 }
 0x114   : > { %v2732_v41 = vpop.eup %2731 }
 0x115   : > { %v457_v42 = vadd.f32 1.0, %v2732_v41 }
 0x117   : > { %469 = vrot.lane.b32.xlu0 %v468_v39, %s2912_s27  ;;  %2733 = vrcp.f32 %v457_v42 }
 0x121   : > { %v2734_v43 = vpop.eup %2733 }
 0x185   : > { %v475_v44 = vpop.permute.xlu0 %474 }
 0x186   : > { %v477_v45 = vmul.f32 %v2734_v43, %v475_v44 }
 0x188   : > { %479 = vrot.lane.b32.xlu1 %v477_v45, %s2912_s27  ;;  %v2417_v45 = vld [vmem:[%s3036_s25 + $0x2] sm:$0x1] }
 0x189   : > { %v470_v46 = vpop.permute.xlu0 %469 }
 0x18a   : > { %v472_v47 = vmul.f32 %v2734_v43, %v470_v46  ;;  %v639_v46 = vunpack.c.l.bf16 %v2417_v45 }
 0x18c   : > { %389 = vperm.xlu1 %2721, %v3018_v12  }
 0x1fa   : > { %v480_v48 = vpop.permute.xlu1 %479 }
 0x1fb   : > { %v482_v49 = vadd.f32 %v480_v48, %v472_v47 }
 0x1fd   : > { %2735 = vtanh.f32 %v482_v49  ;;  %v513_v54 = vrot.slane %v482_v49, %v3073_v36 }
 0x207   : > { %v2736_v50 = vpop.eup %2735 }
 0x208   : > { %485 = vrot.lane.b32.xlu0 %v2736_v50, %s2911_s26 }
 0x20b   : > { %v390_v52 = vpop.permute.xlu1 %389 }
 0x20c   : > { %vm391_vm3 = vcmp.gt.s32.totalorder %v390_v52, %v385_v51  ;;  %v2915_v52 = vmov 2  }
 0x20d   : > { %v3081_v53 = vsel %vm391_vm3, 1, %v2910_v35 }
 0x20e   : > { %491 = vperm.xlu1 %2721, %v3081_v53  }
 0x212   : > { %514 = vrot.lane.b32.xlu1 %v513_v54, %s2913_s28 }
 0x27a   : > { %v486_v55 = vpop.permute.xlu0 %485 }
 0x27b   : > { %v488_v56 = vmul.f32 %v2734_v43, %v486_v55 }
 0x27d   : > { %v501_v57 = vrot.slane %v488_v56, %v3073_v36 }
 0x27f   : > { %502 = vrot.lane.b32.xlu0 %v501_v57, %s2912_s27 }
 0x28d   : > { %v492_v58 = vpop.permute.xlu1 %491 }
 0x28e   : > { %vm493_vm4 = vcmp.eq.s32.totalorder %v492_v58, 1 }
 0x291   : > { %v515_v59 = vpop.permute.xlu1 %514 }
 0x292   : > { %v517_v60 = vsel %vm493_vm4, %v515_v59, %v393_v37 }
 0x293   : > { %v584_v61 = vrot.slane %v517_v60, %v3073_v36 }
 0x295   : > { %585 = vrot.lane.b32.xlu1 %v584_v61, %s2912_s27 }
 0x2f1   : > { %v503_v62 = vpop.permute.xlu0 %502 }
 0x2f2   : > { %v505_v63 = vsel %vm493_vm4, %v503_v62, %v3051_v21  ;;  %v518_v0 = vsel %vm493_vm4, %v503_v62, 0.0 }
 0x2f3   : > { %v519_v1 = vpack.c.bf16 %v518_v0, %v518_v0  ;;  %v525_v2 = vpack.c.bf16 %v505_v63, %v505_v63 }
 0x2f5   : > { %521 = vst.msk [vmem:[%s3034_s24] sm:$0x1] %vm520_vm5, %v519_v1  ;;  %2537 = vmatmul.mubr.msk.bf16.vlgmr.msra.gmra.mrb[0].mxu1 %vm409_vm2, %v525_v2 }
 0x2f6   : > { %2549 = vmatpush3.bf16.msra.mxu1 %v3041_v18  ;;  %2552 = vmatprep.mubr.msk.bf16.mxu1 %vm2908_vm1, %v2907_v19 }
 0x2f7   : > { %2550 = vmatprep.subr.bf16.mxu1 %v2907_v19 }
 0x2fa   : > { %2551 = vmatpush3.bf16.msra.mxu1 %v3049_v20 }
 0x2fb   : > { %2564 = vmatprep.subr.bf16.mxu1 %v2907_v19 }
 0x307   : > { %v586_v26 = vpop.permute.xlu1 %585 }
 0x3c8   : > { %v563_v5 = vpop.f32.mrb[0].mxu1 }
 0x3c9   : > { %v569_v6 = vadd.f32 %v563_v5, %v524_v4  ;;  %v2538_v7 = vpop.f32.mrb[1].mxu1 }
 0x3ca   : > { %v566_v8 = vpop.f32.mrb[2].mxu1 }
 0x3cb   : > { %2737 = vtanh.f32 %v569_v6  ;;  %v2539_v9 = vpop.f32.mrb[3].mxu1  ;;  %v2415_v13 = vmul.f32 -1.442695, %v569_v6 }
 0x3cd   : > { %2739 = vpow2.f32 %v2415_v13 }
 0x3d5   : > { %v2738_v11 = vpop.eup %2737 }
 0x3d6   : > { %590 = vrot.lane.b32.xlu0 %v2738_v11, %s2911_s26 }
 0x3d7   : > { %v2740_v21 = vpop.eup %2739 }
 0x3d8   : > { %v573_v22 = vadd.f32 1.0, %v2740_v21 }
 0x3da   : > { %2741 = vrcp.f32 %v573_v22 }
 0x3e4   : > { %v2742_v23 = vpop.eup %2741 }
 0x3e5   : > { %v588_v27 = vmul.f32 %v2742_v23, %v586_v26 }
 0x448   : > { %v591_v24 = vpop.permute.xlu0 %590 }
 0x449   : > { %v593_v25 = vmul.f32 %v2742_v23, %v591_v24 }
 0x44b   : > { %595 = vrot.lane.b32.xlu0 %v593_v25, %s2912_s27 }
 0x44f   : > { %606 = vperm.xlu0 %2722, %v3081_v53  }
 0x453   : > { %2723 = vset.pattern.permute.xlu0 %v2915_v52 }
 0x4bd   : > { %v596_v28 = vpop.permute.xlu0 %595 }
 0x4be   : > { %v598_v29 = vadd.f32 %v596_v28, %v588_v27 }
 0x4c0   : > { %2743 = vtanh.f32 %v598_v29  ;;  %v628_v34 = vrot.slane %v598_v29, %v3073_v36 }
 0x4ca   : > { %v2744_v30 = vpop.eup %2743 }
 0x4cb   : > { %601 = vrot.lane.b32.xlu1 %v2744_v30, %s2911_s26  ;;  %v2916_v30 = vmov 3  }
 0x4ce   : > { %v607_v35 = vpop.permute.xlu0 %606 }
 0x4cf   : > { %vm608_vm6 = vcmp.eq.s32.totalorder %v607_v35, 1 }
 0x53d   : > { %v602_v31 = vpop.permute.xlu1 %601 }
 0x53e   : > { %v604_v32 = vmul.f32 %v2742_v23, %v602_v31  ;;  %v2421_v23 = vld [vmem:[%s3036_s25 + $0x3] sm:$0x1] }
 0x53f   : > { %v754_v24 = vunpack.c.l.bf16 %v2421_v23 }
 0x540   : > { %v616_v33 = vrot.slane %v604_v32, %v3073_v36 }
 0x542   : > { %617 = vrot.lane.b32.xlu1 %v616_v33, %s2912_s27 }
 0x546   : > { %629 = vrot.lane.b32.xlu1 %v628_v34, %s2913_s28 }
 0x5b4   : > { %v618_v37 = vpop.permute.xlu1 %617 }
 0x5b5   : > { %v620_v38 = vsel %vm608_vm6, %v618_v37, %v505_v63  ;;  %v633_v39 = vsel %vm608_vm6, %v618_v37, 0.0 }
 0x5b6   : > { %v634_v40 = vpack.c.bf16 %v633_v39, %v633_v39  ;;  %v640_v41 = vpack.c.bf16 %v620_v38, %v620_v38 }
 0x5b8   : > { %2416 = vst.msk [vmem:[%s3034_s24 + $0x1] sm:$0x1] %vm520_vm5, %v634_v40  ;;  %2545 = vmatmul.mubr.msk.bf16.vlgmr.msra.gmra.mrb[4].mxu0 %vm409_vm2, %v640_v41  ;;  %v630_v42 = vpop.permute.xlu1 %629 }
 0x5b9   : > { %v632_v43 = vsel %vm608_vm6, %v630_v42, %v517_v60  ;;  %2557 = vmatpush3.bf16.msra.mxu0 %v3041_v18  ;;  %2560 = vmatprep.mubr.msk.bf16.mxu0 %vm2908_vm1, %v2907_v19 }
 0x5ba   : > { %v699_v44 = vrot.slane %v632_v43, %v3073_v36  ;;  %2558 = vmatprep.subr.bf16.mxu0 %v2907_v19 }
 0x5bc   : > { %700 = vrot.lane.b32.xlu1 %v699_v44, %s2912_s27 }
 0x5bd   : > { %2559 = vmatpush3.bf16.msra.mxu0 %v3049_v20 }
 0x5be   : > { %2572 = vmatprep.subr.bf16.mxu0 %v2907_v19 }
 0x62e   : > { %v701_v61 = vpop.permute.xlu1 %700 }
 0x68b   : > { %v678_v47 = vpop.f32.mrb[4].mxu0 }
 0x68c   : > { %v684_v48 = vadd.f32 %v678_v47, %v639_v46  ;;  %v2546_v49 = vpop.f32.mrb[5].mxu0 }
 0x68d   : > { %v681_v50 = vpop.f32.mrb[6].mxu0 }
 0x68e   : > { %2745 = vtanh.f32 %v684_v48  ;;  %v2547_v51 = vpop.f32.mrb[7].mxu0  ;;  %v2419_v55 = vmul.f32 -1.442695, %v684_v48 }
 0x690   : > { %2747 = vpow2.f32 %v2419_v55 }
 0x698   : > { %v2746_v54 = vpop.eup %2745 }
 0x699   : > { %705 = vrot.lane.b32.xlu0 %v2746_v54, %s2911_s26 }
 0x69a   : > { %v2748_v56 = vpop.eup %2747 }
 0x69b   : > { %v688_v57 = vadd.f32 1.0, %v2748_v56 }
 0x69d   : > { %2749 = vrcp.f32 %v688_v57 }
 0x6a7   : > { %v2750_v58 = vpop.eup %2749 }
 0x6a8   : > { %v703_v62 = vmul.f32 %v2750_v58, %v701_v61 }
 0x70b   : > { %v706_v59 = vpop.permute.xlu0 %705 }
 0x70c   : > { %v708_v60 = vmul.f32 %v2750_v58, %v706_v59 }
 0x70e   : > { %710 = vrot.lane.b32.xlu0 %v708_v60, %s2912_s27 }
 0x712   : > { %721 = vperm.xlu0 %2723, %v3081_v53  }
 0x716   : > { %2724 = vset.pattern.permute.xlu0 %v2916_v30 }
 0x780   : > { %v711_v63 = vpop.permute.xlu0 %710 }
 0x781   : > { %v713_v0 = vadd.f32 %v711_v63, %v703_v62 }
 0x783   : > { %2751 = vtanh.f32 %v713_v0  ;;  %v743_v5 = vrot.slane %v713_v0, %v3073_v36 }
 0x78d   : > { %v2752_v1 = vpop.eup %2751 }
 0x78e   : > { %716 = vrot.lane.b32.xlu1 %v2752_v1, %s2911_s26  ;;  %v2917_v1 = vmov 4  }
 0x791   : > { %v722_v6 = vpop.permute.xlu0 %721 }
 0x792   : > { %vm723_vm7 = vcmp.eq.s32.totalorder %v722_v6, 1 }
 0x800   : > { %v717_v2 = vpop.permute.xlu1 %716 }
 0x801   : > { %v719_v3 = vmul.f32 %v2750_v58, %v717_v2  ;;  %v2425_v58 = vld [vmem:[%s3036_s25 + $0x4] sm:$0x1] }
 0x802   : > { %v869_v59 = vunpack.c.l.bf16 %v2425_v58 }
 0x803   : > { %v731_v4 = vrot.slane %v719_v3, %v3073_v36 }
 0x805   : > { %732 = vrot.lane.b32.xlu1 %v731_v4, %s2912_s27 }
 0x809   : > { %744 = vrot.lane.b32.xlu1 %v743_v5, %s2913_s28 }
 0x877   : > { %v733_v7 = vpop.permute.xlu1 %732 }
 0x878   : > { %v735_v8 = vsel %vm723_vm7, %v733_v7, %v620_v38  ;;  %v748_v9 = vsel %vm723_vm7, %v733_v7, 0.0 }
 0x879   : > { %v749_v10 = vpack.c.bf16 %v748_v9, %v748_v9  ;;  %v755_v11 = vpack.c.bf16 %v735_v8, %v735_v8 }
 0x87b   : > { %2420 = vst.msk [vmem:[%s3034_s24 + $0x2] sm:$0x1] %vm520_vm5, %v749_v10  ;;  %2553 = vmatmul.mubr.msk.bf16.vlgmr.msra.gmra.mrb[4].mxu1 %vm409_vm2, %v755_v11  ;;  %v745_v13 = vpop.permute.xlu1 %744 }
 0x87c   : > { %v747_v21 = vsel %vm723_vm7, %v745_v13, %v632_v43  ;;  %2565 = vmatpush3.bf16.msra.mxu1 %v3041_v18  ;;  %2568 = vmatprep.mubr.msk.bf16.mxu1 %vm2908_vm1, %v2907_v19 }
 0x87d   : > { %v814_v22 = vrot.slane %v747_v21, %v3073_v36  ;;  %2566 = vmatprep.subr.bf16.mxu1 %v2907_v19 }
 0x87f   : > { %815 = vrot.lane.b32.xlu1 %v814_v22, %s2912_s27 }
 0x880   : > { %2567 = vmatpush3.bf16.msra.mxu1 %v3049_v20 }
 0x881   : > { %2580 = vmatprep.subr.bf16.mxu1 %v2907_v19 }
 0x8f1   : > { %v816_v39 = vpop.permute.xlu1 %815 }
 0x94e   : > { %v793_v25 = vpop.f32.mrb[4].mxu1 }
 0x94f   : > { %v799_v26 = vadd.f32 %v793_v25, %v754_v24  ;;  %v2554_v27 = vpop.f32.mrb[5].mxu1 }
 0x950   : > { %v796_v28 = vpop.f32.mrb[6].mxu1 }
 0x951   : > { %2753 = vtanh.f32 %v799_v26  ;;  %v2555_v29 = vpop.f32.mrb[7].mxu1  ;;  %v2423_v32 = vmul.f32 -1.442695, %v799_v26 }
 0x953   : > { %2755 = vpow2.f32 %v2423_v32 }
 0x95b   : > { %v2754_v31 = vpop.eup %2753 }
 0x95c   : > { %820 = vrot.lane.b32.xlu0 %v2754_v31, %s2911_s26 }
 0x95d   : > { %v2756_v33 = vpop.eup %2755 }
 0x95e   : > { %v803_v34 = vadd.f32 1.0, %v2756_v33 }
 0x960   : > { %2757 = vrcp.f32 %v803_v34 }
 0x96a   : > { %v2758_v35 = vpop.eup %2757 }
 0x96b   : > { %v818_v40 = vmul.f32 %v2758_v35, %v816_v39 }
 0x9ce   : > { %v821_v37 = vpop.permute.xlu0 %820 }
 0x9cf   : > { %v823_v38 = vmul.f32 %v2758_v35, %v821_v37 }
 0x9d1   : > { %825 = vrot.lane.b32.xlu0 %v823_v38, %s2912_s27 }
 0x9d5   : > { %836 = vperm.xlu0 %2724, %v3081_v53  }
 0x9d9   : > { %2725 = vset.pattern.permute.xlu0 %v2917_v1 }
 0xa43   : > { %v826_v41 = vpop.permute.xlu0 %825 }
 0xa44   : > { %v828_v42 = vadd.f32 %v826_v41, %v818_v40 }
 0xa46   : > { %2759 = vtanh.f32 %v828_v42  ;;  %v858_v47 = vrot.slane %v828_v42, %v3073_v36 }
 0xa50   : > { %v2760_v43 = vpop.eup %2759 }
 0xa51   : > { %831 = vrot.lane.b32.xlu1 %v2760_v43, %s2911_s26 }
 0xa54   : > { %v837_v48 = vpop.permute.xlu0 %836 }
 0xa55   : > { %vm838_vm8 = vcmp.eq.s32.totalorder %v837_v48, 1 }
 0xac3   : > { %v832_v44 = vpop.permute.xlu1 %831 }
 0xac4   : > { %v834_v45 = vmul.f32 %v2758_v35, %v832_v44  ;;  %v2429_v35 = vld [vmem:[%s3036_s25 + $0x5] sm:$0x1] }
 0xac5   : > { %v984_v37 = vunpack.c.l.bf16 %v2429_v35 }
 0xac6   : > { %v846_v46 = vrot.slane %v834_v45, %v3073_v36 }
 0xac8   : > { %847 = vrot.lane.b32.xlu1 %v846_v46, %s2912_s27 }
 0xacc   : > { %859 = vrot.lane.b32.xlu1 %v858_v47, %s2913_s28 }
 0xb3a   : > { %v848_v49 = vpop.permute.xlu1 %847 }
 0xb3b   : > { %v850_v50 = vsel %vm838_vm8, %v848_v49, %v735_v8  ;;  %v863_v51 = vsel %vm838_vm8, %v848_v49, 0.0 }
 0xb3c   : > { %v864_v52 = vpack.c.bf16 %v863_v51, %v863_v51  ;;  %v870_v54 = vpack.c.bf16 %v850_v50, %v850_v50 }
 0xb3e   : > { %2424 = vst.msk [vmem:[%s3034_s24 + $0x3] sm:$0x1] %vm520_vm5, %v864_v52  ;;  %2561 = vmatmul.mubr.msk.bf16.vlgmr.msra.gmra.mrb[8].mxu0 %vm409_vm2, %v870_v54  ;;  %v860_v55 = vpop.permute.xlu1 %859 }
 0xb3f   : > { %v862_v56 = vsel %vm838_vm8, %v860_v55, %v747_v21  ;;  %2573 = vmatpush3.bf16.msra.mxu0 %v3041_v18  ;;  %2576 = vmatprep.mubr.msk.bf16.mxu0 %vm2908_vm1, %v2907_v19 }
 0xb40   : > { %v929_v57 = vrot.slane %v862_v56, %v3073_v36  ;;  %2574 = vmatprep.subr.bf16.mxu0 %v2907_v19 }
 0xb42   : > { %930 = vrot.lane.b32.xlu1 %v929_v57, %s2912_s27 }
 0xb43   : > { %2575 = vmatpush3.bf16.msra.mxu0 %v3049_v20 }
 0xbb4   : > { %v931_v9 = vpop.permute.xlu1 %930 }
 0xc11   : > { %v908_v60 = vpop.f32.mrb[8].mxu0 }
 0xc12   : > { %v914_v61 = vadd.f32 %v908_v60, %v869_v59  ;;  %v2562_v62 = vpop.f32.mrb[9].mxu0 }
 0xc13   : > { %v911_v63 = vpop.f32.mrb[10].mxu0 }
 0xc14   : > { %2761 = vtanh.f32 %v914_v61  ;;  %v2563_v0 = vpop.f32.mrb[11].mxu0  ;;  %v2427_v3 = vmul.f32 -1.442695, %v914_v61 }
 0xc16   : > { %2763 = vpow2.f32 %v2427_v3  ;;  %v2433_v3 = vld [vmem:[%s3036_s25 + $0x6] sm:$0x1] }
 0xc1e   : > { %v2762_v2 = vpop.eup %2761 }
 0xc1f   : > { %935 = vrot.lane.b32.xlu0 %v2762_v2, %s2911_s26 }
 0xc20   : > { %v2764_v4 = vpop.eup %2763 }
 0xc21   : > { %v918_v5 = vadd.f32 1.0, %v2764_v4  ;;  %v1099_v4 = vunpack.c.l.bf16 %v2433_v3 }
 0xc23   : > { %2765 = vrcp.f32 %v918_v5 }
 0xc2d   : > { %v2766_v6 = vpop.eup %2765 }
 0xc2e   : > { %v933_v10 = vmul.f32 %v2766_v6, %v931_v9 }
 0xc91   : > { %v936_v7 = vpop.permute.xlu0 %935 }
 0xc92   : > { %v938_v8 = vmul.f32 %v2766_v6, %v936_v7 }
 0xc94   : > { %940 = vrot.lane.b32.xlu0 %v938_v8, %s2912_s27 }
 0xc98   : > { %951 = vperm.xlu0 %2725, %v3081_v53  }
 0xd06   : > { %v941_v11 = vpop.permute.xlu0 %940 }
 0xd07   : > { %v943_v13 = vadd.f32 %v941_v11, %v933_v10  ;;  %v2919_v10 = vmov 6  }
 0xd09   : > { %2767 = vtanh.f32 %v943_v13  ;;  %v973_v25 = vrot.slane %v943_v13, %v3073_v36 }
 0xd13   : > { %v2768_v21 = vpop.eup %2767 }
 0xd14   : > { %946 = vrot.lane.b32.xlu1 %v2768_v21, %s2911_s26 }
 0xd17   : > { %v952_v26 = vpop.permute.xlu0 %951 }
 0xd18   : > { %vm953_vm9 = vcmp.eq.s32.totalorder %v952_v26, 1 }
 0xd86   : > { %v947_v22 = vpop.permute.xlu1 %946 }
 0xd87   : > { %v949_v23 = vmul.f32 %v2766_v6, %v947_v22 }
 0xd89   : > { %v961_v24 = vrot.slane %v949_v23, %v3073_v36 }
 0xd8b   : > { %962 = vrot.lane.b32.xlu1 %v961_v24, %s2912_s27 }
 0xd8f   : > { %974 = vrot.lane.b32.xlu1 %v973_v25, %s2913_s28 }
 0xdfd   : > { %v963_v27 = vpop.permute.xlu1 %962 }
 0xdfe   : > { %v965_v28 = vsel %vm953_vm9, %v963_v27, %v850_v50  ;;  %v978_v29 = vsel %vm953_vm9, %v963_v27, 0.0 }
 0xdff   : > { %v979_v30 = vpack.c.bf16 %v978_v29, %v978_v29  ;;  %v985_v31 = vpack.c.bf16 %v965_v28, %v965_v28 }
 0xe01   : > { %2428 = vst.msk [vmem:[%s3034_s24 + $0x4] sm:$0x1] %vm520_vm5, %v979_v30  ;;  %2569 = vmatmul.mubr.msk.bf16.vlgmr.msra.gmra.mrb[8].mxu1 %vm409_vm2, %v985_v31  ;;  %v975_v32 = vpop.permute.xlu1 %974 }
 0xe02   : > { %v977_v33 = vsel %vm953_vm9, %v975_v32, %v862_v56  ;;  %2581 = vmatpush3.bf16.msra.mxu1 %v3041_v18  ;;  %2584 = vmatprep.mubr.msk.bf16.mxu1 %vm2908_vm1, %v2907_v19  ;;  %v2918_v18 = vmov 5  }
 0xe03   : > { %v1044_v34 = vrot.slane %v977_v33, %v3073_v36  ;;  %2582 = vmatprep.subr.bf16.mxu1 %v2907_v19  ;;  %2726 = vset.pattern.permute.xlu0 %v2918_v18 }
 0xe05   : > { %1045 = vrot.lane.b32.xlu1 %v1044_v34, %s2912_s27 }
 0xe06   : > { %2583 = vmatpush3.bf16.msra.mxu1 %v3049_v20 }
 0xe77   : > { %v1046_v48 = vpop.permute.xlu1 %1045 }
 0xed4   : > { %v1023_v38 = vpop.f32.mrb[8].mxu1 }
 0xed5   : > { %v1029_v39 = vadd.f32 %v1023_v38, %v984_v37  ;;  %v2570_v40 = vpop.f32.mrb[9].mxu1 }
 0xed6   : > { %v1026_v41 = vpop.f32.mrb[10].mxu1 }
 0xed7   : > { %2769 = vtanh.f32 %v1029_v39  ;;  %v2571_v42 = vpop.f32.mrb[11].mxu1  ;;  %v2431_v44 = vmul.f32 -1.442695, %v1029_v39 }
 0xed9   : > { %2771 = vpow2.f32 %v2431_v44  ;;  %v2437_v44 = vld [vmem:[%s3036_s25 + $0x7] sm:$0x1] }
 0xee1   : > { %v2770_v43 = vpop.eup %2769 }
 0xee2   : > { %1050 = vrot.lane.b32.xlu0 %v2770_v43, %s2911_s26 }
 0xee3   : > { %v2772_v19 = vpop.eup %2771 }
 0xee4   : > { %v1033_v45 = vadd.f32 1.0, %v2772_v19  ;;  %v1214_v19 = vunpack.c.l.bf16 %v2437_v44 }
 0xee6   : > { %2773 = vrcp.f32 %v1033_v45 }
 0xef0   : > { %v2774_v46 = vpop.eup %2773 }
 0xef1   : > { %v1048_v49 = vmul.f32 %v2774_v46, %v1046_v48 }
 0xf54   : > { %v1051_v20 = vpop.permute.xlu0 %1050 }
 0xf55   : > { %v1053_v47 = vmul.f32 %v2774_v46, %v1051_v20 }
 0xf57   : > { %1055 = vrot.lane.b32.xlu0 %v1053_v47, %s2912_s27 }
 0xf5b   : > { %1066 = vperm.xlu0 %2726, %v3081_v53  }
 0xf5f   : > { %2727 = vset.pattern.permute.xlu0 %v2919_v10 }
 0xfc9   : > { %v1056_v50 = vpop.permute.xlu0 %1055 }
 0xfca   : > { %v1058_v51 = vadd.f32 %v1056_v50, %v1048_v49  ;;  %v2920_v49 = vmov 7  }
 0xfcc   : > { %2775 = vtanh.f32 %v1058_v51  ;;  %v1088_v57 = vrot.slane %v1058_v51, %v3073_v36 }
 0xfd6   : > { %v2776_v52 = vpop.eup %2775 }
 0xfd7   : > { %1061 = vrot.lane.b32.xlu1 %v2776_v52, %s2911_s26 }
 0xfda   : > { %v1067_v58 = vpop.permute.xlu0 %1066 }
 0xfdb   : > { %vm1068_vm10 = vcmp.eq.s32.totalorder %v1067_v58, 1 }
0x1049   : > { %v1062_v54 = vpop.permute.xlu1 %1061 }
0x104a   : > { %v1064_v55 = vmul.f32 %v2774_v46, %v1062_v54 }
0x104c   : > { %v1076_v56 = vrot.slane %v1064_v55, %v3073_v36 }
0x104e   : > { %1077 = vrot.lane.b32.xlu1 %v1076_v56, %s2912_s27 }
0x1052   : > { %1089 = vrot.lane.b32.xlu1 %v1088_v57, %s2913_s28 }
0x10c0   : > { %v1078_v59 = vpop.permute.xlu1 %1077 }
0x10c1   : > { %v1080_v60 = vsel %vm1068_vm10, %v1078_v59, %v965_v28  ;;  %v1093_v61 = vsel %vm1068_vm10, %v1078_v59, 0.0 }
0x10c2   : > { %v1094_v62 = vpack.c.bf16 %v1093_v61, %v1093_v61  ;;  %v1100_v63 = vpack.c.bf16 %v1080_v60, %v1080_v60 }
0x10c4   : > { %2432 = vst.msk [vmem:[%s3034_s24 + $0x5] sm:$0x1] %vm520_vm5, %v1094_v62  ;;  %2577 = vmatmul.mubr.msk.bf16.vlgmr.msra.gmra.mrb[12].mxu0 %vm409_vm2, %v1100_v63  ;;  %v1090_v0 = vpop.permute.xlu1 %1089 }
0x10c5   : > { %v1092_v1 = vsel %vm1068_vm10, %v1090_v0, %v977_v33 }
0x10c6   : > { %v1159_v2 = vrot.slane %v1092_v1, %v3073_v36 }
0x10c8   : > { %1160 = vrot.lane.b32.xlu1 %v1159_v2, %s2912_s27 }
0x113a   : > { %v1161_v26 = vpop.permute.xlu1 %1160 }
0x1197   : > { %v1138_v5 = vpop.f32.mrb[12].mxu0 }
0x1198   : > { %v1144_v6 = vadd.f32 %v1138_v5, %v1099_v4  ;;  %v2578_v7 = vpop.f32.mrb[13].mxu0 }
0x1199   : > { %v1141_v8 = vpop.f32.mrb[14].mxu0 }
0x119a   : > { %2777 = vtanh.f32 %v1144_v6  ;;  %v2579_v9 = vpop.f32.mrb[15].mxu0  ;;  %v2435_v13 = vmul.f32 -1.442695, %v1144_v6 }
0x119c   : > { %2779 = vpow2.f32 %v2435_v13 }
0x11a4   : > { %v2778_v11 = vpop.eup %2777 }
0x11a5   : > { %1165 = vrot.lane.b32.xlu0 %v2778_v11, %s2911_s26 }
0x11a6   : > { %v2780_v21 = vpop.eup %2779 }
0x11a7   : > { %v1148_v22 = vadd.f32 1.0, %v2780_v21 }
0x11a9   : > { %2781 = vrcp.f32 %v1148_v22 }
0x11b3   : > { %v2782_v23 = vpop.eup %2781 }
0x11b4   : > { %v1163_v27 = vmul.f32 %v2782_v23, %v1161_v26 }
0x1217   : > { %v1166_v24 = vpop.permute.xlu0 %1165 }
0x1218   : > { %v1168_v25 = vmul.f32 %v2782_v23, %v1166_v24 }
0x121a   : > { %1170 = vrot.lane.b32.xlu0 %v1168_v25, %s2912_s27 }
0x121e   : > { %1181 = vperm.xlu0 %2727, %v3081_v53  }
0x1222   : > { %2728 = vset.pattern.permute.xlu0 %v2920_v49 }
0x128c   : > { %v1171_v28 = vpop.permute.xlu0 %1170 }
0x128d   : > { %v1173_v29 = vadd.f32 %v1171_v28, %v1163_v27 }
0x128f   : > { %2783 = vtanh.f32 %v1173_v29  ;;  %v1203_v34 = vrot.slane %v1173_v29, %v3073_v36 }
0x1299   : > { %v2784_v30 = vpop.eup %2783 }
0x129a   : > { %1176 = vrot.lane.b32.xlu1 %v2784_v30, %s2911_s26 }
0x129d   : > { %v1182_v35 = vpop.permute.xlu0 %1181 }
0x129e   : > { %vm1183_vm11 = vcmp.eq.s32.totalorder %v1182_v35, 1 }
0x130c   : > { %v1177_v31 = vpop.permute.xlu1 %1176 }
0x130d   : > { %v1179_v32 = vmul.f32 %v2782_v23, %v1177_v31 }
0x130f   : > { %v1191_v33 = vrot.slane %v1179_v32, %v3073_v36 }
0x1311   : > { %1192 = vrot.lane.b32.xlu1 %v1191_v33, %s2912_s27 }
0x1315   : > { %1204 = vrot.lane.b32.xlu1 %v1203_v34, %s2913_s28 }
0x1383   : > { %v1193_v37 = vpop.permute.xlu1 %1192 }
0x1384   : > { %v1195_v38 = vsel %vm1183_vm11, %v1193_v37, %v1080_v60  ;;  %v1208_v39 = vsel %vm1183_vm11, %v1193_v37, 0.0 }
0x1385   : > { %v1209_v40 = vpack.c.bf16 %v1208_v39, %v1208_v39  ;;  %v1215_v41 = vpack.c.bf16 %v1195_v38, %v1195_v38 }
0x1387   : > { %2436 = vst.msk [vmem:[%s3034_s24 + $0x6] sm:$0x1] %vm520_vm5, %v1209_v40  ;;  %2585 = vmatmul.mubr.msk.bf16.vlgmr.msra.gmra.mrb[12].mxu1 %vm409_vm2, %v1215_v41  ;;  %v1205_v42 = vpop.permute.xlu1 %1204 }
0x1388   : > { %v1207_v18 = vsel %vm1183_vm11, %v1205_v42, %v1092_v1 }
0x1389   : > { %v1274_v43 = vrot.slane %v1207_v18, %v3073_v36 }
0x138b   : > { %1275 = vrot.lane.b32.xlu1 %v1274_v43, %s2912_s27 }
0x13fd   : > { %v1276_v58 = vpop.permute.xlu1 %1275 }
0x145a   : > { %v1253_v45 = vpop.f32.mrb[12].mxu1 }
0x145b   : > { %v1259_v46 = vadd.f32 %v1253_v45, %v1214_v19  ;;  %v2586_v20 = vpop.f32.mrb[13].mxu1 }
0x145c   : > { %v1256_v47 = vpop.f32.mrb[14].mxu1 }
0x145d   : > { %2785 = vtanh.f32 %v1259_v46  ;;  %v2587_v48 = vpop.f32.mrb[15].mxu1  ;;  %v2439_v51 = vmul.f32 -1.442695, %v1259_v46 }
0x145f   : > { %2787 = vpow2.f32 %v2439_v51 }
0x1467   : > { %v2786_v50 = vpop.eup %2785 }
0x1468   : > { %1280 = vrot.lane.b32.xlu0 %v2786_v50, %s2911_s26 }
0x1469   : > { %v2788_v52 = vpop.eup %2787 }
0x146a   : > { %v1263_v54 = vadd.f32 1.0, %v2788_v52 }
0x146c   : > { %2789 = vrcp.f32 %v1263_v54 }
0x1476   : > { %v2790_v55 = vpop.eup %2789 }
0x1477   : > { %v1278_v59 = vmul.f32 %v2790_v55, %v1276_v58 }
0x14da   : > { %v1281_v56 = vpop.permute.xlu0 %1280 }
0x14db   : > { %v1283_v57 = vmul.f32 %v2790_v55, %v1281_v56 }
0x14dd   : > { %1285 = vrot.lane.b32.xlu0 %v1283_v57, %s2912_s27 }
0x14e1   : > { %1296 = vperm.xlu0 %2728, %v3081_v53  }
0x154f   : > { %v1286_v60 = vpop.permute.xlu0 %1285 }
0x1550   : > { %v1288_v61 = vadd.f32 %v1286_v60, %v1278_v59 }
0x1552   : > { %2791 = vtanh.f32 %v1288_v61  ;;  %v1318_v2 = vrot.slane %v1288_v61, %v3073_v36 }
0x155c   : > { %v2792_v62 = vpop.eup %2791 }
0x155d   : > { %1291 = vrot.lane.b32.xlu1 %v2792_v62, %s2911_s26 }
0x1560   : > { %v1297_v53 = vpop.permute.xlu0 %1296 }
0x1561   : > { %vm1298_vm12 = vcmp.eq.s32.totalorder %v1297_v53, 1 }
0x15cf   : > { %v1292_v63 = vpop.permute.xlu1 %1291 }
0x15d0   : > { %v1294_v0 = vmul.f32 %v2790_v55, %v1292_v63 }
0x15d2   : > { %v1306_v1 = vrot.slane %v1294_v0, %v3073_v36 }
0x15d4   : > { %1307 = vrot.lane.b32.xlu1 %v1306_v1, %s2912_s27 }
0x15d8   : > { %1319 = vrot.lane.b32.xlu1 %v1318_v2, %s2913_s28 }
0x1646   : > { %v1308_v3 = vpop.permute.xlu1 %1307 }
0x1647   : > { %v1310_v4 = vsel %vm1298_vm12, %v1308_v3, %v1195_v38  ;;  %v1323_v5 = vsel %vm1298_vm12, %v1308_v3, 0.0 }
0x1648   : > { %v1324_v6 = vpack.c.bf16 %v1323_v5, %v1323_v5  ;;  %1328 = vst.msk [vmem:[#allocation2] sm:$0x3] %vm371_vm0, %v1310_v4 }
0x164a   : > { %2440 = vst.msk [vmem:[%s3034_s24 + $0x7] sm:$0x1] %vm520_vm5, %v1324_v6  ;;  %v1320_v7 = vpop.permute.xlu1 %1319 }
0x164b   : > { %v1322_v8 = vsel %vm1298_vm12, %v1320_v7, %v1207_v18 }
0x164c   : > { %1329 = vst.msk [vmem:[#allocation3] sm:$0x3] %vm371_vm0, %v1322_v8 }
0x164d PF: > { %p2441_p11 = scmp.ne.s32.totalorder %s2896_s14, 1 }
0x164e   : > { %v3222_v36 = vcombine.low (!%p2441_p11), %v3023_v14, %v3025_v15  ;;  %v2921_v9 = vmov (!%p2441_p11), 0.0   ;;  %vm2922_vm13 = vmmov (!%p2441_p11), 0   ;;  %v3230_v10 = vcombine.low (!%p2441_p11), %v3027_v16, %v3029_v17  ;;  %v2442_v15 = vld [vmem:[%s3036_s25 + $0x7] sm:$0x1] (!%p2441_p11)  ;;  %s2925_s14 = smov (!%p2441_p11), 64   ;;  %s2926_s29 = smov (!%p2441_p11), 32  }
0x164f   : > { %1333 = sbr.rel (%p2441_p11) target bundleno = 11378 (0x2c72), region = 126  ;;  %2588 = vmatprep.subr.bf16.mxu0 (!%p2441_p11), %v2921_v9  ;;  %2592 = vmatprep.mubr.msk.bf16.mxu0 (!%p2441_p11), %vm2922_vm13, %v2921_v9  ;;  %v3232_v11 = vld [vmem:[#allocation2] sm:$0x3] (!%p2441_p11)  ;;  %vm1362_vm14 = vcmask (!%p2441_p11), 261120   ;;  %v1348_v16 = vunpack.c.l.bf16 (!%p2441_p11), %v2442_v15  ;;  %v1336_v23 = vlaneseq (!%p2441_p11)  ;;  %v2923_v24 = vmov (!%p2441_p11), 1983009808  }
0x1650   : > { %2589 = vmatpush3.bf16.msra.mxu0 (!%p2441_p11), %v3222_v36  ;;  %2596 = vmatprep.subr.bf16.mxu1 (!%p2441_p11), %v2921_v9  ;;  %v1349_v14 = vpack.c.bf16 (!%p2441_p11), %v3232_v11, %v3232_v11  ;;  %v1416_v25 = vunpack.c.l.s4 (!%p2441_p11), %v2923_v24  ;;  %v2924_v29 = vmov (!%p2441_p11), 0   ;;  %v2927_v41 = vmov (!%p2441_p11), 7   ;;  %s2928_s30 = smov (!%p2441_p11), 96   ;;  %v2448_v60 = vld [vmem:[%s3036_s25 + $0x6] sm:$0x1] (!%p2441_p11) }
0x1651   : > { %2590 = vmatprep.subr.bf16.mxu0 (!%p2441_p11), %v2921_v9  ;;  %2597 = vmatpush3.bf16.msra.mxu1 (!%p2441_p11), %v3222_v36  ;;  %v1419_v28 = vshrl.u32 (!%p2441_p11), %v1336_v23, 7  ;;  %v1337_v45 = vand.u32 (!%p2441_p11), 127, %v1336_v23  ;;  %vm1474_vm2 = vcmask (!%p2441_p11), 253952   ;;  %v1478_v61 = vunpack.c.l.bf16 (!%p2441_p11), %v2448_v60 }
0x1652   : > { %2598 = vmatprep.subr.bf16.mxu1 (!%p2441_p11), %v2921_v9  ;;  %2600 = vmatprep.mubr.msk.bf16.mxu1 (!%p2441_p11), %vm2922_vm13, %v2921_v9  ;;  %v1417_v27 = vunpack.c.0.s8 (!%p2441_p11), %v1416_v25  ;;  %v2929_v53 = vmov (!%p2441_p11), 6  }
0x1653   : > { %2793 = vset.pattern.permute.xlu1 (!%p2441_p11), %v2924_v29  ;;  %v1345_v31 = vld [vmem:[#allocation3] sm:$0x3] (!%p2441_p11)  ;;  %2795 = vset.pattern.permute.xlu0 (!%p2441_p11), %v2929_v53 }
0x1654   : > { %2591 = vmatpush3.bf16.msra.mxu0 (!%p2441_p11), %v3230_v10  ;;  %v3255_v30 = vsub.s32 (!%p2441_p11), %v1417_v27, %v1419_v28 }
0x1655   : > { %2599 = vmatpush3.bf16.msra.mxu1 (!%p2441_p11), %v3230_v10  ;;  %2604 = vmatprep.subr.bf16.mxu0 (!%p2441_p11), %v2921_v9 }
0x1656   : > { %2612 = vmatprep.subr.bf16.mxu1 %v2921_v9  ;;  %v1421_v33 = vrot.slane %v1345_v31, %v3255_v30 }
0x1657   : > { %2593 = vmatmul.mubr.msk.bf16.vlgmr.msra.gmra.mrb[0].mxu0 %vm1362_vm14, %v1349_v14 }
0x1658   : > { %2605 = vmatpush3.bf16.msra.mxu0 %v3222_v36  ;;  %2608 = vmatprep.mubr.msk.bf16.mxu0 %vm2922_vm13, %v2921_v9 }
0x1659   : > { %2606 = vmatprep.subr.bf16.mxu0 %v2921_v9 }
0x165c   : > { %2607 = vmatpush3.bf16.msra.mxu0 %v3230_v10 }
0x165d   : > { %2620 = vmatprep.subr.bf16.mxu0 %v2921_v9 }
0x172a   : > { %v1400_v17 = vpop.f32.mrb[0].mxu0 }
0x172b   : > { %v1406_v13 = vadd.f32 %v1400_v17, %v1348_v16  ;;  %v2594_v21 = vpop.f32.mrb[1].mxu0 }
0x172c   : > { %v1403_v22 = vpop.f32.mrb[2].mxu0 }
0x172d   : > { %2802 = vtanh.f32 %v1406_v13  ;;  %v2595_v26 = vpop.f32.mrb[3].mxu0  ;;  %v2446_v34 = vmul.f32 -1.442695, %v1406_v13 }
0x172f   : > { %2804 = vpow2.f32 %v2446_v34 }
0x1737   : > { %v2803_v32 = vpop.eup %2802 }
0x1738   : > { %1427 = vrot.lane.b32.xlu0 %v2803_v32, %s2925_s14 }
0x1739   : > { %v2805_v35 = vpop.eup %2804 }
0x173a   : > { %v1410_v37 = vadd.f32 1.0, %v2805_v35 }
0x173c   : > { %1422 = vrot.lane.b32.xlu0 %v1421_v33, %s2926_s29  ;;  %2806 = vrcp.f32 %v1410_v37  ;;  %v2452_v37 = vld [vmem:[%s3036_s25 + $0x5] sm:$0x1] }
0x1746   : > { %v2807_v38 = vpop.eup %2806 }
0x17aa   : > { %v1428_v39 = vpop.permute.xlu0 %1427 }
0x17ab   : > { %v1430_v40 = vmul.f32 %v2807_v38, %v1428_v39 }
0x17ad   : > { %1432 = vrot.lane.b32.xlu1 %v1430_v40, %s2926_s29 }
0x17ae   : > { %v1423_v42 = vpop.permute.xlu0 %1422 }
0x17af   : > { %v1425_v18 = vmul.f32 %v2807_v38, %v1423_v42 }
0x17b1   : > { %1341 = vperm.xlu1 %2793, %v3018_v12  }
0x17b5   : > { %2794 = vset.pattern.permute.xlu1 %v2927_v41 }
0x181f   : > { %v1433_v43 = vpop.permute.xlu1 %1432 }
0x1820   : > { %v1435_v44 = vadd.f32 %v1433_v43, %v1425_v18  ;;  %v2930_v43 = vmov 5  }
0x1822   : > { %2808 = vtanh.f32 %v1435_v44  ;;  %v1466_v12 = vrot.slane %v1435_v44, %v3255_v30 }
0x182c   : > { %v2809_v19 = vpop.eup %2808 }
0x182d   : > { %1438 = vrot.lane.b32.xlu0 %v2809_v19, %s2925_s14 }
0x1830   : > { %v1342_v46 = vpop.permute.xlu1 %1341 }
0x1831   : > { %vm1343_vm15 = vcmp.gt.s32.totalorder %v1342_v46, %v1337_v45 }
0x1832   : > { %v3264_v20 = vsel %vm1343_vm15, 1, %v2924_v29 }
0x1833   : > { %1444 = vperm.xlu1 %2794, %v3264_v20  }
0x1837   : > { %1467 = vrot.lane.b32.xlu1 %v1466_v12, %s2928_s30 }
0x189f   : > { %v1439_v47 = vpop.permute.xlu0 %1438 }
0x18a0   : > { %v1441_v48 = vmul.f32 %v2807_v38, %v1439_v47  ;;  %v1593_v38 = vunpack.c.l.bf16 %v2452_v37 }
0x18a2   : > { %v1454_v49 = vrot.slane %v1441_v48, %v3255_v30 }
0x18a4   : > { %1455 = vrot.lane.b32.xlu0 %v1454_v49, %s2926_s29 }
0x18b2   : > { %v1445_v50 = vpop.permute.xlu1 %1444 }
0x18b3   : > { %vm1446_vm1 = vcmp.eq.s32.totalorder %v1445_v50, 1 }
0x18b6   : > { %v1468_v51 = vpop.permute.xlu1 %1467 }
0x18b7   : > { %v1470_v52 = vsel %vm1446_vm1, %v1468_v51, %v1345_v31 }
0x18b8   : > { %v1538_v54 = vrot.slane %v1470_v52, %v3255_v30 }
0x18ba   : > { %1539 = vrot.lane.b32.xlu1 %v1538_v54, %s2926_s29 }
0x1916   : > { %v1456_v55 = vpop.permute.xlu0 %1455 }
0x1917   : > { %v1458_v56 = vsel %vm1446_vm1, %v1456_v55, %v3232_v11  ;;  %v1471_v57 = vsel %vm1446_vm1, %v1456_v55, 0.0 }
0x1918   : > { %v1472_v58 = vpack.c.bf16 %v1471_v57, %v1471_v57  ;;  %v1479_v59 = vpack.c.bf16 %v1458_v56, %v1458_v56 }
0x191a   : > { %2447 = vst.msk [vmem:[%s3034_s24 + $0x7] sm:$0x1] %vm1474_vm2, %v1472_v58  ;;  %2601 = vmatmul.mubr.msk.bf16.vlgmr.msra.gmra.mrb[0].mxu1 %vm1362_vm14, %v1479_v59 }
0x191b   : > { %2613 = vmatpush3.bf16.msra.mxu1 %v3222_v36  ;;  %2616 = vmatprep.mubr.msk.bf16.mxu1 %vm2922_vm13, %v2921_v9 }
0x191c   : > { %2614 = vmatprep.subr.bf16.mxu1 %v2921_v9 }
0x191f   : > { %2615 = vmatpush3.bf16.msra.mxu1 %v3230_v10 }
0x1920   : > { %2628 = vmatprep.subr.bf16.mxu1 %v2921_v9 }
0x192c   : > { %v1540_v14 = vpop.permute.xlu1 %1539 }
0x19ed   : > { %v1517_v62 = vpop.f32.mrb[0].mxu1 }
0x19ee   : > { %v1523_v63 = vadd.f32 %v1517_v62, %v1478_v61  ;;  %v2602_v0 = vpop.f32.mrb[1].mxu1 }
0x19ef   : > { %v1520_v1 = vpop.f32.mrb[2].mxu1 }
0x19f0   : > { %2810 = vtanh.f32 %v1523_v63  ;;  %v2603_v2 = vpop.f32.mrb[3].mxu1  ;;  %v2450_v4 = vmul.f32 -1.442695, %v1523_v63 }
0x19f2   : > { %2812 = vpow2.f32 %v2450_v4 }
0x19fa   : > { %v2811_v3 = vpop.eup %2810 }
0x19fb   : > { %1544 = vrot.lane.b32.xlu0 %v2811_v3, %s2925_s14  ;;  %v2456_v3 = vld [vmem:[%s3036_s25 + $0x4] sm:$0x1] }
0x19fc   : > { %v2813_v5 = vpop.eup %2812  ;;  %v1708_v4 = vunpack.c.l.bf16 %v2456_v3 }
0x19fd   : > { %v1527_v6 = vadd.f32 1.0, %v2813_v5 }
0x19ff   : > { %2814 = vrcp.f32 %v1527_v6 }
0x1a09   : > { %v2815_v7 = vpop.eup %2814 }
0x1a0a   : > { %v1542_v15 = vmul.f32 %v2815_v7, %v1540_v14  ;;  %v2931_v14 = vmov 4  }
0x1a6d   : > { %v1545_v8 = vpop.permute.xlu0 %1544 }
0x1a6e   : > { %v1547_v11 = vmul.f32 %v2815_v7, %v1545_v8 }
0x1a70   : > { %1549 = vrot.lane.b32.xlu0 %v1547_v11, %s2926_s29 }
0x1a74   : > { %1560 = vperm.xlu0 %2795, %v3264_v20  }
0x1a78   : > { %2796 = vset.pattern.permute.xlu0 %v2930_v43 }
0x1ae2   : > { %v1550_v16 = vpop.permute.xlu0 %1549 }
0x1ae3   : > { %v1552_v17 = vadd.f32 %v1550_v16, %v1542_v15 }
0x1ae5   : > { %2816 = vtanh.f32 %v1552_v17  ;;  %v1582_v24 = vrot.slane %v1552_v17, %v3255_v30 }
0x1aef   : > { %v2817_v13 = vpop.eup %2816 }
0x1af0   : > { %1555 = vrot.lane.b32.xlu1 %v2817_v13, %s2925_s14 }
0x1af3   : > { %v1561_v25 = vpop.permute.xlu0 %1560 }
0x1af4   : > { %vm1562_vm3 = vcmp.eq.s32.totalorder %v1561_v25, 1 }
0x1b62   : > { %v1556_v21 = vpop.permute.xlu1 %1555 }
0x1b63   : > { %v1558_v22 = vmul.f32 %v2815_v7, %v1556_v21 }
0x1b65   : > { %v1570_v23 = vrot.slane %v1558_v22, %v3255_v30 }
0x1b67   : > { %1571 = vrot.lane.b32.xlu1 %v1570_v23, %s2926_s29 }
0x1b6b   : > { %1583 = vrot.lane.b32.xlu1 %v1582_v24, %s2928_s30 }
0x1bd9   : > { %v1572_v26 = vpop.permute.xlu1 %1571 }
0x1bda   : > { %v1574_v27 = vsel %vm1562_vm3, %v1572_v26, %v1458_v56  ;;  %v1587_v28 = vsel %vm1562_vm3, %v1572_v26, 0.0 }
0x1bdb   : > { %v1588_v31 = vpack.c.bf16 %v1587_v28, %v1587_v28  ;;  %v1594_v32 = vpack.c.bf16 %v1574_v27, %v1574_v27 }
0x1bdd   : > { %2451 = vst.msk [vmem:[%s3034_s24 + $0x6] sm:$0x1] %vm1474_vm2, %v1588_v31  ;;  %2609 = vmatmul.mubr.msk.bf16.vlgmr.msra.gmra.mrb[4].mxu0 %vm1362_vm14, %v1594_v32  ;;  %v1584_v33 = vpop.permute.xlu1 %1583 }
0x1bde   : > { %v1586_v34 = vsel %vm1562_vm3, %v1584_v33, %v1470_v52  ;;  %2621 = vmatpush3.bf16.msra.mxu0 %v3222_v36  ;;  %2624 = vmatprep.mubr.msk.bf16.mxu0 %vm2922_vm13, %v2921_v9 }
0x1bdf   : > { %v1653_v35 = vrot.slane %v1586_v34, %v3255_v30  ;;  %2622 = vmatprep.subr.bf16.mxu0 %v2921_v9 }
0x1be1   : > { %1654 = vrot.lane.b32.xlu1 %v1653_v35, %s2926_s29 }
0x1be2   : > { %2623 = vmatpush3.bf16.msra.mxu0 %v3230_v10 }
0x1be3   : > { %2636 = vmatprep.subr.bf16.mxu0 %v2921_v9 }
0x1c53   : > { %v1655_v49 = vpop.permute.xlu1 %1654 }
0x1cb0   : > { %v1632_v39 = vpop.f32.mrb[4].mxu0 }
0x1cb1   : > { %v1638_v40 = vadd.f32 %v1632_v39, %v1593_v38  ;;  %v2610_v41 = vpop.f32.mrb[5].mxu0 }
0x1cb2   : > { %v1635_v42 = vpop.f32.mrb[6].mxu0 }
0x1cb3   : > { %2818 = vtanh.f32 %v1638_v40  ;;  %v2611_v18 = vpop.f32.mrb[7].mxu0  ;;  %v2454_v19 = vmul.f32 -1.442695, %v1638_v40 }
0x1cb5   : > { %2820 = vpow2.f32 %v2454_v19 }
0x1cbd   : > { %v2819_v44 = vpop.eup %2818 }
0x1cbe   : > { %1659 = vrot.lane.b32.xlu0 %v2819_v44, %s2925_s14  ;;  %v2460_v44 = vld [vmem:[%s3036_s25 + $0x3] sm:$0x1] }
0x1cbf   : > { %v2821_v45 = vpop.eup %2820  ;;  %v1823_v19 = vunpack.c.l.bf16 %v2460_v44 }
0x1cc0   : > { %v1642_v46 = vadd.f32 1.0, %v2821_v45 }
0x1cc2   : > { %2822 = vrcp.f32 %v1642_v46 }
0x1ccc   : > { %v2823_v12 = vpop.eup %2822 }
0x1ccd   : > { %v1657_v50 = vmul.f32 %v2823_v12, %v1655_v49  ;;  %v2932_v49 = vmov 3  }
0x1d30   : > { %v1660_v47 = vpop.permute.xlu0 %1659 }
0x1d31   : > { %v1662_v48 = vmul.f32 %v2823_v12, %v1660_v47 }
0x1d33   : > { %1664 = vrot.lane.b32.xlu0 %v1662_v48, %s2926_s29 }
0x1d37   : > { %1675 = vperm.xlu0 %2796, %v3264_v20  }
0x1d3b   : > { %2797 = vset.pattern.permute.xlu0 %v2931_v14 }
0x1da5   : > { %v1665_v51 = vpop.permute.xlu0 %1664 }
0x1da6   : > { %v1667_v52 = vadd.f32 %v1665_v51, %v1657_v50 }
0x1da8   : > { %2824 = vtanh.f32 %v1667_v52  ;;  %v1697_v58 = vrot.slane %v1667_v52, %v3255_v30 }
0x1db2   : > { %v2825_v54 = vpop.eup %2824 }
0x1db3   : > { %1670 = vrot.lane.b32.xlu1 %v2825_v54, %s2925_s14 }
0x1db6   : > { %v1676_v59 = vpop.permute.xlu0 %1675 }
0x1db7   : > { %vm1677_vm4 = vcmp.eq.s32.totalorder %v1676_v59, 1 }
0x1e25   : > { %v1671_v55 = vpop.permute.xlu1 %1670 }
0x1e26   : > { %v1673_v56 = vmul.f32 %v2823_v12, %v1671_v55 }
0x1e28   : > { %v1685_v57 = vrot.slane %v1673_v56, %v3255_v30 }
0x1e2a   : > { %1686 = vrot.lane.b32.xlu1 %v1685_v57, %s2926_s29 }
0x1e2e   : > { %1698 = vrot.lane.b32.xlu1 %v1697_v58, %s2928_s30 }
0x1e9c   : > { %v1687_v60 = vpop.permute.xlu1 %1686 }
0x1e9d   : > { %v1689_v61 = vsel %vm1677_vm4, %v1687_v60, %v1574_v27  ;;  %v1702_v62 = vsel %vm1677_vm4, %v1687_v60, 0.0 }
0x1e9e   : > { %v1703_v63 = vpack.c.bf16 %v1702_v62, %v1702_v62  ;;  %v1709_v0 = vpack.c.bf16 %v1689_v61, %v1689_v61 }
0x1ea0   : > { %2455 = vst.msk [vmem:[%s3034_s24 + $0x5] sm:$0x1] %vm1474_vm2, %v1703_v63  ;;  %2617 = vmatmul.mubr.msk.bf16.vlgmr.msra.gmra.mrb[4].mxu1 %vm1362_vm14, %v1709_v0  ;;  %v1699_v1 = vpop.permute.xlu1 %1698 }
0x1ea1   : > { %v1701_v2 = vsel %vm1677_vm4, %v1699_v1, %v1586_v34  ;;  %2629 = vmatpush3.bf16.msra.mxu1 %v3222_v36  ;;  %2632 = vmatprep.mubr.msk.bf16.mxu1 %vm2922_vm13, %v2921_v9 }
0x1ea2   : > { %v1768_v53 = vrot.slane %v1701_v2, %v3255_v30  ;;  %2630 = vmatprep.subr.bf16.mxu1 %v2921_v9 }
0x1ea4   : > { %1769 = vrot.lane.b32.xlu1 %v1768_v53, %s2926_s29 }
0x1ea5   : > { %2631 = vmatpush3.bf16.msra.mxu1 %v3230_v10 }
0x1ea6   : > { %2644 = vmatprep.subr.bf16.mxu1 %v2921_v9 }
0x1f16   : > { %v1770_v24 = vpop.permute.xlu1 %1769 }
0x1f73   : > { %v1747_v5 = vpop.f32.mrb[4].mxu1 }
0x1f74   : > { %v1753_v6 = vadd.f32 %v1747_v5, %v1708_v4  ;;  %v2618_v7 = vpop.f32.mrb[5].mxu1 }
0x1f75   : > { %v1750_v8 = vpop.f32.mrb[6].mxu1 }
0x1f76   : > { %2826 = vtanh.f32 %v1753_v6  ;;  %v2619_v11 = vpop.f32.mrb[7].mxu1  ;;  %v2458_v16 = vmul.f32 -1.442695, %v1753_v6 }
0x1f78   : > { %2828 = vpow2.f32 %v2458_v16 }
0x1f80   : > { %v2827_v15 = vpop.eup %2826 }
0x1f81   : > { %1774 = vrot.lane.b32.xlu0 %v2827_v15, %s2925_s14  ;;  %v2464_v15 = vld [vmem:[%s3036_s25 + $0x2] sm:$0x1] }
0x1f82   : > { %v2829_v17 = vpop.eup %2828  ;;  %v1938_v16 = vunpack.c.l.bf16 %v2464_v15 }
0x1f83   : > { %v1757_v13 = vadd.f32 1.0, %v2829_v17 }
0x1f85   : > { %2830 = vrcp.f32 %v1757_v13 }
0x1f8f   : > { %v2831_v21 = vpop.eup %2830 }
0x1f90   : > { %v1772_v25 = vmul.f32 %v2831_v21, %v1770_v24 }
0x1ff3   : > { %v1775_v22 = vpop.permute.xlu0 %1774 }
0x1ff4   : > { %v1777_v23 = vmul.f32 %v2831_v21, %v1775_v22 }
0x1ff6   : > { %1779 = vrot.lane.b32.xlu0 %v1777_v23, %s2926_s29 }
0x1ffa   : > { %1790 = vperm.xlu0 %2797, %v3264_v20  }
0x1ffe   : > { %2798 = vset.pattern.permute.xlu0 %v2932_v49 }
0x2068   : > { %v1780_v26 = vpop.permute.xlu0 %1779 }
0x2069   : > { %v1782_v27 = vadd.f32 %v1780_v26, %v1772_v25 }
0x206b   : > { %2832 = vtanh.f32 %v1782_v27  ;;  %v1812_v34 = vrot.slane %v1782_v27, %v3255_v30 }
0x2075   : > { %v2833_v28 = vpop.eup %2832 }
0x2076   : > { %1785 = vrot.lane.b32.xlu1 %v2833_v28, %s2925_s14 }
0x2079   : > { %v1791_v35 = vpop.permute.xlu0 %1790 }
0x207a   : > { %vm1792_vm5 = vcmp.eq.s32.totalorder %v1791_v35, 1 }
0x20e8   : > { %v1786_v31 = vpop.permute.xlu1 %1785 }
0x20e9   : > { %v1788_v32 = vmul.f32 %v2831_v21, %v1786_v31 }
0x20eb   : > { %v1800_v33 = vrot.slane %v1788_v32, %v3255_v30 }
0x20ed   : > { %1801 = vrot.lane.b32.xlu1 %v1800_v33, %s2926_s29 }
0x20f1   : > { %1813 = vrot.lane.b32.xlu1 %v1812_v34, %s2928_s30 }
0x215f   : > { %v1802_v37 = vpop.permute.xlu1 %1801 }
0x2160   : > { %v1804_v38 = vsel %vm1792_vm5, %v1802_v37, %v1689_v61  ;;  %v1817_v39 = vsel %vm1792_vm5, %v1802_v37, 0.0 }
0x2161   : > { %v1818_v40 = vpack.c.bf16 %v1817_v39, %v1817_v39  ;;  %v1824_v41 = vpack.c.bf16 %v1804_v38, %v1804_v38 }
0x2163   : > { %2459 = vst.msk [vmem:[%s3034_s24 + $0x4] sm:$0x1] %vm1474_vm2, %v1818_v40  ;;  %2625 = vmatmul.mubr.msk.bf16.vlgmr.msra.gmra.mrb[8].mxu0 %vm1362_vm14, %v1824_v41  ;;  %v1814_v42 = vpop.permute.xlu1 %1813 }
0x2164   : > { %v1816_v18 = vsel %vm1792_vm5, %v1814_v42, %v1701_v2  ;;  %2637 = vmatpush3.bf16.msra.mxu0 %v3222_v36  ;;  %2640 = vmatprep.mubr.msk.bf16.mxu0 %vm2922_vm13, %v2921_v9 }
0x2165   : > { %v1883_v43 = vrot.slane %v1816_v18, %v3255_v30  ;;  %2638 = vmatprep.subr.bf16.mxu0 %v2921_v9 }
0x2167   : > { %1884 = vrot.lane.b32.xlu1 %v1883_v43, %s2926_s29 }
0x2168   : > { %2639 = vmatpush3.bf16.msra.mxu0 %v3230_v10 }
0x21d9   : > { %v1885_v58 = vpop.permute.xlu1 %1884 }
0x2236   : > { %v1862_v45 = vpop.f32.mrb[8].mxu0 }
0x2237   : > { %v1868_v46 = vadd.f32 %v1862_v45, %v1823_v19  ;;  %v2626_v12 = vpop.f32.mrb[9].mxu0 }
0x2238   : > { %v1865_v47 = vpop.f32.mrb[10].mxu0 }
0x2239   : > { %2834 = vtanh.f32 %v1868_v46  ;;  %v2627_v48 = vpop.f32.mrb[11].mxu0  ;;  %v2462_v51 = vmul.f32 -1.442695, %v1868_v46  ;;  %v2468_v47 = vld [vmem:[%s3036_s25 + $0x1] sm:$0x1] }
0x223a   : > { %v2053_v48 = vunpack.c.l.bf16 %v2468_v47 }
0x223b   : > { %2836 = vpow2.f32 %v2462_v51 }
0x2243   : > { %v2835_v50 = vpop.eup %2834 }
0x2244   : > { %1889 = vrot.lane.b32.xlu0 %v2835_v50, %s2925_s14 }
0x2245   : > { %v2837_v52 = vpop.eup %2836 }
0x2246   : > { %v1872_v54 = vadd.f32 1.0, %v2837_v52 }
0x2248   : > { %2838 = vrcp.f32 %v1872_v54 }
0x2252   : > { %v2839_v55 = vpop.eup %2838 }
0x2253   : > { %v1887_v59 = vmul.f32 %v2839_v55, %v1885_v58 }
0x22b6   : > { %v1890_v56 = vpop.permute.xlu0 %1889 }
0x22b7   : > { %v1892_v57 = vmul.f32 %v2839_v55, %v1890_v56 }
0x22b9   : > { %1894 = vrot.lane.b32.xlu0 %v1892_v57, %s2926_s29 }
0x22bd   : > { %1905 = vperm.xlu0 %2798, %v3264_v20  }
0x232b   : > { %v1895_v60 = vpop.permute.xlu0 %1894 }
0x232c   : > { %v1897_v61 = vadd.f32 %v1895_v60, %v1887_v59 }
0x232e   : > { %2840 = vtanh.f32 %v1897_v61  ;;  %v1927_v2 = vrot.slane %v1897_v61, %v3255_v30 }
0x2338   : > { %v2841_v62 = vpop.eup %2840 }
0x2339   : > { %1900 = vrot.lane.b32.xlu1 %v2841_v62, %s2925_s14 }
0x233c   : > { %v1906_v53 = vpop.permute.xlu0 %1905 }
0x233d   : > { %vm1907_vm6 = vcmp.eq.s32.totalorder %v1906_v53, 1 }
0x23ab   : > { %v1901_v63 = vpop.permute.xlu1 %1900 }
0x23ac   : > { %v1903_v0 = vmul.f32 %v2839_v55, %v1901_v63  ;;  %v2934_v55 = vmov 1  }
0x23ae   : > { %v1915_v1 = vrot.slane %v1903_v0, %v3255_v30 }
0x23b0   : > { %1916 = vrot.lane.b32.xlu1 %v1915_v1, %s2926_s29 }
0x23b4   : > { %1928 = vrot.lane.b32.xlu1 %v1927_v2, %s2928_s30 }
0x2422   : > { %v1917_v3 = vpop.permute.xlu1 %1916 }
0x2423   : > { %v1919_v4 = vsel %vm1907_vm6, %v1917_v3, %v1804_v38  ;;  %v1932_v5 = vsel %vm1907_vm6, %v1917_v3, 0.0 }
0x2424   : > { %v1933_v6 = vpack.c.bf16 %v1932_v5, %v1932_v5  ;;  %v1939_v7 = vpack.c.bf16 %v1919_v4, %v1919_v4 }
0x2426   : > { %2463 = vst.msk [vmem:[%s3034_s24 + $0x3] sm:$0x1] %vm1474_vm2, %v1933_v6  ;;  %2633 = vmatmul.mubr.msk.bf16.vlgmr.msra.gmra.mrb[8].mxu1 %vm1362_vm14, %v1939_v7  ;;  %v1929_v8 = vpop.permute.xlu1 %1928 }
0x2427   : > { %v1931_v11 = vsel %vm1907_vm6, %v1929_v8, %v1816_v18  ;;  %2645 = vmatpush3.bf16.msra.mxu1 %v3222_v36  ;;  %2648 = vmatprep.mubr.msk.bf16.mxu1 %vm2922_vm13, %v2921_v9  ;;  %v2933_v36 = vmov 2  }
0x2428   : > { %v1998_v14 = vrot.slane %v1931_v11, %v3255_v30  ;;  %2646 = vmatprep.subr.bf16.mxu1 %v2921_v9  ;;  %2799 = vset.pattern.permute.xlu0 %v2933_v36 }
0x242a   : > { %1999 = vrot.lane.b32.xlu1 %v1998_v14, %s2926_s29 }
0x242b   : > { %2647 = vmatpush3.bf16.msra.mxu1 %v3230_v10 }
0x249c   : > { %v2000_v31 = vpop.permute.xlu1 %1999 }
0x24f9   : > { %v1977_v17 = vpop.f32.mrb[8].mxu1 }
0x24fa   : > { %v1983_v13 = vadd.f32 %v1977_v17, %v1938_v16  ;;  %v2634_v21 = vpop.f32.mrb[9].mxu1 }
0x24fb   : > { %v1980_v22 = vpop.f32.mrb[10].mxu1  ;;  %v2166_v21 = vld [vmem:[%s3036_s25] sm:$0x1] }
0x24fc   : > { %2842 = vtanh.f32 %v1983_v13  ;;  %v2635_v23 = vpop.f32.mrb[11].mxu1  ;;  %v2466_v25 = vmul.f32 -1.442695, %v1983_v13  ;;  %v2167_v22 = vunpack.c.l.bf16 %v2166_v21 }
0x24fe   : > { %2844 = vpow2.f32 %v2466_v25 }
0x2506   : > { %v2843_v24 = vpop.eup %2842 }
0x2507   : > { %2004 = vrot.lane.b32.xlu0 %v2843_v24, %s2925_s14 }
0x2508   : > { %v2845_v9 = vpop.eup %2844 }
0x2509   : > { %v1987_v26 = vadd.f32 1.0, %v2845_v9 }
0x250b   : > { %2846 = vrcp.f32 %v1987_v26 }
0x2515   : > { %v2847_v27 = vpop.eup %2846 }
0x2516   : > { %v2002_v32 = vmul.f32 %v2847_v27, %v2000_v31 }
0x2579   : > { %v2005_v10 = vpop.permute.xlu0 %2004 }
0x257a   : > { %v2007_v28 = vmul.f32 %v2847_v27, %v2005_v10 }
0x257c   : > { %2009 = vrot.lane.b32.xlu0 %v2007_v28, %s2926_s29 }
0x2580   : > { %2020 = vperm.xlu0 %2799, %v3264_v20  }
0x2584   : > { %2800 = vset.pattern.permute.xlu0 %v2934_v55 }
0x25ee   : > { %v2010_v33 = vpop.permute.xlu0 %2009 }
0x25ef   : > { %v2012_v34 = vadd.f32 %v2010_v33, %v2002_v32 }
0x25f1   : > { %2848 = vtanh.f32 %v2012_v34  ;;  %v2042_v40 = vrot.slane %v2012_v34, %v3255_v30 }
0x25fb   : > { %v2849_v35 = vpop.eup %2848 }
0x25fc   : > { %2015 = vrot.lane.b32.xlu1 %v2849_v35, %s2925_s14 }
0x25ff   : > { %v2021_v41 = vpop.permute.xlu0 %2020 }
0x2600   : > { %vm2022_vm7 = vcmp.eq.s32.totalorder %v2021_v41, 1 }
0x266e   : > { %v2016_v37 = vpop.permute.xlu1 %2015 }
0x266f   : > { %v2018_v38 = vmul.f32 %v2847_v27, %v2016_v37 }
0x2671   : > { %v2030_v39 = vrot.slane %v2018_v38, %v3255_v30 }
0x2673   : > { %2031 = vrot.lane.b32.xlu1 %v2030_v39, %s2926_s29 }
0x2677   : > { %2043 = vrot.lane.b32.xlu1 %v2042_v40, %s2928_s30 }
0x26e5   : > { %v2032_v42 = vpop.permute.xlu1 %2031 }
0x26e6   : > { %v2034_v18 = vsel %vm2022_vm7, %v2032_v42, %v1919_v4  ;;  %v2047_v43 = vsel %vm2022_vm7, %v2032_v42, 0.0 }
0x26e7   : > { %v2048_v44 = vpack.c.bf16 %v2047_v43, %v2047_v43  ;;  %v2054_v19 = vpack.c.bf16 %v2034_v18, %v2034_v18 }
0x26e9   : > { %2467 = vst.msk [vmem:[%s3034_s24 + $0x2] sm:$0x1] %vm1474_vm2, %v2048_v44  ;;  %2641 = vmatmul.mubr.msk.bf16.vlgmr.msra.gmra.mrb[12].mxu0 %vm1362_vm14, %v2054_v19  ;;  %v2044_v45 = vpop.permute.xlu1 %2043 }
0x26ea   : > { %v2046_v46 = vsel %vm2022_vm7, %v2044_v45, %v1931_v11 }
0x26eb   : > { %v2113_v12 = vrot.slane %v2046_v46, %v3255_v30 }
0x26ed   : > { %2114 = vrot.lane.b32.xlu1 %v2113_v12, %s2926_s29 }
0x275f   : > { %v2115_v63 = vpop.permute.xlu1 %2114 }
0x27bc   : > { %v2092_v49 = vpop.f32.mrb[12].mxu0 }
0x27bd   : > { %v2098_v50 = vadd.f32 %v2092_v49, %v2053_v48  ;;  %v2642_v51 = vpop.f32.mrb[13].mxu0 }
0x27be   : > { %v2095_v52 = vpop.f32.mrb[14].mxu0 }
0x27bf   : > { %2850 = vtanh.f32 %v2098_v50  ;;  %v2643_v54 = vpop.f32.mrb[15].mxu0  ;;  %v2470_v57 = vmul.f32 -1.442695, %v2098_v50 }
0x27c1   : > { %2852 = vpow2.f32 %v2470_v57 }
0x27c9   : > { %v2851_v56 = vpop.eup %2850 }
0x27ca   : > { %2119 = vrot.lane.b32.xlu0 %v2851_v56, %s2925_s14 }
0x27cb   : > { %v2853_v58 = vpop.eup %2852 }
0x27cc   : > { %v2102_v59 = vadd.f32 1.0, %v2853_v58 }
0x27ce   : > { %2854 = vrcp.f32 %v2102_v59 }
0x27d8   : > { %v2855_v60 = vpop.eup %2854 }
0x27d9   : > { %v2117_v0 = vmul.f32 %v2855_v60, %v2115_v63 }
0x283c   : > { %v2120_v61 = vpop.permute.xlu0 %2119 }
0x283d   : > { %v2122_v62 = vmul.f32 %v2855_v60, %v2120_v61 }
0x283f   : > { %2124 = vrot.lane.b32.xlu0 %v2122_v62, %s2926_s29 }
0x2843   : > { %2135 = vperm.xlu0 %2800, %v3264_v20  }
0x2847   : > { %2801 = vset.pattern.permute.xlu0 %v2924_v29 }
0x28b1   : > { %v2125_v1 = vpop.permute.xlu0 %2124 }
0x28b2   : > { %v2127_v2 = vadd.f32 %v2125_v1, %v2117_v0 }
0x28b4   : > { %2856 = vtanh.f32 %v2127_v2  ;;  %v2157_v6 = vrot.slane %v2127_v2, %v3255_v30 }
0x28be   : > { %v2857_v53 = vpop.eup %2856 }
0x28bf   : > { %2130 = vrot.lane.b32.xlu1 %v2857_v53, %s2925_s14 }
0x28c2   : > { %v2136_v29 = vpop.permute.xlu0 %2135 }
0x28c3   : > { %vm2137_vm8 = vcmp.eq.s32.totalorder %v2136_v29, 1 }
0x2931   : > { %v2131_v3 = vpop.permute.xlu1 %2130 }
0x2932   : > { %v2133_v4 = vmul.f32 %v2855_v60, %v2131_v3 }
0x2934   : > { %v2145_v5 = vrot.slane %v2133_v4, %v3255_v30 }
0x2936   : > { %2146 = vrot.lane.b32.xlu1 %v2145_v5, %s2926_s29 }
0x293a   : > { %2158 = vrot.lane.b32.xlu1 %v2157_v6, %s2928_s30 }
0x29a8   : > { %v2147_v7 = vpop.permute.xlu1 %2146 }
0x29a9   : > { %v2149_v8 = vsel %vm2137_vm8, %v2147_v7, %v2034_v18  ;;  %v2162_v11 = vsel %vm2137_vm8, %v2147_v7, 0.0 }
0x29aa   : > { %v2163_v14 = vpack.c.bf16 %v2162_v11, %v2162_v11  ;;  %v2168_v15 = vpack.c.bf16 %v2149_v8, %v2149_v8 }
0x29ac   : > { %2471 = vst.msk [vmem:[%s3034_s24 + $0x1] sm:$0x1] %vm1474_vm2, %v2163_v14  ;;  %2649 = vmatmul.mubr.msk.bf16.vlgmr.msra.gmra.mrb[12].mxu1 %vm1362_vm14, %v2168_v15  ;;  %v2159_v16 = vpop.permute.xlu1 %2158 }
0x29ad   : > { %v2161_v17 = vsel %vm2137_vm8, %v2159_v16, %v2046_v46 }
0x29ae   : > { %v2227_v13 = vrot.slane %v2161_v17, %v3255_v30 }
0x29b0   : > { %2228 = vrot.lane.b32.xlu1 %v2227_v13, %s2926_s29 }
0x2a22   : > { %v2229_v34 = vpop.permute.xlu1 %2228 }
0x2a7f   : > { %v2206_v23 = vpop.f32.mrb[12].mxu1 }
0x2a80   : > { %v2212_v36 = vadd.f32 %v2206_v23, %v2167_v22  ;;  %v2650_v24 = vpop.f32.mrb[13].mxu1 }
0x2a81   : > { %v2209_v25 = vpop.f32.mrb[14].mxu1 }
0x2a82   : > { %2858 = vtanh.f32 %v2212_v36  ;;  %v2651_v9 = vpop.f32.mrb[15].mxu1  ;;  %v2473_v27 = vmul.f32 -1.442695, %v2212_v36 }
0x2a84   : > { %2860 = vpow2.f32 %v2473_v27 }
0x2a8c   : > { %v2859_v26 = vpop.eup %2858 }
0x2a8d   : > { %2233 = vrot.lane.b32.xlu0 %v2859_v26, %s2925_s14 }
0x2a8e   : > { %v2861_v10 = vpop.eup %2860 }
0x2a8f   : > { %v2216_v28 = vadd.f32 1.0, %v2861_v10 }
0x2a91   : > { %2862 = vrcp.f32 %v2216_v28 }
0x2a9b   : > { %v2863_v31 = vpop.eup %2862 }
0x2a9c   : > { %v2231_v35 = vmul.f32 %v2863_v31, %v2229_v34 }
0x2aff   : > { %v2234_v32 = vpop.permute.xlu0 %2233 }
0x2b00   : > { %v2236_v33 = vmul.f32 %v2863_v31, %v2234_v32 }
0x2b02   : > { %2238 = vrot.lane.b32.xlu0 %v2236_v33, %s2926_s29 }
0x2b06   : > { %2249 = vperm.xlu0 %2801, %v3264_v20  }
0x2b74   : > { %v2239_v37 = vpop.permute.xlu0 %2238 }
0x2b75   : > { %v2241_v38 = vadd.f32 %v2239_v37, %v2231_v35 }
0x2b77   : > { %2864 = vtanh.f32 %v2241_v38  ;;  %v2271_v18 = vrot.slane %v2241_v38, %v3255_v30 }
0x2b81   : > { %v2865_v39 = vpop.eup %2864 }
0x2b82   : > { %2244 = vrot.lane.b32.xlu1 %v2865_v39, %s2925_s14 }
0x2b85   : > { %v2250_v20 = vpop.permute.xlu0 %2249 }
0x2b86   : > { %vm2251_vm9 = vcmp.eq.s32.totalorder %v2250_v20, 1 }
0x2bf4   : > { %v2245_v40 = vpop.permute.xlu1 %2244 }
0x2bf5   : > { %v2247_v41 = vmul.f32 %v2863_v31, %v2245_v40 }
0x2bf7   : > { %v2259_v42 = vrot.slane %v2247_v41, %v3255_v30 }
0x2bf9   : > { %2260 = vrot.lane.b32.xlu1 %v2259_v42, %s2926_s29 }
0x2bfd   : > { %2272 = vrot.lane.b32.xlu1 %v2271_v18, %s2928_s30 }
0x2c6b   : > { %v2261_v43 = vpop.permute.xlu1 %2260 }
0x2c6c   : > { %v2263_v44 = vsel %vm2251_vm9, %v2261_v43, %v2149_v8  ;;  %v2276_v19 = vsel %vm2251_vm9, %v2261_v43, 0.0 }
0x2c6d   : > { %v2277_v45 = vpack.c.bf16 %v2276_v19, %v2276_v19  ;;  %2280 = vst.msk [vmem:[#allocation2] sm:$0x3] %vm371_vm0, %v2263_v44 }
0x2c6f   : > { %2278 = vst.msk [vmem:[%s3034_s24] sm:$0x1] %vm1474_vm2, %v2277_v45  ;;  %v2273_v46 = vpop.permute.xlu1 %2272 }
0x2c70   : > { %v2275_v12 = vsel %vm2251_vm9, %v2273_v46, %v2161_v17 }
0x2c71   : > { %2281 = vst.msk [vmem:[#allocation3] sm:$0x3] %vm371_vm0, %v2275_v12 }
0x2c72 PF: > { %s13_s16 = sadd.s32 1, %s2904_s16   ;;  %s3423_s12 = smov %s2892_s13 }
0x2c73   : > { %p10_p12 = scmp.ge.s32.totalorder %s13_s16, 4   ;;  %s3424_s13 = smov %s2994_s21 }
0x2c74   : > { %s3425_s14 = smov %s2900_s15  ;;  %s3426_s15 = smov %s3428_s17 }
0x2c75   :  { %12 = sbr.rel (!%p10_p12) target bundleno = 3 (0x3), region = 197 }

</bundles_post_ra>
